<compile_context>
chip_gen: v7x
topology: tpu7x:2x2x1
jax: 0.10.0
libtpu: 0.0.40
codegen_flags: <defaults>
</compile_context>

<pallas_src>
import functools

import jax
import jax.numpy as jnp
from jax.experimental import pallas as pl
from jax.experimental.pallas import tpu as pltpu


# -----------------------------------------------------------------------------
# Fused kernel: 2-layer LSTM (interleaved per step) + FC epilogue.
# -----------------------------------------------------------------------------
def drqn_fused_kernel(x_ref,                        # (seq*B, D_in)        f32
                      wih0_ref, whh0_ref, b0_ref,   # (D_in,4H) (H,4H) bf16, (1,4H) f32
                      wcat1_hbm, b1_ref,            # (2H,4H) bf16 in HBM, (1,4H) f32
                      wfc_hbm, bfc_ref,             # (H,out_pad) bf16 HBM, (1,out_pad) f32
                      h0_ref, c0_ref,               # (2, B, H) f32 initial states
                      q_ref, hn_ref, cn_ref,        # (B,out_pad), (2,B,H), (2,B,H)
                      wcat1_vmem, wfc_vmem,         # VMEM landing buffers (bf16)
                      gx_ref,                       # (seq*B, 4H) f32 scratch
                      dma_sem):                     # DMA semaphores (2,)
    H = whh0_ref.shape[0]
    B = h0_ref.shape[1]
    seq = x_ref.shape[0] // B

    # ---- kick off async DMA of layer-1 / FC weights (hidden under layer-0) --
    wcat1_cp = pltpu.make_async_copy(wcat1_hbm, wcat1_vmem, dma_sem.at[0])
    wcat1_cp.start()
    wfc_cp = pltpu.make_async_copy(wfc_hbm, wfc_vmem, dma_sem.at[1])
    wfc_cp.start()

    # ---- layer-0 input projection hoisted out of the recurrence -------------
    # One (seq*B, D_in) @ (D_in, 4H) bf16 matmul with f32 accumulation.
    gx_ref[...] = (jnp.dot(x_ref[...].astype(jnp.bfloat16), wih0_ref[...],
                           preferred_element_type=jnp.float32)
                   + b0_ref[...])

    def sigmoid(v):
        # single EUP op per gate (tanh) + VPU mul/add in otherwise-idle slots
        return 0.5 * jnp.tanh(0.5 * v) + 0.5

    def lstm_cell(gates, c):
        # H == 128 -> every gate slice is a full, lane-aligned vreg.
        i_g = sigmoid(gates[:, 0 * H:1 * H])
        f_g = sigmoid(gates[:, 1 * H:2 * H])
        g_g = jnp.tanh(gates[:, 2 * H:3 * H])
        o_g = sigmoid(gates[:, 3 * H:4 * H])
        c_new = f_g * c + i_g * g_g
        h_new = o_g * jnp.tanh(c_new)
        return h_new, c_new

    h0 = h0_ref[0]
    c0 = c0_ref[0]
    h1 = h0_ref[1]
    c1 = c0_ref[1]

    whh0 = whh0_ref[...]          # (H, 4H) bf16, held across the unrolled loop
    b1 = b1_ref[...]              # (1, 4H) f32

    for t in range(seq):          # static trip count -> fully unrolled
        # ----- layer 0, step t (input projection precomputed in gx) ---------
        gates0 = gx_ref[t * B:(t + 1) * B, :] + jnp.dot(
            h0.astype(jnp.bfloat16), whh0, preferred_element_type=jnp.float32)
        h0, c0 = lstm_cell(gates0, c0)

        if t == 0:
            # first use of the layer-1 fused weight: its DMA has been running
            # behind the projection matmul and layer-0 step 0.
            wcat1_cp.wait()

        # ----- layer 1, step t (input proj fused into recurrence, K = 2H) ---
        lhs1 = jnp.concatenate([h0, h1], axis=-1).astype(jnp.bfloat16)
        gates1 = jnp.dot(lhs1, wcat1_vmem[...],
                         preferred_element_type=jnp.float32) + b1
        h1, c1 = lstm_cell(gates1, c1)

    # ---- final states + FC epilogue ------------------------------------------
    hn_ref[0] = h0
    hn_ref[1] = h1
    cn_ref[0] = c0
    cn_ref[1] = c1

    wfc_cp.wait()
    # out[:, -1, :] of the top layer == h1.  out_pad is a multiple of 128 so
    # this store is an unmasked, lane-dense vst.
    q_ref[...] = (jnp.dot(h1.astype(jnp.bfloat16), wfc_vmem[...],
                          preferred_element_type=jnp.float32)
                  + bfc_ref[...])


# -----------------------------------------------------------------------------
# Wrapper
# -----------------------------------------------------------------------------
def _vmem_spec():
    return pl.BlockSpec(memory_space=pltpu.MemorySpace.VMEM)


def _round_up(n, m):
    return ((n + m - 1) // m) * m


def drqn_forward(params, x, hidden_state):
    """DRQN forward pass.

    x            : (batch, seq, input_dim)           (batch_first, like PyTorch)
    hidden_state : (h, c) each (num_layers, batch, hidden_dim)
    returns      : (q_values (batch, output_dim), (h_n, c_n))
    """
    h_in, c_in = hidden_state
    num_layers = 2                     # fused kernel is specialized for 2 layers
    batch, seq, d_in = x.shape
    H = params["hidden_dim"]
    assert H % 128 == 0, "lane-aligned gate slices require hidden_dim % 128 == 0"
    out_dim = params["fc"]["out_dim"]
    out_pad = params["fc"]["w_t_pad"].shape[1]

    # (batch, seq, feat) -> (seq, batch, feat); pad batch to a sublane multiple
    # (fp32 sublane count = 8), then pre-flatten to (seq*B_pad, d_in) so the
    # kernel has zero reshapes.
    B_pad = _round_up(batch, 8)
    x_sbf = jnp.transpose(x, (1, 0, 2)).astype(jnp.float32)
    if B_pad != batch:
        pad_b = B_pad - batch
        x_sbf = jnp.pad(x_sbf, ((0, 0), (0, pad_b), (0, 0)))
        h_in = jnp.pad(h_in, ((0, 0), (0, pad_b), (0, 0)))
        c_in = jnp.pad(c_in, ((0, 0), (0, pad_b), (0, 0)))
    x_flat = x_sbf.reshape(seq * B_pad, d_in)

    p0 = params["lstm0"]
    p1 = params["lstm1"]

    q_pad, h_n, c_n = pl.pallas_call(
        drqn_fused_kernel,
        out_shape=(
            jax.ShapeDtypeStruct((B_pad, out_pad), jnp.float32),
            jax.ShapeDtypeStruct((num_layers, B_pad, H), jnp.float32),
            jax.ShapeDtypeStruct((num_layers, B_pad, H), jnp.float32),
        ),
        in_specs=[
            _vmem_spec(),                          # x_flat
            _vmem_spec(),                          # w_ih0 (bf16)
            _vmem_spec(),                          # w_hh0 (bf16)
            _vmem_spec(),                          # b0
            pl.BlockSpec(memory_space=pl.ANY),     # fused layer-1 weight (manual DMA)
            _vmem_spec(),                          # b1
            pl.BlockSpec(memory_space=pl.ANY),     # fc weight (manual DMA)
            _vmem_spec(),                          # fc bias
            _vmem_spec(),                          # h0
            _vmem_spec(),                          # c0
        ],
        out_specs=(_vmem_spec(), _vmem_spec(), _vmem_spec()),
        scratch_shapes=[
            pltpu.VMEM((2 * H, 4 * H), jnp.bfloat16),      # W_cat1 landing buffer
            pltpu.VMEM((H, out_pad), jnp.bfloat16),        # W_fc landing buffer
            pltpu.VMEM((seq * B_pad, 4 * H), jnp.float32),  # hoisted layer-0 gates_x
            pltpu.SemaphoreType.DMA((2,)),
        ],
    )(x_flat,
      p0["w_ih_t"], p0["w_hh_t"], p0["b"],
      p1["w_cat_t"], p1["b"],
      params["fc"]["w_t_pad"], params["fc"]["b_pad"],
      h_in, c_in)

    q_values = q_pad[:batch, :out_dim]
    h_n = h_n[:, :batch]
    c_n = c_n[:, :batch]
    return q_values, (h_n, c_n)


# -----------------------------------------------------------------------------
# Deterministic parameter init (same math as torch nn.LSTM / nn.Linear)
# -----------------------------------------------------------------------------
def init_params(key, input_dim, output_dim, hidden_dim, num_layers):
    assert num_layers == 2
    scale = 1.0 / jnp.sqrt(hidden_dim)
    layers = []
    for layer in range(num_layers):
        d_in = input_dim if layer == 0 else hidden_dim
        key, k1, k2, k3, k4 = jax.random.split(key, 5)
        # torch layouts: weight_ih (4H, d_in), weight_hh (4H, H), biases (4H,)
        w_ih = jax.random.uniform(k1, (4 * hidden_dim, d_in),
                                  jnp.float32, -scale, scale)
        w_hh = jax.random.uniform(k2, (4 * hidden_dim, hidden_dim),
                                  jnp.float32, -scale, scale)
        b_ih = jax.random.uniform(k3, (4 * hidden_dim,),
                                  jnp.float32, -scale, scale)
        b_hh = jax.random.uniform(k4, (4 * hidden_dim,),
                                  jnp.float32, -scale, scale)
        layers.append({
            "w_ih_t": jnp.transpose(w_ih),                  # (d_in, 4H)
            "w_hh_t": jnp.transpose(w_hh),                  # (H, 4H)
            "b": (b_ih + b_hh).reshape(1, 4 * hidden_dim),  # (1, 4H) f32
        })

    params = {"hidden_dim": hidden_dim}
    # layer 0: separate input / recurrent weights (input proj is hoisted),
    # cast to bf16 (f32 accumulation kept in-kernel).
    params["lstm0"] = {
        "w_ih_t": layers[0]["w_ih_t"].astype(jnp.bfloat16),
        "w_hh_t": layers[0]["w_hh_t"].astype(jnp.bfloat16),
        "b": layers[0]["b"],
    }
    # layer 1: fuse input + recurrent weights into one (2H, 4H) matrix so the
    # per-step matmul is concat([y0_t, h1]) @ W_cat with K = 2H.
    w_cat_t = jnp.concatenate([layers[1]["w_ih_t"], layers[1]["w_hh_t"]], axis=0)
    params["lstm1"] = {
        "w_cat_t": w_cat_t.astype(jnp.bfloat16),            # (2H, 4H)
        "b": layers[1]["b"],
    }

    key, k1, k2 = jax.random.split(key, 3)
    fc_scale = 1.0 / jnp.sqrt(hidden_dim)
    w_fc = jax.random.uniform(k1, (output_dim, hidden_dim),
                              jnp.float32, -fc_scale, fc_scale)
    b_fc = jax.random.uniform(k2, (output_dim,),
                              jnp.float32, -fc_scale, fc_scale)
    # Lane-pad the FC so the q-value store inside the kernel is 128-lane dense.
    out_pad = _round_up(output_dim, 128)
    w_t_pad = jnp.zeros((hidden_dim, out_pad), jnp.float32)
    w_t_pad = w_t_pad.at[:, :output_dim].set(jnp.transpose(w_fc))
    b_pad = jnp.zeros((1, out_pad), jnp.float32)
    b_pad = b_pad.at[0, :output_dim].set(b_fc)
    params["fc"] = {"w_t_pad": w_t_pad.astype(jnp.bfloat16),
                    "b_pad": b_pad,
                    "out_dim": output_dim}
    return params


# -----------------------------------------------------------------------------
# Main
# -----------------------------------------------------------------------------
if __name__ == "__main__":
    batch = 2
    seq_len = 8
    input_dim = 4
    output_dim = 2
    hidden_dim = 128   # module default; lane-aligned gate slices
    num_layers = 2

    key = jax.random.PRNGKey(0)
    key, kx = jax.random.split(key)
    x = jax.random.normal(kx, (batch, seq_len, input_dim), jnp.float32)

    params = init_params(key, input_dim, output_dim, hidden_dim, num_layers)

    # init_hidden equivalent
    h0 = jnp.zeros((num_layers, batch, hidden_dim), jnp.float32)
    c0 = jnp.zeros((num_layers, batch, hidden_dim), jnp.float32)

    fwd = jax.jit(functools.partial(drqn_forward, params))
    q_values, (h_n, c_n) = fwd(x, (h0, c0))
    jax.block_until_ready((q_values, h_n, c_n))

    assert q_values.shape == (batch, output_dim)
    assert h_n.shape == (num_layers, batch, hidden_dim)
    assert c_n.shape == (num_layers, batch, hidden_dim)
    assert bool(jnp.all(jnp.isfinite(q_values)))
    assert bool(jnp.all(jnp.isfinite(h_n))) and bool(jnp.all(jnp.isfinite(c_n)))

    print("KERNEL_OK")
</pallas_src>

<mosaic_0001>
module attributes {stable_mosaic.version = 11 : i64} {
  func.func @drqn_fused_kernel(%arg0: memref<64x4xf32, #tpu.memory_space<vmem>>, %arg1: memref<4x512xbf16, #tpu.memory_space<vmem>>, %arg2: memref<128x512xbf16, #tpu.memory_space<vmem>>, %arg3: memref<1x512xf32, #tpu.memory_space<vmem>>, %arg4: memref<256x512xbf16, #tpu.memory_space<any>>, %arg5: memref<1x512xf32, #tpu.memory_space<vmem>>, %arg6: memref<128x128xbf16, #tpu.memory_space<any>>, %arg7: memref<1x128xf32, #tpu.memory_space<vmem>>, %arg8: memref<2x8x128xf32, #tpu.memory_space<vmem>>, %arg9: memref<2x8x128xf32, #tpu.memory_space<vmem>>, %arg10: memref<8x128xf32, #tpu.memory_space<vmem>>, %arg11: memref<2x8x128xf32, #tpu.memory_space<vmem>>, %arg12: memref<2x8x128xf32, #tpu.memory_space<vmem>>, %arg13: memref<256x512xbf16, #tpu.memory_space<vmem>>, %arg14: memref<128x128xbf16, #tpu.memory_space<vmem>>, %arg15: memref<64x512xf32, #tpu.memory_space<vmem>>, %arg16: memref<2x!tpu.dma_semaphore, #tpu.memory_space<semaphore_mem>>) attributes {dimension_semantics = [], scalar_prefetch = 0 : i64, scratch_operands = 4 : i64, tpu.core_type = #tpu.core_type<tc>} {
    %c0_i32 = arith.constant 0 : i32
    %0 = tpu.memref_slice %arg16[%c0_i32] : memref<2x!tpu.dma_semaphore, #tpu.memory_space<semaphore_mem>> -> memref<1x!tpu.dma_semaphore, #tpu.memory_space<semaphore_mem>>
    %1 = tpu.memref_squeeze %0 : memref<1x!tpu.dma_semaphore, #tpu.memory_space<semaphore_mem>> -> memref<!tpu.dma_semaphore, #tpu.memory_space<semaphore_mem>>
    tpu.enqueue_dma source(%arg4 : memref<256x512xbf16, #tpu.memory_space<any>>) target(%arg13 : memref<256x512xbf16, #tpu.memory_space<vmem>>) target_semaphore(%1 : memref<!tpu.dma_semaphore, #tpu.memory_space<semaphore_mem>>)
    %c1_i32 = arith.constant 1 : i32
    %2 = tpu.memref_slice %arg16[%c1_i32] : memref<2x!tpu.dma_semaphore, #tpu.memory_space<semaphore_mem>> -> memref<1x!tpu.dma_semaphore, #tpu.memory_space<semaphore_mem>>
    %3 = tpu.memref_squeeze %2 : memref<1x!tpu.dma_semaphore, #tpu.memory_space<semaphore_mem>> -> memref<!tpu.dma_semaphore, #tpu.memory_space<semaphore_mem>>
    tpu.enqueue_dma source(%arg6 : memref<128x128xbf16, #tpu.memory_space<any>>) target(%arg14 : memref<128x128xbf16, #tpu.memory_space<vmem>>) target_semaphore(%3 : memref<!tpu.dma_semaphore, #tpu.memory_space<semaphore_mem>>)
    %c0 = arith.constant 0 : index
    %c0_0 = arith.constant 0 : index
    %4 = vector.load %arg0[%c0, %c0_0] : memref<64x4xf32, #tpu.memory_space<vmem>>, vector<64x4xf32>
    %5 = arith.truncf %4 : vector<64x4xf32> to vector<64x4xbf16>
    %c0_1 = arith.constant 0 : index
    %c0_2 = arith.constant 0 : index
    %6 = vector.load %arg1[%c0_1, %c0_2] : memref<4x512xbf16, #tpu.memory_space<vmem>>, vector<4x512xbf16>
    %cst = arith.constant dense<0.000000e+00> : vector<64x512xf32>
    %7 = tpu.matmul %5, %6, %cst {dimension_numbers = #tpu.dot_dimension_numbers<[1], [0], [0], [1], [0, 0, 1, 1], [], []>} : vector<64x4xbf16>, vector<4x512xbf16>, vector<64x512xf32> -> vector<64x512xf32>
    %c0_3 = arith.constant 0 : index
    %c0_4 = arith.constant 0 : index
    %8 = vector.load %arg3[%c0_3, %c0_4] : memref<1x512xf32, #tpu.memory_space<vmem>>, vector<1x512xf32>
    %9 = vector.broadcast %8 : vector<1x512xf32> to vector<64x512xf32>
    %10 = arith.addf %7, %9 : vector<64x512xf32>
    %c0_5 = arith.constant 0 : index
    %c0_6 = arith.constant 0 : index
    %11 = vector.load %arg15[%c0_5, %c0_6] : memref<64x512xf32, #tpu.memory_space<vmem>>, vector<64x512xf32>
    tpu.vector_store %arg15[%c0_5, %c0_6], %10 {strides = array<i32>} : memref<64x512xf32, #tpu.memory_space<vmem>>, vector<64x512xf32>,
    %c0_7 = arith.constant 0 : index
    %c0_8 = arith.constant 0 : index
    %c0_9 = arith.constant 0 : index
    %12 = vector.load %arg8[%c0_7, %c0_8, %c0_9] : memref<2x8x128xf32, #tpu.memory_space<vmem>>, vector<1x8x128xf32>
    %13 = vector.shape_cast %12 : vector<1x8x128xf32> to vector<8x128xf32>
    %c0_10 = arith.constant 0 : index
    %c0_11 = arith.constant 0 : index
    %c0_12 = arith.constant 0 : index
    %14 = vector.load %arg9[%c0_10, %c0_11, %c0_12] : memref<2x8x128xf32, #tpu.memory_space<vmem>>, vector<1x8x128xf32>
    %15 = vector.shape_cast %14 : vector<1x8x128xf32> to vector<8x128xf32>
    %c1 = arith.constant 1 : index
    %c0_13 = arith.constant 0 : index
    %c0_14 = arith.constant 0 : index
    %16 = vector.load %arg8[%c1, %c0_13, %c0_14] : memref<2x8x128xf32, #tpu.memory_space<vmem>>, vector<1x8x128xf32>
    %17 = vector.shape_cast %16 : vector<1x8x128xf32> to vector<8x128xf32>
    %c1_15 = arith.constant 1 : index
    %c0_16 = arith.constant 0 : index
    %c0_17 = arith.constant 0 : index
    %18 = vector.load %arg9[%c1_15, %c0_16, %c0_17] : memref<2x8x128xf32, #tpu.memory_space<vmem>>, vector<1x8x128xf32>
    %19 = vector.shape_cast %18 : vector<1x8x128xf32> to vector<8x128xf32>
    %c0_18 = arith.constant 0 : index
    %c0_19 = arith.constant 0 : index
    %20 = vector.load %arg2[%c0_18, %c0_19] : memref<128x512xbf16, #tpu.memory_space<vmem>>, vector<128x512xbf16>
    %c0_20 = arith.constant 0 : index
    %c0_21 = arith.constant 0 : index
    %21 = vector.load %arg5[%c0_20, %c0_21] : memref<1x512xf32, #tpu.memory_space<vmem>>, vector<1x512xf32>
    %c0_22 = arith.constant 0 : index
    %c0_23 = arith.constant 0 : index
    %22 = vector.load %arg15[%c0_22, %c0_23] : memref<64x512xf32, #tpu.memory_space<vmem>>, vector<8x512xf32>
    %23 = arith.truncf %13 : vector<8x128xf32> to vector<8x128xbf16>
    %cst_24 = arith.constant dense<0.000000e+00> : vector<8x512xf32>
    %24 = tpu.matmul %23, %20, %cst_24 {dimension_numbers = #tpu.dot_dimension_numbers<[1], [0], [0], [1], [0, 0, 1, 1], [], []>} : vector<8x128xbf16>, vector<128x512xbf16>, vector<8x512xf32> -> vector<8x512xf32>
    %25 = arith.addf %22, %24 : vector<8x512xf32>
    %26 = vector.extract_strided_slice %25 {offsets = [0, 0], sizes = [8, 128], strides = [1, 1]} : vector<8x512xf32> to vector<8x128xf32>
    %cst_25 = arith.constant 5.000000e-01 : f32
    %27 = vector.broadcast %cst_25 : f32 to vector<8x128xf32>
    %28 = arith.mulf %27, %26 : vector<8x128xf32>
    %29 = math.tanh %28 : vector<8x128xf32>
    %cst_26 = arith.constant 5.000000e-01 : f32
    %30 = vector.broadcast %cst_26 : f32 to vector<8x128xf32>
    %31 = arith.mulf %30, %29 : vector<8x128xf32>
    %cst_27 = arith.constant 5.000000e-01 : f32
    %32 = vector.broadcast %cst_27 : f32 to vector<8x128xf32>
    %33 = arith.addf %31, %32 : vector<8x128xf32>
    %34 = vector.extract_strided_slice %25 {offsets = [0, 128], sizes = [8, 128], strides = [1, 1]} : vector<8x512xf32> to vector<8x128xf32>
    %cst_28 = arith.constant 5.000000e-01 : f32
    %35 = vector.broadcast %cst_28 : f32 to vector<8x128xf32>
    %36 = arith.mulf %35, %34 : vector<8x128xf32>
    %37 = math.tanh %36 : vector<8x128xf32>
    %cst_29 = arith.constant 5.000000e-01 : f32
    %38 = vector.broadcast %cst_29 : f32 to vector<8x128xf32>
    %39 = arith.mulf %38, %37 : vector<8x128xf32>
    %cst_30 = arith.constant 5.000000e-01 : f32
    %40 = vector.broadcast %cst_30 : f32 to vector<8x128xf32>
    %41 = arith.addf %39, %40 : vector<8x128xf32>
    %42 = vector.extract_strided_slice %25 {offsets = [0, 256], sizes = [8, 128], strides = [1, 1]} : vector<8x512xf32> to vector<8x128xf32>
    %43 = math.tanh %42 : vector<8x128xf32>
    %44 = vector.extract_strided_slice %25 {offsets = [0, 384], sizes = [8, 128], strides = [1, 1]} : vector<8x512xf32> to vector<8x128xf32>
    %cst_31 = arith.constant 5.000000e-01 : f32
    %45 = vector.broadcast %cst_31 : f32 to vector<8x128xf32>
    %46 = arith.mulf %45, %44 : vector<8x128xf32>
    %47 = math.tanh %46 : vector<8x128xf32>
    %cst_32 = arith.constant 5.000000e-01 : f32
    %48 = vector.broadcast %cst_32 : f32 to vector<8x128xf32>
    %49 = arith.mulf %48, %47 : vector<8x128xf32>
    %cst_33 = arith.constant 5.000000e-01 : f32
    %50 = vector.broadcast %cst_33 : f32 to vector<8x128xf32>
    %51 = arith.addf %49, %50 : vector<8x128xf32>
    %52 = arith.mulf %41, %15 : vector<8x128xf32>
    %53 = arith.mulf %33, %43 : vector<8x128xf32>
    %54 = arith.addf %52, %53 : vector<8x128xf32>
    %55 = math.tanh %54 : vector<8x128xf32>
    %56 = arith.mulf %51, %55 : vector<8x128xf32>
    %c0_i32_34 = arith.constant 0 : i32
    %57 = tpu.memref_slice %arg16[%c0_i32_34] : memref<2x!tpu.dma_semaphore, #tpu.memory_space<semaphore_mem>> -> memref<1x!tpu.dma_semaphore, #tpu.memory_space<semaphore_mem>>
    %58 = tpu.memref_squeeze %57 : memref<1x!tpu.dma_semaphore, #tpu.memory_space<semaphore_mem>> -> memref<!tpu.dma_semaphore, #tpu.memory_space<semaphore_mem>>
    tpu.wait_dma2 semaphore(%58 : memref<!tpu.dma_semaphore, #tpu.memory_space<semaphore_mem>>) src(%arg4 : memref<256x512xbf16, #tpu.memory_space<any>>) dst(%arg13 : memref<256x512xbf16, #tpu.memory_space<vmem>>)
    %59 = tpu.concatenate %56, %17 in 1 : vector<8x128xf32>, vector<8x128xf32> -> vector<8x256xf32>
    %60 = arith.truncf %59 : vector<8x256xf32> to vector<8x256xbf16>
    %c0_35 = arith.constant 0 : index
    %c0_36 = arith.constant 0 : index
    %61 = vector.load %arg13[%c0_35, %c0_36] : memref<256x512xbf16, #tpu.memory_space<vmem>>, vector<256x512xbf16>
    %cst_37 = arith.constant dense<0.000000e+00> : vector<8x512xf32>
    %62 = tpu.matmul %60, %61, %cst_37 {dimension_numbers = #tpu.dot_dimension_numbers<[1], [0], [0], [1], [0, 0, 1, 1], [], []>} : vector<8x256xbf16>, vector<256x512xbf16>, vector<8x512xf32> -> vector<8x512xf32>
    %63 = vector.broadcast %21 : vector<1x512xf32> to vector<8x512xf32>
    %64 = arith.addf %62, %63 : vector<8x512xf32>
    %65 = vector.extract_strided_slice %64 {offsets = [0, 0], sizes = [8, 128], strides = [1, 1]} : vector<8x512xf32> to vector<8x128xf32>
    %cst_38 = arith.constant 5.000000e-01 : f32
    %66 = vector.broadcast %cst_38 : f32 to vector<8x128xf32>
    %67 = arith.mulf %66, %65 : vector<8x128xf32>
    %68 = math.tanh %67 : vector<8x128xf32>
    %cst_39 = arith.constant 5.000000e-01 : f32
    %69 = vector.broadcast %cst_39 : f32 to vector<8x128xf32>
    %70 = arith.mulf %69, %68 : vector<8x128xf32>
    %cst_40 = arith.constant 5.000000e-01 : f32
    %71 = vector.broadcast %cst_40 : f32 to vector<8x128xf32>
    %72 = arith.addf %70, %71 : vector<8x128xf32>
    %73 = vector.extract_strided_slice %64 {offsets = [0, 128], sizes = [8, 128], strides = [1, 1]} : vector<8x512xf32> to vector<8x128xf32>
    %cst_41 = arith.constant 5.000000e-01 : f32
    %74 = vector.broadcast %cst_41 : f32 to vector<8x128xf32>
    %75 = arith.mulf %74, %73 : vector<8x128xf32>
    %76 = math.tanh %75 : vector<8x128xf32>
    %cst_42 = arith.constant 5.000000e-01 : f32
    %77 = vector.broadcast %cst_42 : f32 to vector<8x128xf32>
    %78 = arith.mulf %77, %76 : vector<8x128xf32>
    %cst_43 = arith.constant 5.000000e-01 : f32
    %79 = vector.broadcast %cst_43 : f32 to vector<8x128xf32>
    %80 = arith.addf %78, %79 : vector<8x128xf32>
    %81 = vector.extract_strided_slice %64 {offsets = [0, 256], sizes = [8, 128], strides = [1, 1]} : vector<8x512xf32> to vector<8x128xf32>
    %82 = math.tanh %81 : vector<8x128xf32>
    %83 = vector.extract_strided_slice %64 {offsets = [0, 384], sizes = [8, 128], strides = [1, 1]} : vector<8x512xf32> to vector<8x128xf32>
    %cst_44 = arith.constant 5.000000e-01 : f32
    %84 = vector.broadcast %cst_44 : f32 to vector<8x128xf32>
    %85 = arith.mulf %84, %83 : vector<8x128xf32>
    %86 = math.tanh %85 : vector<8x128xf32>
    %cst_45 = arith.constant 5.000000e-01 : f32
    %87 = vector.broadcast %cst_45 : f32 to vector<8x128xf32>
    %88 = arith.mulf %87, %86 : vector<8x128xf32>
    %cst_46 = arith.constant 5.000000e-01 : f32
    %89 = vector.broadcast %cst_46 : f32 to vector<8x128xf32>
    %90 = arith.addf %88, %89 : vector<8x128xf32>
    %91 = arith.mulf %80, %19 : vector<8x128xf32>
    %92 = arith.mulf %72, %82 : vector<8x128xf32>
    %93 = arith.addf %91, %92 : vector<8x128xf32>
    %94 = math.tanh %93 : vector<8x128xf32>
    %95 = arith.mulf %90, %94 : vector<8x128xf32>
    %c8 = arith.constant 8 : index
    %c0_47 = arith.constant 0 : index
    %96 = vector.load %arg15[%c8, %c0_47] : memref<64x512xf32, #tpu.memory_space<vmem>>, vector<8x512xf32>
    %97 = arith.truncf %56 : vector<8x128xf32> to vector<8x128xbf16>
    %cst_48 = arith.constant dense<0.000000e+00> : vector<8x512xf32>
    %98 = tpu.matmul %97, %20, %cst_48 {dimension_numbers = #tpu.dot_dimension_numbers<[1], [0], [0], [1], [0, 0, 1, 1], [], []>} : vector<8x128xbf16>, vector<128x512xbf16>, vector<8x512xf32> -> vector<8x512xf32>
    %99 = arith.addf %96, %98 : vector<8x512xf32>
    %100 = vector.extract_strided_slice %99 {offsets = [0, 0], sizes = [8, 128], strides = [1, 1]} : vector<8x512xf32> to vector<8x128xf32>
    %cst_49 = arith.constant 5.000000e-01 : f32
    %101 = vector.broadcast %cst_49 : f32 to vector<8x128xf32>
    %102 = arith.mulf %101, %100 : vector<8x128xf32>
    %103 = math.tanh %102 : vector<8x128xf32>
    %cst_50 = arith.constant 5.000000e-01 : f32
    %104 = vector.broadcast %cst_50 : f32 to vector<8x128xf32>
    %105 = arith.mulf %104, %103 : vector<8x128xf32>
    %cst_51 = arith.constant 5.000000e-01 : f32
    %106 = vector.broadcast %cst_51 : f32 to vector<8x128xf32>
    %107 = arith.addf %105, %106 : vector<8x128xf32>
    %108 = vector.extract_strided_slice %99 {offsets = [0, 128], sizes = [8, 128], strides = [1, 1]} : vector<8x512xf32> to vector<8x128xf32>
    %cst_52 = arith.constant 5.000000e-01 : f32
    %109 = vector.broadcast %cst_52 : f32 to vector<8x128xf32>
    %110 = arith.mulf %109, %108 : vector<8x128xf32>
    %111 = math.tanh %110 : vector<8x128xf32>
    %cst_53 = arith.constant 5.000000e-01 : f32
    %112 = vector.broadcast %cst_53 : f32 to vector<8x128xf32>
    %113 = arith.mulf %112, %111 : vector<8x128xf32>
    %cst_54 = arith.constant 5.000000e-01 : f32
    %114 = vector.broadcast %cst_54 : f32 to vector<8x128xf32>
    %115 = arith.addf %113, %114 : vector<8x128xf32>
    %116 = vector.extract_strided_slice %99 {offsets = [0, 256], sizes = [8, 128], strides = [1, 1]} : vector<8x512xf32> to vector<8x128xf32>
    %117 = math.tanh %116 : vector<8x128xf32>
    %118 = vector.extract_strided_slice %99 {offsets = [0, 384], sizes = [8, 128], strides = [1, 1]} : vector<8x512xf32> to vector<8x128xf32>
    %cst_55 = arith.constant 5.000000e-01 : f32
    %119 = vector.broadcast %cst_55 : f32 to vector<8x128xf32>
    %120 = arith.mulf %119, %118 : vector<8x128xf32>
    %121 = math.tanh %120 : vector<8x128xf32>
    %cst_56 = arith.constant 5.000000e-01 : f32
    %122 = vector.broadcast %cst_56 : f32 to vector<8x128xf32>
    %123 = arith.mulf %122, %121 : vector<8x128xf32>
    %cst_57 = arith.constant 5.000000e-01 : f32
    %124 = vector.broadcast %cst_57 : f32 to vector<8x128xf32>
    %125 = arith.addf %123, %124 : vector<8x128xf32>
    %126 = arith.mulf %115, %54 : vector<8x128xf32>
    %127 = arith.mulf %107, %117 : vector<8x128xf32>
    %128 = arith.addf %126, %127 : vector<8x128xf32>
    %129 = math.tanh %128 : vector<8x128xf32>
    %130 = arith.mulf %125, %129 : vector<8x128xf32>
    %131 = tpu.concatenate %130, %95 in 1 : vector<8x128xf32>, vector<8x128xf32> -> vector<8x256xf32>
    %132 = arith.truncf %131 : vector<8x256xf32> to vector<8x256xbf16>
    %c0_58 = arith.constant 0 : index
    %c0_59 = arith.constant 0 : index
    %133 = vector.load %arg13[%c0_58, %c0_59] : memref<256x512xbf16, #tpu.memory_space<vmem>>, vector<256x512xbf16>
    %cst_60 = arith.constant dense<0.000000e+00> : vector<8x512xf32>
    %134 = tpu.matmul %132, %133, %cst_60 {dimension_numbers = #tpu.dot_dimension_numbers<[1], [0], [0], [1], [0, 0, 1, 1], [], []>} : vector<8x256xbf16>, vector<256x512xbf16>, vector<8x512xf32> -> vector<8x512xf32>
    %135 = vector.broadcast %21 : vector<1x512xf32> to vector<8x512xf32>
    %136 = arith.addf %134, %135 : vector<8x512xf32>
    %137 = vector.extract_strided_slice %136 {offsets = [0, 0], sizes = [8, 128], strides = [1, 1]} : vector<8x512xf32> to vector<8x128xf32>
    %cst_61 = arith.constant 5.000000e-01 : f32
    %138 = vector.broadcast %cst_61 : f32 to vector<8x128xf32>
    %139 = arith.mulf %138, %137 : vector<8x128xf32>
    %140 = math.tanh %139 : vector<8x128xf32>
    %cst_62 = arith.constant 5.000000e-01 : f32
    %141 = vector.broadcast %cst_62 : f32 to vector<8x128xf32>
    %142 = arith.mulf %141, %140 : vector<8x128xf32>
    %cst_63 = arith.constant 5.000000e-01 : f32
    %143 = vector.broadcast %cst_63 : f32 to vector<8x128xf32>
    %144 = arith.addf %142, %143 : vector<8x128xf32>
    %145 = vector.extract_strided_slice %136 {offsets = [0, 128], sizes = [8, 128], strides = [1, 1]} : vector<8x512xf32> to vector<8x128xf32>
    %cst_64 = arith.constant 5.000000e-01 : f32
    %146 = vector.broadcast %cst_64 : f32 to vector<8x128xf32>
    %147 = arith.mulf %146, %145 : vector<8x128xf32>
    %148 = math.tanh %147 : vector<8x128xf32>
    %cst_65 = arith.constant 5.000000e-01 : f32
    %149 = vector.broadcast %cst_65 : f32 to vector<8x128xf32>
    %150 = arith.mulf %149, %148 : vector<8x128xf32>
    %cst_66 = arith.constant 5.000000e-01 : f32
    %151 = vector.broadcast %cst_66 : f32 to vector<8x128xf32>
    %152 = arith.addf %150, %151 : vector<8x128xf32>
    %153 = vector.extract_strided_slice %136 {offsets = [0, 256], sizes = [8, 128], strides = [1, 1]} : vector<8x512xf32> to vector<8x128xf32>
    %154 = math.tanh %153 : vector<8x128xf32>
    %155 = vector.extract_strided_slice %136 {offsets = [0, 384], sizes = [8, 128], strides = [1, 1]} : vector<8x512xf32> to vector<8x128xf32>
    %cst_67 = arith.constant 5.000000e-01 : f32
    %156 = vector.broadcast %cst_67 : f32 to vector<8x128xf32>
    %157 = arith.mulf %156, %155 : vector<8x128xf32>
    %158 = math.tanh %157 : vector<8x128xf32>
    %cst_68 = arith.constant 5.000000e-01 : f32
    %159 = vector.broadcast %cst_68 : f32 to vector<8x128xf32>
    %160 = arith.mulf %159, %158 : vector<8x128xf32>
    %cst_69 = arith.constant 5.000000e-01 : f32
    %161 = vector.broadcast %cst_69 : f32 to vector<8x128xf32>
    %162 = arith.addf %160, %161 : vector<8x128xf32>
    %163 = arith.mulf %152, %93 : vector<8x128xf32>
    %164 = arith.mulf %144, %154 : vector<8x128xf32>
    %165 = arith.addf %163, %164 : vector<8x128xf32>
    %166 = math.tanh %165 : vector<8x128xf32>
    %167 = arith.mulf %162, %166 : vector<8x128xf32>
    %c16 = arith.constant 16 : index
    %c0_70 = arith.constant 0 : index
    %168 = vector.load %arg15[%c16, %c0_70] : memref<64x512xf32, #tpu.memory_space<vmem>>, vector<8x512xf32>
    %169 = arith.truncf %130 : vector<8x128xf32> to vector<8x128xbf16>
    %cst_71 = arith.constant dense<0.000000e+00> : vector<8x512xf32>
    %170 = tpu.matmul %169, %20, %cst_71 {dimension_numbers = #tpu.dot_dimension_numbers<[1], [0], [0], [1], [0, 0, 1, 1], [], []>} : vector<8x128xbf16>, vector<128x512xbf16>, vector<8x512xf32> -> vector<8x512xf32>
    %171 = arith.addf %168, %170 : vector<8x512xf32>
    %172 = vector.extract_strided_slice %171 {offsets = [0, 0], sizes = [8, 128], strides = [1, 1]} : vector<8x512xf32> to vector<8x128xf32>
    %cst_72 = arith.constant 5.000000e-01 : f32
    %173 = vector.broadcast %cst_72 : f32 to vector<8x128xf32>
    %174 = arith.mulf %173, %172 : vector<8x128xf32>
    %175 = math.tanh %174 : vector<8x128xf32>
    %cst_73 = arith.constant 5.000000e-01 : f32
    %176 = vector.broadcast %cst_73 : f32 to vector<8x128xf32>
    %177 = arith.mulf %176, %175 : vector<8x128xf32>
    %cst_74 = arith.constant 5.000000e-01 : f32
    %178 = vector.broadcast %cst_74 : f32 to vector<8x128xf32>
    %179 = arith.addf %177, %178 : vector<8x128xf32>
    %180 = vector.extract_strided_slice %171 {offsets = [0, 128], sizes = [8, 128], strides = [1, 1]} : vector<8x512xf32> to vector<8x128xf32>
    %cst_75 = arith.constant 5.000000e-01 : f32
    %181 = vector.broadcast %cst_75 : f32 to vector<8x128xf32>
    %182 = arith.mulf %181, %180 : vector<8x128xf32>
    %183 = math.tanh %182 : vector<8x128xf32>
    %cst_76 = arith.constant 5.000000e-01 : f32
    %184 = vector.broadcast %cst_76 : f32 to vector<8x128xf32>
    %185 = arith.mulf %184, %183 : vector<8x128xf32>
    %cst_77 = arith.constant 5.000000e-01 : f32
    %186 = vector.broadcast %cst_77 : f32 to vector<8x128xf32>
    %187 = arith.addf %185, %186 : vector<8x128xf32>
    %188 = vector.extract_strided_slice %171 {offsets = [0, 256], sizes = [8, 128], strides = [1, 1]} : vector<8x512xf32> to vector<8x128xf32>
    %189 = math.tanh %188 : vector<8x128xf32>
    %190 = vector.extract_strided_slice %171 {offsets = [0, 384], sizes = [8, 128], strides = [1, 1]} : vector<8x512xf32> to vector<8x128xf32>
    %cst_78 = arith.constant 5.000000e-01 : f32
    %191 = vector.broadcast %cst_78 : f32 to vector<8x128xf32>
    %192 = arith.mulf %191, %190 : vector<8x128xf32>
    %193 = math.tanh %192 : vector<8x128xf32>
    %cst_79 = arith.constant 5.000000e-01 : f32
    %194 = vector.broadcast %cst_79 : f32 to vector<8x128xf32>
    %195 = arith.mulf %194, %193 : vector<8x128xf32>
    %cst_80 = arith.constant 5.000000e-01 : f32
    %196 = vector.broadcast %cst_80 : f32 to vector<8x128xf32>
    %197 = arith.addf %195, %196 : vector<8x128xf32>
    %198 = arith.mulf %187, %128 : vector<8x128xf32>
    %199 = arith.mulf %179, %189 : vector<8x128xf32>
    %200 = arith.addf %198, %199 : vector<8x128xf32>
    %201 = math.tanh %200 : vector<8x128xf32>
    %202 = arith.mulf %197, %201 : vector<8x128xf32>
    %203 = tpu.concatenate %202, %167 in 1 : vector<8x128xf32>, vector<8x128xf32> -> vector<8x256xf32>
    %204 = arith.truncf %203 : vector<8x256xf32> to vector<8x256xbf16>
    %c0_81 = arith.constant 0 : index
    %c0_82 = arith.constant 0 : index
    %205 = vector.load %arg13[%c0_81, %c0_82] : memref<256x512xbf16, #tpu.memory_space<vmem>>, vector<256x512xbf16>
    %cst_83 = arith.constant dense<0.000000e+00> : vector<8x512xf32>
    %206 = tpu.matmul %204, %205, %cst_83 {dimension_numbers = #tpu.dot_dimension_numbers<[1], [0], [0], [1], [0, 0, 1, 1], [], []>} : vector<8x256xbf16>, vector<256x512xbf16>, vector<8x512xf32> -> vector<8x512xf32>
    %207 = vector.broadcast %21 : vector<1x512xf32> to vector<8x512xf32>
    %208 = arith.addf %206, %207 : vector<8x512xf32>
    %209 = vector.extract_strided_slice %208 {offsets = [0, 0], sizes = [8, 128], strides = [1, 1]} : vector<8x512xf32> to vector<8x128xf32>
    %cst_84 = arith.constant 5.000000e-01 : f32
    %210 = vector.broadcast %cst_84 : f32 to vector<8x128xf32>
    %211 = arith.mulf %210, %209 : vector<8x128xf32>
    %212 = math.tanh %211 : vector<8x128xf32>
    %cst_85 = arith.constant 5.000000e-01 : f32
    %213 = vector.broadcast %cst_85 : f32 to vector<8x128xf32>
    %214 = arith.mulf %213, %212 : vector<8x128xf32>
    %cst_86 = arith.constant 5.000000e-01 : f32
    %215 = vector.broadcast %cst_86 : f32 to vector<8x128xf32>
    %216 = arith.addf %214, %215 : vector<8x128xf32>
    %217 = vector.extract_strided_slice %208 {offsets = [0, 128], sizes = [8, 128], strides = [1, 1]} : vector<8x512xf32> to vector<8x128xf32>
    %cst_87 = arith.constant 5.000000e-01 : f32
    %218 = vector.broadcast %cst_87 : f32 to vector<8x128xf32>
    %219 = arith.mulf %218, %217 : vector<8x128xf32>
    %220 = math.tanh %219 : vector<8x128xf32>
    %cst_88 = arith.constant 5.000000e-01 : f32
    %221 = vector.broadcast %cst_88 : f32 to vector<8x128xf32>
    %222 = arith.mulf %221, %220 : vector<8x128xf32>
    %cst_89 = arith.constant 5.000000e-01 : f32
    %223 = vector.broadcast %cst_89 : f32 to vector<8x128xf32>
    %224 = arith.addf %222, %223 : vector<8x128xf32>
    %225 = vector.extract_strided_slice %208 {offsets = [0, 256], sizes = [8, 128], strides = [1, 1]} : vector<8x512xf32> to vector<8x128xf32>
    %226 = math.tanh %225 : vector<8x128xf32>
    %227 = vector.extract_strided_slice %208 {offsets = [0, 384], sizes = [8, 128], strides = [1, 1]} : vector<8x512xf32> to vector<8x128xf32>
    %cst_90 = arith.constant 5.000000e-01 : f32
    %228 = vector.broadcast %cst_90 : f32 to vector<8x128xf32>
    %229 = arith.mulf %228, %227 : vector<8x128xf32>
    %230 = math.tanh %229 : vector<8x128xf32>
    %cst_91 = arith.constant 5.000000e-01 : f32
    %231 = vector.broadcast %cst_91 : f32 to vector<8x128xf32>
    %232 = arith.mulf %231, %230 : vector<8x128xf32>
    %cst_92 = arith.constant 5.000000e-01 : f32
    %233 = vector.broadcast %cst_92 : f32 to vector<8x128xf32>
    %234 = arith.addf %232, %233 : vector<8x128xf32>
    %235 = arith.mulf %224, %165 : vector<8x128xf32>
    %236 = arith.mulf %216, %226 : vector<8x128xf32>
    %237 = arith.addf %235, %236 : vector<8x128xf32>
    %238 = math.tanh %237 : vector<8x128xf32>
    %239 = arith.mulf %234, %238 : vector<8x128xf32>
    %c24 = arith.constant 24 : index
    %c0_93 = arith.constant 0 : index
    %240 = vector.load %arg15[%c24, %c0_93] : memref<64x512xf32, #tpu.memory_space<vmem>>, vector<8x512xf32>
    %241 = arith.truncf %202 : vector<8x128xf32> to vector<8x128xbf16>
    %cst_94 = arith.constant dense<0.000000e+00> : vector<8x512xf32>
    %242 = tpu.matmul %241, %20, %cst_94 {dimension_numbers = #tpu.dot_dimension_numbers<[1], [0], [0], [1], [0, 0, 1, 1], [], []>} : vector<8x128xbf16>, vector<128x512xbf16>, vector<8x512xf32> -> vector<8x512xf32>
    %243 = arith.addf %240, %242 : vector<8x512xf32>
    %244 = vector.extract_strided_slice %243 {offsets = [0, 0], sizes = [8, 128], strides = [1, 1]} : vector<8x512xf32> to vector<8x128xf32>
    %cst_95 = arith.constant 5.000000e-01 : f32
    %245 = vector.broadcast %cst_95 : f32 to vector<8x128xf32>
    %246 = arith.mulf %245, %244 : vector<8x128xf32>
    %247 = math.tanh %246 : vector<8x128xf32>
    %cst_96 = arith.constant 5.000000e-01 : f32
    %248 = vector.broadcast %cst_96 : f32 to vector<8x128xf32>
    %249 = arith.mulf %248, %247 : vector<8x128xf32>
    %cst_97 = arith.constant 5.000000e-01 : f32
    %250 = vector.broadcast %cst_97 : f32 to vector<8x128xf32>
    %251 = arith.addf %249, %250 : vector<8x128xf32>
    %252 = vector.extract_strided_slice %243 {offsets = [0, 128], sizes = [8, 128], strides = [1, 1]} : vector<8x512xf32> to vector<8x128xf32>
    %cst_98 = arith.constant 5.000000e-01 : f32
    %253 = vector.broadcast %cst_98 : f32 to vector<8x128xf32>
    %254 = arith.mulf %253, %252 : vector<8x128xf32>
    %255 = math.tanh %254 : vector<8x128xf32>
    %cst_99 = arith.constant 5.000000e-01 : f32
    %256 = vector.broadcast %cst_99 : f32 to vector<8x128xf32>
    %257 = arith.mulf %256, %255 : vector<8x128xf32>
    %cst_100 = arith.constant 5.000000e-01 : f32
    %258 = vector.broadcast %cst_100 : f32 to vector<8x128xf32>
    %259 = arith.addf %257, %258 : vector<8x128xf32>
    %260 = vector.extract_strided_slice %243 {offsets = [0, 256], sizes = [8, 128], strides = [1, 1]} : vector<8x512xf32> to vector<8x128xf32>
    %261 = math.tanh %260 : vector<8x128xf32>
    %262 = vector.extract_strided_slice %243 {offsets = [0, 384], sizes = [8, 128], strides = [1, 1]} : vector<8x512xf32> to vector<8x128xf32>
    %cst_101 = arith.constant 5.000000e-01 : f32
    %263 = vector.broadcast %cst_101 : f32 to vector<8x128xf32>
    %264 = arith.mulf %263, %262 : vector<8x128xf32>
    %265 = math.tanh %264 : vector<8x128xf32>
    %cst_102 = arith.constant 5.000000e-01 : f32
    %266 = vector.broadcast %cst_102 : f32 to vector<8x128xf32>
    %267 = arith.mulf %266, %265 : vector<8x128xf32>
    %cst_103 = arith.constant 5.000000e-01 : f32
    %268 = vector.broadcast %cst_103 : f32 to vector<8x128xf32>
    %269 = arith.addf %267, %268 : vector<8x128xf32>
    %270 = arith.mulf %259, %200 : vector<8x128xf32>
    %271 = arith.mulf %251, %261 : vector<8x128xf32>
    %272 = arith.addf %270, %271 : vector<8x128xf32>
    %273 = math.tanh %272 : vector<8x128xf32>
    %274 = arith.mulf %269, %273 : vector<8x128xf32>
    %275 = tpu.concatenate %274, %239 in 1 : vector<8x128xf32>, vector<8x128xf32> -> vector<8x256xf32>
    %276 = arith.truncf %275 : vector<8x256xf32> to vector<8x256xbf16>
    %c0_104 = arith.constant 0 : index
    %c0_105 = arith.constant 0 : index
    %277 = vector.load %arg13[%c0_104, %c0_105] : memref<256x512xbf16, #tpu.memory_space<vmem>>, vector<256x512xbf16>
    %cst_106 = arith.constant dense<0.000000e+00> : vector<8x512xf32>
    %278 = tpu.matmul %276, %277, %cst_106 {dimension_numbers = #tpu.dot_dimension_numbers<[1], [0], [0], [1], [0, 0, 1, 1], [], []>} : vector<8x256xbf16>, vector<256x512xbf16>, vector<8x512xf32> -> vector<8x512xf32>
    %279 = vector.broadcast %21 : vector<1x512xf32> to vector<8x512xf32>
    %280 = arith.addf %278, %279 : vector<8x512xf32>
    %281 = vector.extract_strided_slice %280 {offsets = [0, 0], sizes = [8, 128], strides = [1, 1]} : vector<8x512xf32> to vector<8x128xf32>
    %cst_107 = arith.constant 5.000000e-01 : f32
    %282 = vector.broadcast %cst_107 : f32 to vector<8x128xf32>
    %283 = arith.mulf %282, %281 : vector<8x128xf32>
    %284 = math.tanh %283 : vector<8x128xf32>
    %cst_108 = arith.constant 5.000000e-01 : f32
    %285 = vector.broadcast %cst_108 : f32 to vector<8x128xf32>
    %286 = arith.mulf %285, %284 : vector<8x128xf32>
    %cst_109 = arith.constant 5.000000e-01 : f32
    %287 = vector.broadcast %cst_109 : f32 to vector<8x128xf32>
    %288 = arith.addf %286, %287 : vector<8x128xf32>
    %289 = vector.extract_strided_slice %280 {offsets = [0, 128], sizes = [8, 128], strides = [1, 1]} : vector<8x512xf32> to vector<8x128xf32>
    %cst_110 = arith.constant 5.000000e-01 : f32
    %290 = vector.broadcast %cst_110 : f32 to vector<8x128xf32>
    %291 = arith.mulf %290, %289 : vector<8x128xf32>
    %292 = math.tanh %291 : vector<8x128xf32>
    %cst_111 = arith.constant 5.000000e-01 : f32
    %293 = vector.broadcast %cst_111 : f32 to vector<8x128xf32>
    %294 = arith.mulf %293, %292 : vector<8x128xf32>
    %cst_112 = arith.constant 5.000000e-01 : f32
    %295 = vector.broadcast %cst_112 : f32 to vector<8x128xf32>
    %296 = arith.addf %294, %295 : vector<8x128xf32>
    %297 = vector.extract_strided_slice %280 {offsets = [0, 256], sizes = [8, 128], strides = [1, 1]} : vector<8x512xf32> to vector<8x128xf32>
    %298 = math.tanh %297 : vector<8x128xf32>
    %299 = vector.extract_strided_slice %280 {offsets = [0, 384], sizes = [8, 128], strides = [1, 1]} : vector<8x512xf32> to vector<8x128xf32>
    %cst_113 = arith.constant 5.000000e-01 : f32
    %300 = vector.broadcast %cst_113 : f32 to vector<8x128xf32>
    %301 = arith.mulf %300, %299 : vector<8x128xf32>
    %302 = math.tanh %301 : vector<8x128xf32>
    %cst_114 = arith.constant 5.000000e-01 : f32
    %303 = vector.broadcast %cst_114 : f32 to vector<8x128xf32>
    %304 = arith.mulf %303, %302 : vector<8x128xf32>
    %cst_115 = arith.constant 5.000000e-01 : f32
    %305 = vector.broadcast %cst_115 : f32 to vector<8x128xf32>
    %306 = arith.addf %304, %305 : vector<8x128xf32>
    %307 = arith.mulf %296, %237 : vector<8x128xf32>
    %308 = arith.mulf %288, %298 : vector<8x128xf32>
    %309 = arith.addf %307, %308 : vector<8x128xf32>
    %310 = math.tanh %309 : vector<8x128xf32>
    %311 = arith.mulf %306, %310 : vector<8x128xf32>
    %c32 = arith.constant 32 : index
    %c0_116 = arith.constant 0 : index
    %312 = vector.load %arg15[%c32, %c0_116] : memref<64x512xf32, #tpu.memory_space<vmem>>, vector<8x512xf32>
    %313 = arith.truncf %274 : vector<8x128xf32> to vector<8x128xbf16>
    %cst_117 = arith.constant dense<0.000000e+00> : vector<8x512xf32>
    %314 = tpu.matmul %313, %20, %cst_117 {dimension_numbers = #tpu.dot_dimension_numbers<[1], [0], [0], [1], [0, 0, 1, 1], [], []>} : vector<8x128xbf16>, vector<128x512xbf16>, vector<8x512xf32> -> vector<8x512xf32>
    %315 = arith.addf %312, %314 : vector<8x512xf32>
    %316 = vector.extract_strided_slice %315 {offsets = [0, 0], sizes = [8, 128], strides = [1, 1]} : vector<8x512xf32> to vector<8x128xf32>
    %cst_118 = arith.constant 5.000000e-01 : f32
    %317 = vector.broadcast %cst_118 : f32 to vector<8x128xf32>
    %318 = arith.mulf %317, %316 : vector<8x128xf32>
    %319 = math.tanh %318 : vector<8x128xf32>
    %cst_119 = arith.constant 5.000000e-01 : f32
    %320 = vector.broadcast %cst_119 : f32 to vector<8x128xf32>
    %321 = arith.mulf %320, %319 : vector<8x128xf32>
    %cst_120 = arith.constant 5.000000e-01 : f32
    %322 = vector.broadcast %cst_120 : f32 to vector<8x128xf32>
    %323 = arith.addf %321, %322 : vector<8x128xf32>
    %324 = vector.extract_strided_slice %315 {offsets = [0, 128], sizes = [8, 128], strides = [1, 1]} : vector<8x512xf32> to vector<8x128xf32>
    %cst_121 = arith.constant 5.000000e-01 : f32
    %325 = vector.broadcast %cst_121 : f32 to vector<8x128xf32>
    %326 = arith.mulf %325, %324 : vector<8x128xf32>
    %327 = math.tanh %326 : vector<8x128xf32>
    %cst_122 = arith.constant 5.000000e-01 : f32
    %328 = vector.broadcast %cst_122 : f32 to vector<8x128xf32>
    %329 = arith.mulf %328, %327 : vector<8x128xf32>
    %cst_123 = arith.constant 5.000000e-01 : f32
    %330 = vector.broadcast %cst_123 : f32 to vector<8x128xf32>
    %331 = arith.addf %329, %330 : vector<8x128xf32>
    %332 = vector.extract_strided_slice %315 {offsets = [0, 256], sizes = [8, 128], strides = [1, 1]} : vector<8x512xf32> to vector<8x128xf32>
    %333 = math.tanh %332 : vector<8x128xf32>
    %334 = vector.extract_strided_slice %315 {offsets = [0, 384], sizes = [8, 128], strides = [1, 1]} : vector<8x512xf32> to vector<8x128xf32>
    %cst_124 = arith.constant 5.000000e-01 : f32
    %335 = vector.broadcast %cst_124 : f32 to vector<8x128xf32>
    %336 = arith.mulf %335, %334 : vector<8x128xf32>
    %337 = math.tanh %336 : vector<8x128xf32>
    %cst_125 = arith.constant 5.000000e-01 : f32
    %338 = vector.broadcast %cst_125 : f32 to vector<8x128xf32>
    %339 = arith.mulf %338, %337 : vector<8x128xf32>
    %cst_126 = arith.constant 5.000000e-01 : f32
    %340 = vector.broadcast %cst_126 : f32 to vector<8x128xf32>
    %341 = arith.addf %339, %340 : vector<8x128xf32>
    %342 = arith.mulf %331, %272 : vector<8x128xf32>
    %343 = arith.mulf %323, %333 : vector<8x128xf32>
    %344 = arith.addf %342, %343 : vector<8x128xf32>
    %345 = math.tanh %344 : vector<8x128xf32>
    %346 = arith.mulf %341, %345 : vector<8x128xf32>
    %347 = tpu.concatenate %346, %311 in 1 : vector<8x128xf32>, vector<8x128xf32> -> vector<8x256xf32>
    %348 = arith.truncf %347 : vector<8x256xf32> to vector<8x256xbf16>
    %c0_127 = arith.constant 0 : index
    %c0_128 = arith.constant 0 : index
    %349 = vector.load %arg13[%c0_127, %c0_128] : memref<256x512xbf16, #tpu.memory_space<vmem>>, vector<256x512xbf16>
    %cst_129 = arith.constant dense<0.000000e+00> : vector<8x512xf32>
    %350 = tpu.matmul %348, %349, %cst_129 {dimension_numbers = #tpu.dot_dimension_numbers<[1], [0], [0], [1], [0, 0, 1, 1], [], []>} : vector<8x256xbf16>, vector<256x512xbf16>, vector<8x512xf32> -> vector<8x512xf32>
    %351 = vector.broadcast %21 : vector<1x512xf32> to vector<8x512xf32>
    %352 = arith.addf %350, %351 : vector<8x512xf32>
    %353 = vector.extract_strided_slice %352 {offsets = [0, 0], sizes = [8, 128], strides = [1, 1]} : vector<8x512xf32> to vector<8x128xf32>
    %cst_130 = arith.constant 5.000000e-01 : f32
    %354 = vector.broadcast %cst_130 : f32 to vector<8x128xf32>
    %355 = arith.mulf %354, %353 : vector<8x128xf32>
    %356 = math.tanh %355 : vector<8x128xf32>
    %cst_131 = arith.constant 5.000000e-01 : f32
    %357 = vector.broadcast %cst_131 : f32 to vector<8x128xf32>
    %358 = arith.mulf %357, %356 : vector<8x128xf32>
    %cst_132 = arith.constant 5.000000e-01 : f32
    %359 = vector.broadcast %cst_132 : f32 to vector<8x128xf32>
    %360 = arith.addf %358, %359 : vector<8x128xf32>
    %361 = vector.extract_strided_slice %352 {offsets = [0, 128], sizes = [8, 128], strides = [1, 1]} : vector<8x512xf32> to vector<8x128xf32>
    %cst_133 = arith.constant 5.000000e-01 : f32
    %362 = vector.broadcast %cst_133 : f32 to vector<8x128xf32>
    %363 = arith.mulf %362, %361 : vector<8x128xf32>
    %364 = math.tanh %363 : vector<8x128xf32>
    %cst_134 = arith.constant 5.000000e-01 : f32
    %365 = vector.broadcast %cst_134 : f32 to vector<8x128xf32>
    %366 = arith.mulf %365, %364 : vector<8x128xf32>
    %cst_135 = arith.constant 5.000000e-01 : f32
    %367 = vector.broadcast %cst_135 : f32 to vector<8x128xf32>
    %368 = arith.addf %366, %367 : vector<8x128xf32>
    %369 = vector.extract_strided_slice %352 {offsets = [0, 256], sizes = [8, 128], strides = [1, 1]} : vector<8x512xf32> to vector<8x128xf32>
    %370 = math.tanh %369 : vector<8x128xf32>
    %371 = vector.extract_strided_slice %352 {offsets = [0, 384], sizes = [8, 128], strides = [1, 1]} : vector<8x512xf32> to vector<8x128xf32>
    %cst_136 = arith.constant 5.000000e-01 : f32
    %372 = vector.broadcast %cst_136 : f32 to vector<8x128xf32>
    %373 = arith.mulf %372, %371 : vector<8x128xf32>
    %374 = math.tanh %373 : vector<8x128xf32>
    %cst_137 = arith.constant 5.000000e-01 : f32
    %375 = vector.broadcast %cst_137 : f32 to vector<8x128xf32>
    %376 = arith.mulf %375, %374 : vector<8x128xf32>
    %cst_138 = arith.constant 5.000000e-01 : f32
    %377 = vector.broadcast %cst_138 : f32 to vector<8x128xf32>
    %378 = arith.addf %376, %377 : vector<8x128xf32>
    %379 = arith.mulf %368, %309 : vector<8x128xf32>
    %380 = arith.mulf %360, %370 : vector<8x128xf32>
    %381 = arith.addf %379, %380 : vector<8x128xf32>
    %382 = math.tanh %381 : vector<8x128xf32>
    %383 = arith.mulf %378, %382 : vector<8x128xf32>
    %c40 = arith.constant 40 : index
    %c0_139 = arith.constant 0 : index
    %384 = vector.load %arg15[%c40, %c0_139] : memref<64x512xf32, #tpu.memory_space<vmem>>, vector<8x512xf32>
    %385 = arith.truncf %346 : vector<8x128xf32> to vector<8x128xbf16>
    %cst_140 = arith.constant dense<0.000000e+00> : vector<8x512xf32>
    %386 = tpu.matmul %385, %20, %cst_140 {dimension_numbers = #tpu.dot_dimension_numbers<[1], [0], [0], [1], [0, 0, 1, 1], [], []>} : vector<8x128xbf16>, vector<128x512xbf16>, vector<8x512xf32> -> vector<8x512xf32>
    %387 = arith.addf %384, %386 : vector<8x512xf32>
    %388 = vector.extract_strided_slice %387 {offsets = [0, 0], sizes = [8, 128], strides = [1, 1]} : vector<8x512xf32> to vector<8x128xf32>
    %cst_141 = arith.constant 5.000000e-01 : f32
    %389 = vector.broadcast %cst_141 : f32 to vector<8x128xf32>
    %390 = arith.mulf %389, %388 : vector<8x128xf32>
    %391 = math.tanh %390 : vector<8x128xf32>
    %cst_142 = arith.constant 5.000000e-01 : f32
    %392 = vector.broadcast %cst_142 : f32 to vector<8x128xf32>
    %393 = arith.mulf %392, %391 : vector<8x128xf32>
    %cst_143 = arith.constant 5.000000e-01 : f32
    %394 = vector.broadcast %cst_143 : f32 to vector<8x128xf32>
    %395 = arith.addf %393, %394 : vector<8x128xf32>
    %396 = vector.extract_strided_slice %387 {offsets = [0, 128], sizes = [8, 128], strides = [1, 1]} : vector<8x512xf32> to vector<8x128xf32>
    %cst_144 = arith.constant 5.000000e-01 : f32
    %397 = vector.broadcast %cst_144 : f32 to vector<8x128xf32>
    %398 = arith.mulf %397, %396 : vector<8x128xf32>
    %399 = math.tanh %398 : vector<8x128xf32>
    %cst_145 = arith.constant 5.000000e-01 : f32
    %400 = vector.broadcast %cst_145 : f32 to vector<8x128xf32>
    %401 = arith.mulf %400, %399 : vector<8x128xf32>
    %cst_146 = arith.constant 5.000000e-01 : f32
    %402 = vector.broadcast %cst_146 : f32 to vector<8x128xf32>
    %403 = arith.addf %401, %402 : vector<8x128xf32>
    %404 = vector.extract_strided_slice %387 {offsets = [0, 256], sizes = [8, 128], strides = [1, 1]} : vector<8x512xf32> to vector<8x128xf32>
    %405 = math.tanh %404 : vector<8x128xf32>
    %406 = vector.extract_strided_slice %387 {offsets = [0, 384], sizes = [8, 128], strides = [1, 1]} : vector<8x512xf32> to vector<8x128xf32>
    %cst_147 = arith.constant 5.000000e-01 : f32
    %407 = vector.broadcast %cst_147 : f32 to vector<8x128xf32>
    %408 = arith.mulf %407, %406 : vector<8x128xf32>
    %409 = math.tanh %408 : vector<8x128xf32>
    %cst_148 = arith.constant 5.000000e-01 : f32
    %410 = vector.broadcast %cst_148 : f32 to vector<8x128xf32>
    %411 = arith.mulf %410, %409 : vector<8x128xf32>
    %cst_149 = arith.constant 5.000000e-01 : f32
    %412 = vector.broadcast %cst_149 : f32 to vector<8x128xf32>
    %413 = arith.addf %411, %412 : vector<8x128xf32>
    %414 = arith.mulf %403, %344 : vector<8x128xf32>
    %415 = arith.mulf %395, %405 : vector<8x128xf32>
    %416 = arith.addf %414, %415 : vector<8x128xf32>
    %417 = math.tanh %416 : vector<8x128xf32>
    %418 = arith.mulf %413, %417 : vector<8x128xf32>
    %419 = tpu.concatenate %418, %383 in 1 : vector<8x128xf32>, vector<8x128xf32> -> vector<8x256xf32>
    %420 = arith.truncf %419 : vector<8x256xf32> to vector<8x256xbf16>
    %c0_150 = arith.constant 0 : index
    %c0_151 = arith.constant 0 : index
    %421 = vector.load %arg13[%c0_150, %c0_151] : memref<256x512xbf16, #tpu.memory_space<vmem>>, vector<256x512xbf16>
    %cst_152 = arith.constant dense<0.000000e+00> : vector<8x512xf32>
    %422 = tpu.matmul %420, %421, %cst_152 {dimension_numbers = #tpu.dot_dimension_numbers<[1], [0], [0], [1], [0, 0, 1, 1], [], []>} : vector<8x256xbf16>, vector<256x512xbf16>, vector<8x512xf32> -> vector<8x512xf32>
    %423 = vector.broadcast %21 : vector<1x512xf32> to vector<8x512xf32>
    %424 = arith.addf %422, %423 : vector<8x512xf32>
    %425 = vector.extract_strided_slice %424 {offsets = [0, 0], sizes = [8, 128], strides = [1, 1]} : vector<8x512xf32> to vector<8x128xf32>
    %cst_153 = arith.constant 5.000000e-01 : f32
    %426 = vector.broadcast %cst_153 : f32 to vector<8x128xf32>
    %427 = arith.mulf %426, %425 : vector<8x128xf32>
    %428 = math.tanh %427 : vector<8x128xf32>
    %cst_154 = arith.constant 5.000000e-01 : f32
    %429 = vector.broadcast %cst_154 : f32 to vector<8x128xf32>
    %430 = arith.mulf %429, %428 : vector<8x128xf32>
    %cst_155 = arith.constant 5.000000e-01 : f32
    %431 = vector.broadcast %cst_155 : f32 to vector<8x128xf32>
    %432 = arith.addf %430, %431 : vector<8x128xf32>
    %433 = vector.extract_strided_slice %424 {offsets = [0, 128], sizes = [8, 128], strides = [1, 1]} : vector<8x512xf32> to vector<8x128xf32>
    %cst_156 = arith.constant 5.000000e-01 : f32
    %434 = vector.broadcast %cst_156 : f32 to vector<8x128xf32>
    %435 = arith.mulf %434, %433 : vector<8x128xf32>
    %436 = math.tanh %435 : vector<8x128xf32>
    %cst_157 = arith.constant 5.000000e-01 : f32
    %437 = vector.broadcast %cst_157 : f32 to vector<8x128xf32>
    %438 = arith.mulf %437, %436 : vector<8x128xf32>
    %cst_158 = arith.constant 5.000000e-01 : f32
    %439 = vector.broadcast %cst_158 : f32 to vector<8x128xf32>
    %440 = arith.addf %438, %439 : vector<8x128xf32>
    %441 = vector.extract_strided_slice %424 {offsets = [0, 256], sizes = [8, 128], strides = [1, 1]} : vector<8x512xf32> to vector<8x128xf32>
    %442 = math.tanh %441 : vector<8x128xf32>
    %443 = vector.extract_strided_slice %424 {offsets = [0, 384], sizes = [8, 128], strides = [1, 1]} : vector<8x512xf32> to vector<8x128xf32>
    %cst_159 = arith.constant 5.000000e-01 : f32
    %444 = vector.broadcast %cst_159 : f32 to vector<8x128xf32>
    %445 = arith.mulf %444, %443 : vector<8x128xf32>
    %446 = math.tanh %445 : vector<8x128xf32>
    %cst_160 = arith.constant 5.000000e-01 : f32
    %447 = vector.broadcast %cst_160 : f32 to vector<8x128xf32>
    %448 = arith.mulf %447, %446 : vector<8x128xf32>
    %cst_161 = arith.constant 5.000000e-01 : f32
    %449 = vector.broadcast %cst_161 : f32 to vector<8x128xf32>
    %450 = arith.addf %448, %449 : vector<8x128xf32>
    %451 = arith.mulf %440, %381 : vector<8x128xf32>
    %452 = arith.mulf %432, %442 : vector<8x128xf32>
    %453 = arith.addf %451, %452 : vector<8x128xf32>
    %454 = math.tanh %453 : vector<8x128xf32>
    %455 = arith.mulf %450, %454 : vector<8x128xf32>
    %c48 = arith.constant 48 : index
    %c0_162 = arith.constant 0 : index
    %456 = vector.load %arg15[%c48, %c0_162] : memref<64x512xf32, #tpu.memory_space<vmem>>, vector<8x512xf32>
    %457 = arith.truncf %418 : vector<8x128xf32> to vector<8x128xbf16>
    %cst_163 = arith.constant dense<0.000000e+00> : vector<8x512xf32>
    %458 = tpu.matmul %457, %20, %cst_163 {dimension_numbers = #tpu.dot_dimension_numbers<[1], [0], [0], [1], [0, 0, 1, 1], [], []>} : vector<8x128xbf16>, vector<128x512xbf16>, vector<8x512xf32> -> vector<8x512xf32>
    %459 = arith.addf %456, %458 : vector<8x512xf32>
    %460 = vector.extract_strided_slice %459 {offsets = [0, 0], sizes = [8, 128], strides = [1, 1]} : vector<8x512xf32> to vector<8x128xf32>
    %cst_164 = arith.constant 5.000000e-01 : f32
    %461 = vector.broadcast %cst_164 : f32 to vector<8x128xf32>
    %462 = arith.mulf %461, %460 : vector<8x128xf32>
    %463 = math.tanh %462 : vector<8x128xf32>
    %cst_165 = arith.constant 5.000000e-01 : f32
    %464 = vector.broadcast %cst_165 : f32 to vector<8x128xf32>
    %465 = arith.mulf %464, %463 : vector<8x128xf32>
    %cst_166 = arith.constant 5.000000e-01 : f32
    %466 = vector.broadcast %cst_166 : f32 to vector<8x128xf32>
    %467 = arith.addf %465, %466 : vector<8x128xf32>
    %468 = vector.extract_strided_slice %459 {offsets = [0, 128], sizes = [8, 128], strides = [1, 1]} : vector<8x512xf32> to vector<8x128xf32>
    %cst_167 = arith.constant 5.000000e-01 : f32
    %469 = vector.broadcast %cst_167 : f32 to vector<8x128xf32>
    %470 = arith.mulf %469, %468 : vector<8x128xf32>
    %471 = math.tanh %470 : vector<8x128xf32>
    %cst_168 = arith.constant 5.000000e-01 : f32
    %472 = vector.broadcast %cst_168 : f32 to vector<8x128xf32>
    %473 = arith.mulf %472, %471 : vector<8x128xf32>
    %cst_169 = arith.constant 5.000000e-01 : f32
    %474 = vector.broadcast %cst_169 : f32 to vector<8x128xf32>
    %475 = arith.addf %473, %474 : vector<8x128xf32>
    %476 = vector.extract_strided_slice %459 {offsets = [0, 256], sizes = [8, 128], strides = [1, 1]} : vector<8x512xf32> to vector<8x128xf32>
    %477 = math.tanh %476 : vector<8x128xf32>
    %478 = vector.extract_strided_slice %459 {offsets = [0, 384], sizes = [8, 128], strides = [1, 1]} : vector<8x512xf32> to vector<8x128xf32>
    %cst_170 = arith.constant 5.000000e-01 : f32
    %479 = vector.broadcast %cst_170 : f32 to vector<8x128xf32>
    %480 = arith.mulf %479, %478 : vector<8x128xf32>
    %481 = math.tanh %480 : vector<8x128xf32>
    %cst_171 = arith.constant 5.000000e-01 : f32
    %482 = vector.broadcast %cst_171 : f32 to vector<8x128xf32>
    %483 = arith.mulf %482, %481 : vector<8x128xf32>
    %cst_172 = arith.constant 5.000000e-01 : f32
    %484 = vector.broadcast %cst_172 : f32 to vector<8x128xf32>
    %485 = arith.addf %483, %484 : vector<8x128xf32>
    %486 = arith.mulf %475, %416 : vector<8x128xf32>
    %487 = arith.mulf %467, %477 : vector<8x128xf32>
    %488 = arith.addf %486, %487 : vector<8x128xf32>
    %489 = math.tanh %488 : vector<8x128xf32>
    %490 = arith.mulf %485, %489 : vector<8x128xf32>
    %491 = tpu.concatenate %490, %455 in 1 : vector<8x128xf32>, vector<8x128xf32> -> vector<8x256xf32>
    %492 = arith.truncf %491 : vector<8x256xf32> to vector<8x256xbf16>
    %c0_173 = arith.constant 0 : index
    %c0_174 = arith.constant 0 : index
    %493 = vector.load %arg13[%c0_173, %c0_174] : memref<256x512xbf16, #tpu.memory_space<vmem>>, vector<256x512xbf16>
    %cst_175 = arith.constant dense<0.000000e+00> : vector<8x512xf32>
    %494 = tpu.matmul %492, %493, %cst_175 {dimension_numbers = #tpu.dot_dimension_numbers<[1], [0], [0], [1], [0, 0, 1, 1], [], []>} : vector<8x256xbf16>, vector<256x512xbf16>, vector<8x512xf32> -> vector<8x512xf32>
    %495 = vector.broadcast %21 : vector<1x512xf32> to vector<8x512xf32>
    %496 = arith.addf %494, %495 : vector<8x512xf32>
    %497 = vector.extract_strided_slice %496 {offsets = [0, 0], sizes = [8, 128], strides = [1, 1]} : vector<8x512xf32> to vector<8x128xf32>
    %cst_176 = arith.constant 5.000000e-01 : f32
    %498 = vector.broadcast %cst_176 : f32 to vector<8x128xf32>
    %499 = arith.mulf %498, %497 : vector<8x128xf32>
    %500 = math.tanh %499 : vector<8x128xf32>
    %cst_177 = arith.constant 5.000000e-01 : f32
    %501 = vector.broadcast %cst_177 : f32 to vector<8x128xf32>
    %502 = arith.mulf %501, %500 : vector<8x128xf32>
    %cst_178 = arith.constant 5.000000e-01 : f32
    %503 = vector.broadcast %cst_178 : f32 to vector<8x128xf32>
    %504 = arith.addf %502, %503 : vector<8x128xf32>
    %505 = vector.extract_strided_slice %496 {offsets = [0, 128], sizes = [8, 128], strides = [1, 1]} : vector<8x512xf32> to vector<8x128xf32>
    %cst_179 = arith.constant 5.000000e-01 : f32
    %506 = vector.broadcast %cst_179 : f32 to vector<8x128xf32>
    %507 = arith.mulf %506, %505 : vector<8x128xf32>
    %508 = math.tanh %507 : vector<8x128xf32>
    %cst_180 = arith.constant 5.000000e-01 : f32
    %509 = vector.broadcast %cst_180 : f32 to vector<8x128xf32>
    %510 = arith.mulf %509, %508 : vector<8x128xf32>
    %cst_181 = arith.constant 5.000000e-01 : f32
    %511 = vector.broadcast %cst_181 : f32 to vector<8x128xf32>
    %512 = arith.addf %510, %511 : vector<8x128xf32>
    %513 = vector.extract_strided_slice %496 {offsets = [0, 256], sizes = [8, 128], strides = [1, 1]} : vector<8x512xf32> to vector<8x128xf32>
    %514 = math.tanh %513 : vector<8x128xf32>
    %515 = vector.extract_strided_slice %496 {offsets = [0, 384], sizes = [8, 128], strides = [1, 1]} : vector<8x512xf32> to vector<8x128xf32>
    %cst_182 = arith.constant 5.000000e-01 : f32
    %516 = vector.broadcast %cst_182 : f32 to vector<8x128xf32>
    %517 = arith.mulf %516, %515 : vector<8x128xf32>
    %518 = math.tanh %517 : vector<8x128xf32>
    %cst_183 = arith.constant 5.000000e-01 : f32
    %519 = vector.broadcast %cst_183 : f32 to vector<8x128xf32>
    %520 = arith.mulf %519, %518 : vector<8x128xf32>
    %cst_184 = arith.constant 5.000000e-01 : f32
    %521 = vector.broadcast %cst_184 : f32 to vector<8x128xf32>
    %522 = arith.addf %520, %521 : vector<8x128xf32>
    %523 = arith.mulf %512, %453 : vector<8x128xf32>
    %524 = arith.mulf %504, %514 : vector<8x128xf32>
    %525 = arith.addf %523, %524 : vector<8x128xf32>
    %526 = math.tanh %525 : vector<8x128xf32>
    %527 = arith.mulf %522, %526 : vector<8x128xf32>
    %c56 = arith.constant 56 : index
    %c0_185 = arith.constant 0 : index
    %528 = vector.load %arg15[%c56, %c0_185] : memref<64x512xf32, #tpu.memory_space<vmem>>, vector<8x512xf32>
    %529 = arith.truncf %490 : vector<8x128xf32> to vector<8x128xbf16>
    %cst_186 = arith.constant dense<0.000000e+00> : vector<8x512xf32>
    %530 = tpu.matmul %529, %20, %cst_186 {dimension_numbers = #tpu.dot_dimension_numbers<[1], [0], [0], [1], [0, 0, 1, 1], [], []>} : vector<8x128xbf16>, vector<128x512xbf16>, vector<8x512xf32> -> vector<8x512xf32>
    %531 = arith.addf %528, %530 : vector<8x512xf32>
    %532 = vector.extract_strided_slice %531 {offsets = [0, 0], sizes = [8, 128], strides = [1, 1]} : vector<8x512xf32> to vector<8x128xf32>
    %cst_187 = arith.constant 5.000000e-01 : f32
    %533 = vector.broadcast %cst_187 : f32 to vector<8x128xf32>
    %534 = arith.mulf %533, %532 : vector<8x128xf32>
    %535 = math.tanh %534 : vector<8x128xf32>
    %cst_188 = arith.constant 5.000000e-01 : f32
    %536 = vector.broadcast %cst_188 : f32 to vector<8x128xf32>
    %537 = arith.mulf %536, %535 : vector<8x128xf32>
    %cst_189 = arith.constant 5.000000e-01 : f32
    %538 = vector.broadcast %cst_189 : f32 to vector<8x128xf32>
    %539 = arith.addf %537, %538 : vector<8x128xf32>
    %540 = vector.extract_strided_slice %531 {offsets = [0, 128], sizes = [8, 128], strides = [1, 1]} : vector<8x512xf32> to vector<8x128xf32>
    %cst_190 = arith.constant 5.000000e-01 : f32
    %541 = vector.broadcast %cst_190 : f32 to vector<8x128xf32>
    %542 = arith.mulf %541, %540 : vector<8x128xf32>
    %543 = math.tanh %542 : vector<8x128xf32>
    %cst_191 = arith.constant 5.000000e-01 : f32
    %544 = vector.broadcast %cst_191 : f32 to vector<8x128xf32>
    %545 = arith.mulf %544, %543 : vector<8x128xf32>
    %cst_192 = arith.constant 5.000000e-01 : f32
    %546 = vector.broadcast %cst_192 : f32 to vector<8x128xf32>
    %547 = arith.addf %545, %546 : vector<8x128xf32>
    %548 = vector.extract_strided_slice %531 {offsets = [0, 256], sizes = [8, 128], strides = [1, 1]} : vector<8x512xf32> to vector<8x128xf32>
    %549 = math.tanh %548 : vector<8x128xf32>
    %550 = vector.extract_strided_slice %531 {offsets = [0, 384], sizes = [8, 128], strides = [1, 1]} : vector<8x512xf32> to vector<8x128xf32>
    %cst_193 = arith.constant 5.000000e-01 : f32
    %551 = vector.broadcast %cst_193 : f32 to vector<8x128xf32>
    %552 = arith.mulf %551, %550 : vector<8x128xf32>
    %553 = math.tanh %552 : vector<8x128xf32>
    %cst_194 = arith.constant 5.000000e-01 : f32
    %554 = vector.broadcast %cst_194 : f32 to vector<8x128xf32>
    %555 = arith.mulf %554, %553 : vector<8x128xf32>
    %cst_195 = arith.constant 5.000000e-01 : f32
    %556 = vector.broadcast %cst_195 : f32 to vector<8x128xf32>
    %557 = arith.addf %555, %556 : vector<8x128xf32>
    %558 = arith.mulf %547, %488 : vector<8x128xf32>
    %559 = arith.mulf %539, %549 : vector<8x128xf32>
    %560 = arith.addf %558, %559 : vector<8x128xf32>
    %561 = math.tanh %560 : vector<8x128xf32>
    %562 = arith.mulf %557, %561 : vector<8x128xf32>
    %563 = tpu.concatenate %562, %527 in 1 : vector<8x128xf32>, vector<8x128xf32> -> vector<8x256xf32>
    %564 = arith.truncf %563 : vector<8x256xf32> to vector<8x256xbf16>
    %c0_196 = arith.constant 0 : index
    %c0_197 = arith.constant 0 : index
    %565 = vector.load %arg13[%c0_196, %c0_197] : memref<256x512xbf16, #tpu.memory_space<vmem>>, vector<256x512xbf16>
    %cst_198 = arith.constant dense<0.000000e+00> : vector<8x512xf32>
    %566 = tpu.matmul %564, %565, %cst_198 {dimension_numbers = #tpu.dot_dimension_numbers<[1], [0], [0], [1], [0, 0, 1, 1], [], []>} : vector<8x256xbf16>, vector<256x512xbf16>, vector<8x512xf32> -> vector<8x512xf32>
    %567 = vector.broadcast %21 : vector<1x512xf32> to vector<8x512xf32>
    %568 = arith.addf %566, %567 : vector<8x512xf32>
    %569 = vector.extract_strided_slice %568 {offsets = [0, 0], sizes = [8, 128], strides = [1, 1]} : vector<8x512xf32> to vector<8x128xf32>
    %cst_199 = arith.constant 5.000000e-01 : f32
    %570 = vector.broadcast %cst_199 : f32 to vector<8x128xf32>
    %571 = arith.mulf %570, %569 : vector<8x128xf32>
    %572 = math.tanh %571 : vector<8x128xf32>
    %cst_200 = arith.constant 5.000000e-01 : f32
    %573 = vector.broadcast %cst_200 : f32 to vector<8x128xf32>
    %574 = arith.mulf %573, %572 : vector<8x128xf32>
    %cst_201 = arith.constant 5.000000e-01 : f32
    %575 = vector.broadcast %cst_201 : f32 to vector<8x128xf32>
    %576 = arith.addf %574, %575 : vector<8x128xf32>
    %577 = vector.extract_strided_slice %568 {offsets = [0, 128], sizes = [8, 128], strides = [1, 1]} : vector<8x512xf32> to vector<8x128xf32>
    %cst_202 = arith.constant 5.000000e-01 : f32
    %578 = vector.broadcast %cst_202 : f32 to vector<8x128xf32>
    %579 = arith.mulf %578, %577 : vector<8x128xf32>
    %580 = math.tanh %579 : vector<8x128xf32>
    %cst_203 = arith.constant 5.000000e-01 : f32
    %581 = vector.broadcast %cst_203 : f32 to vector<8x128xf32>
    %582 = arith.mulf %581, %580 : vector<8x128xf32>
    %cst_204 = arith.constant 5.000000e-01 : f32
    %583 = vector.broadcast %cst_204 : f32 to vector<8x128xf32>
    %584 = arith.addf %582, %583 : vector<8x128xf32>
    %585 = vector.extract_strided_slice %568 {offsets = [0, 256], sizes = [8, 128], strides = [1, 1]} : vector<8x512xf32> to vector<8x128xf32>
    %586 = math.tanh %585 : vector<8x128xf32>
    %587 = vector.extract_strided_slice %568 {offsets = [0, 384], sizes = [8, 128], strides = [1, 1]} : vector<8x512xf32> to vector<8x128xf32>
    %cst_205 = arith.constant 5.000000e-01 : f32
    %588 = vector.broadcast %cst_205 : f32 to vector<8x128xf32>
    %589 = arith.mulf %588, %587 : vector<8x128xf32>
    %590 = math.tanh %589 : vector<8x128xf32>
    %cst_206 = arith.constant 5.000000e-01 : f32
    %591 = vector.broadcast %cst_206 : f32 to vector<8x128xf32>
    %592 = arith.mulf %591, %590 : vector<8x128xf32>
    %cst_207 = arith.constant 5.000000e-01 : f32
    %593 = vector.broadcast %cst_207 : f32 to vector<8x128xf32>
    %594 = arith.addf %592, %593 : vector<8x128xf32>
    %595 = arith.mulf %584, %525 : vector<8x128xf32>
    %596 = arith.mulf %576, %586 : vector<8x128xf32>
    %597 = arith.addf %595, %596 : vector<8x128xf32>
    %598 = math.tanh %597 : vector<8x128xf32>
    %599 = arith.mulf %594, %598 : vector<8x128xf32>
    %c0_208 = arith.constant 0 : index
    %c0_209 = arith.constant 0 : index
    %c0_210 = arith.constant 0 : index
    %600 = vector.load %arg11[%c0_208, %c0_209, %c0_210] : memref<2x8x128xf32, #tpu.memory_space<vmem>>, vector<1x8x128xf32>
    %601 = vector.shape_cast %600 : vector<1x8x128xf32> to vector<8x128xf32>
    %602 = vector.shape_cast %562 : vector<8x128xf32> to vector<1x8x128xf32>
    tpu.vector_store %arg11[%c0_208, %c0_209, %c0_210], %602 {strides = array<i32>} : memref<2x8x128xf32, #tpu.memory_space<vmem>>, vector<1x8x128xf32>,
    %c1_211 = arith.constant 1 : index
    %c0_212 = arith.constant 0 : index
    %c0_213 = arith.constant 0 : index
    %603 = vector.load %arg11[%c1_211, %c0_212, %c0_213] : memref<2x8x128xf32, #tpu.memory_space<vmem>>, vector<1x8x128xf32>
    %604 = vector.shape_cast %603 : vector<1x8x128xf32> to vector<8x128xf32>
    %605 = vector.shape_cast %599 : vector<8x128xf32> to vector<1x8x128xf32>
    tpu.vector_store %arg11[%c1_211, %c0_212, %c0_213], %605 {strides = array<i32>} : memref<2x8x128xf32, #tpu.memory_space<vmem>>, vector<1x8x128xf32>,
    %c0_214 = arith.constant 0 : index
    %c0_215 = arith.constant 0 : index
    %c0_216 = arith.constant 0 : index
    %606 = vector.load %arg12[%c0_214, %c0_215, %c0_216] : memref<2x8x128xf32, #tpu.memory_space<vmem>>, vector<1x8x128xf32>
    %607 = vector.shape_cast %606 : vector<1x8x128xf32> to vector<8x128xf32>
    %608 = vector.shape_cast %560 : vector<8x128xf32> to vector<1x8x128xf32>
    tpu.vector_store %arg12[%c0_214, %c0_215, %c0_216], %608 {strides = array<i32>} : memref<2x8x128xf32, #tpu.memory_space<vmem>>, vector<1x8x128xf32>,
    %c1_217 = arith.constant 1 : index
    %c0_218 = arith.constant 0 : index
    %c0_219 = arith.constant 0 : index
    %609 = vector.load %arg12[%c1_217, %c0_218, %c0_219] : memref<2x8x128xf32, #tpu.memory_space<vmem>>, vector<1x8x128xf32>
    %610 = vector.shape_cast %609 : vector<1x8x128xf32> to vector<8x128xf32>
    %611 = vector.shape_cast %597 : vector<8x128xf32> to vector<1x8x128xf32>
    tpu.vector_store %arg12[%c1_217, %c0_218, %c0_219], %611 {strides = array<i32>} : memref<2x8x128xf32, #tpu.memory_space<vmem>>, vector<1x8x128xf32>,
    %c1_i32_220 = arith.constant 1 : i32
    %612 = tpu.memref_slice %arg16[%c1_i32_220] : memref<2x!tpu.dma_semaphore, #tpu.memory_space<semaphore_mem>> -> memref<1x!tpu.dma_semaphore, #tpu.memory_space<semaphore_mem>>
    %613 = tpu.memref_squeeze %612 : memref<1x!tpu.dma_semaphore, #tpu.memory_space<semaphore_mem>> -> memref<!tpu.dma_semaphore, #tpu.memory_space<semaphore_mem>>
    tpu.wait_dma2 semaphore(%613 : memref<!tpu.dma_semaphore, #tpu.memory_space<semaphore_mem>>) src(%arg6 : memref<128x128xbf16, #tpu.memory_space<any>>) dst(%arg14 : memref<128x128xbf16, #tpu.memory_space<vmem>>)
    %614 = arith.truncf %599 : vector<8x128xf32> to vector<8x128xbf16>
    %c0_221 = arith.constant 0 : index
    %c0_222 = arith.constant 0 : index
    %615 = vector.load %arg14[%c0_221, %c0_222] : memref<128x128xbf16, #tpu.memory_space<vmem>>, vector<128x128xbf16>
    %cst_223 = arith.constant dense<0.000000e+00> : vector<8x128xf32>
    %616 = tpu.matmul %614, %615, %cst_223 {dimension_numbers = #tpu.dot_dimension_numbers<[1], [0], [0], [1], [0, 0, 1, 1], [], []>} : vector<8x128xbf16>, vector<128x128xbf16>, vector<8x128xf32> -> vector<8x128xf32>
    %c0_224 = arith.constant 0 : index
    %c0_225 = arith.constant 0 : index
    %617 = vector.load %arg7[%c0_224, %c0_225] : memref<1x128xf32, #tpu.memory_space<vmem>>, vector<1x128xf32>
    %618 = vector.broadcast %617 : vector<1x128xf32> to vector<8x128xf32>
    %619 = arith.addf %616, %618 : vector<8x128xf32>
    %c0_226 = arith.constant 0 : index
    %c0_227 = arith.constant 0 : index
    %620 = vector.load %arg10[%c0_226, %c0_227] : memref<8x128xf32, #tpu.memory_space<vmem>>, vector<8x128xf32>
    tpu.vector_store %arg10[%c0_226, %c0_227], %619 {strides = array<i32>} : memref<8x128xf32, #tpu.memory_space<vmem>>, vector<8x128xf32>,
    return
  }
}

</mosaic_0001>

<bundles_post_ra>
// kernel: drqn_forward.1
= control target key start
LH: loop header
LB: loop body
LE: loop exit
PB: predicated region body
PF: predicated region fallthrough
CT: control target
= control target key end

     0   :  { %s5374_s0 = inlined_call_operand.vmem [shape: f32[64,4], index: 0, kind: input, shape index: {}]   ;;  %s5375_s1 = inlined_call_operand.vmem [shape: bf16[4,512], index: 1, kind: input, shape index: {}]   ;;  %s5376_s2 = inlined_call_operand.vmem [shape: bf16[128,512], index: 2, kind: input, shape index: {}]   ;;  %s5377_s3 = inlined_call_operand.vmem [shape: f32[1,512], index: 3, kind: input, shape index: {}]   ;;  %s5378_s4 = inlined_call_operand.vmem [shape: bf16[256,512], index: 4, kind: input, shape index: {}]   ;;  %s5379_s5 = inlined_call_operand.vmem [shape: f32[1,512], index: 5, kind: input, shape index: {}]   ;;  %s5380_s6 = inlined_call_operand.vmem [shape: bf16[128,128], index: 6, kind: input, shape index: {}]   ;;  %s5381_s7 = inlined_call_operand.vmem [shape: f32[1,128], index: 7, kind: input, shape index: {}]   ;;  %s5382_s8 = inlined_call_operand.vmem [shape: f32[2,8,128], index: 8, kind: input, shape index: {}]   ;;  %s5383_s9 = inlined_call_operand.vmem [shape: f32[2,8,128], index: 9, kind: input, shape index: {}]   ;;  %s5384_s10 = inlined_call_operand.vmem [shape: f32[8,128], index: 10, kind: output, shape index: {0}]   ;;  %s5385_s11 = inlined_call_operand.vmem [shape: f32[2,8,128], index: 11, kind: output, shape index: {1}]   ;;  %s5386_s12 = inlined_call_operand.vmem [shape: f32[2,8,128], index: 12, kind: output, shape index: {2}]  }
   0x1   :  { %v52_v0 = vld [vmem:[%s5378_s4] sm:$0xf]  ;;  %v54_v1 = vld [vmem:[%s5378_s4 + $0x10] sm:$0xf]  ;;  %v56_v2 = vld [vmem:[%s5378_s4 + $0x4] sm:$0xf] }
   0x2   :  { %53 = vst [vmem:[#allocation2] sm:$0xf] %v52_v0  ;;  %55 = vst [vmem:[#allocation2 + $0x4] sm:$0xf] %v54_v1  ;;  %v58_v3 = vld [vmem:[%s5378_s4 + $0x14] sm:$0xf] }
   0x3   :  { %57 = vst [vmem:[#allocation2 + $0x8] sm:$0xf] %v56_v2  ;;  %v60_v4 = vld [vmem:[%s5378_s4 + $0x8] sm:$0xf]  ;;  %v62_v5 = vld [vmem:[%s5378_s4 + $0x18] sm:$0xf] }
   0x4   :  { %59 = vst [vmem:[#allocation2 + $0xc] sm:$0xf] %v58_v3  ;;  %61 = vst [vmem:[#allocation2 + $0x10] sm:$0xf] %v60_v4  ;;  %v64_v6 = vld [vmem:[%s5378_s4 + $0xc] sm:$0xf] }
   0x5   :  { %63 = vst [vmem:[#allocation2 + $0x14] sm:$0xf] %v62_v5  ;;  %v66_v7 = vld [vmem:[%s5378_s4 + $0x1c] sm:$0xff]   ;;  %v70_v8 = vld [vmem:[%s5378_s4 + $0x30] sm:$0xf] }
   0x6   :  { %65 = vst [vmem:[#allocation2 + $0x18] sm:$0xf] %v64_v6  ;;  %67 = vst [vmem:[#allocation2 + $0x1c] sm:$0xff] %v66_v7   ;;  %v72_v9 = vld [vmem:[%s5378_s4 + $0x24] sm:$0xf]  ;;  %v82_v14 = vld [vmem:[%s5378_s4 + $0x3c] sm:$0xff]  }
   0x7   :  { %71 = vst [vmem:[#allocation2 + $0x24] sm:$0xf] %v70_v8  ;;  %v74_v10 = vld [vmem:[%s5378_s4 + $0x34] sm:$0xf]  ;;  %v76_v11 = vld [vmem:[%s5378_s4 + $0x28] sm:$0xf] }
   0x8   :  { %73 = vst [vmem:[#allocation2 + $0x28] sm:$0xf] %v72_v9  ;;  %75 = vst [vmem:[#allocation2 + $0x2c] sm:$0xf] %v74_v10  ;;  %v78_v12 = vld [vmem:[%s5378_s4 + $0x38] sm:$0xf] }
   0x9   :  { %77 = vst [vmem:[#allocation2 + $0x30] sm:$0xf] %v76_v11  ;;  %v80_v13 = vld [vmem:[%s5378_s4 + $0x2c] sm:$0xf]  ;;  %79 = vst [vmem:[#allocation2 + $0x34] sm:$0xf] %v78_v12 }
   0xa   :  { %81 = vst [vmem:[#allocation2 + $0x38] sm:$0xf] %v80_v13  ;;  %83 = vst [vmem:[#allocation2 + $0x3c] sm:$0xff] %v82_v14   ;;  %v86_v15 = vld [vmem:[%s5378_s4 + $0x50] sm:$0xf]  ;;  %v98_v21 = vld [vmem:[%s5378_s4 + $0x5c] sm:$0xff]  }
   0xb   :  { %v88_v16 = vld [vmem:[%s5378_s4 + $0x44] sm:$0xf]  ;;  %v90_v17 = vld [vmem:[%s5378_s4 + $0x54] sm:$0xf]  ;;  %87 = vst [vmem:[#allocation2 + $0x44] sm:$0xf] %v86_v15 }
   0xc   :  { %89 = vst [vmem:[#allocation2 + $0x48] sm:$0xf] %v88_v16  ;;  %91 = vst [vmem:[#allocation2 + $0x4c] sm:$0xf] %v90_v17  ;;  %v92_v18 = vld [vmem:[%s5378_s4 + $0x48] sm:$0xf] }
   0xd   :  { %v94_v19 = vld [vmem:[%s5378_s4 + $0x58] sm:$0xf]  ;;  %v96_v20 = vld [vmem:[%s5378_s4 + $0x4c] sm:$0xf]  ;;  %93 = vst [vmem:[#allocation2 + $0x50] sm:$0xf] %v92_v18 }
   0xe   :  { %95 = vst [vmem:[#allocation2 + $0x54] sm:$0xf] %v94_v19  ;;  %97 = vst [vmem:[#allocation2 + $0x58] sm:$0xf] %v96_v20  ;;  %v102_v22 = vld [vmem:[%s5378_s4 + $0x70] sm:$0xf] }
   0xf   :  { %v104_v23 = vld [vmem:[%s5378_s4 + $0x64] sm:$0xf]  ;;  %99 = vst [vmem:[#allocation2 + $0x5c] sm:$0xff] %v98_v21   ;;  %103 = vst [vmem:[#allocation2 + $0x64] sm:$0xf] %v102_v22  ;;  %v114_v28 = vld [vmem:[%s5378_s4 + $0x7c] sm:$0xff]  }
  0x10   :  { %105 = vst [vmem:[#allocation2 + $0x68] sm:$0xf] %v104_v23  ;;  %v106_v24 = vld [vmem:[%s5378_s4 + $0x74] sm:$0xf]  ;;  %v108_v25 = vld [vmem:[%s5378_s4 + $0x68] sm:$0xf] }
  0x11   :  { %v110_v26 = vld [vmem:[%s5378_s4 + $0x78] sm:$0xf]  ;;  %107 = vst [vmem:[#allocation2 + $0x6c] sm:$0xf] %v106_v24  ;;  %109 = vst [vmem:[#allocation2 + $0x70] sm:$0xf] %v108_v25 }
  0x12   :  { %111 = vst [vmem:[#allocation2 + $0x74] sm:$0xf] %v110_v26  ;;  %v112_v27 = vld [vmem:[%s5378_s4 + $0x6c] sm:$0xf]  ;;  %v118_v29 = vld [vmem:[%s5378_s4 + $0x90] sm:$0xf] }
  0x13   :  { %113 = vst [vmem:[#allocation2 + $0x78] sm:$0xf] %v112_v27  ;;  %115 = vst [vmem:[#allocation2 + $0x7c] sm:$0xff] %v114_v28   ;;  %v120_v30 = vld [vmem:[%s5378_s4 + $0x84] sm:$0xf]  ;;  %v130_v35 = vld [vmem:[%s5378_s4 + $0x9c] sm:$0xff]  }
  0x14   :  { %119 = vst [vmem:[#allocation2 + $0x84] sm:$0xf] %v118_v29  ;;  %v122_v31 = vld [vmem:[%s5378_s4 + $0x94] sm:$0xf]  ;;  %v124_v32 = vld [vmem:[%s5378_s4 + $0x88] sm:$0xf] }
  0x15   :  { %121 = vst [vmem:[#allocation2 + $0x88] sm:$0xf] %v120_v30  ;;  %123 = vst [vmem:[#allocation2 + $0x8c] sm:$0xf] %v122_v31  ;;  %v126_v33 = vld [vmem:[%s5378_s4 + $0x98] sm:$0xf] }
  0x16   :  { %125 = vst [vmem:[#allocation2 + $0x90] sm:$0xf] %v124_v32  ;;  %v128_v34 = vld [vmem:[%s5378_s4 + $0x8c] sm:$0xf]  ;;  %127 = vst [vmem:[#allocation2 + $0x94] sm:$0xf] %v126_v33 }
  0x17   :  { %129 = vst [vmem:[#allocation2 + $0x98] sm:$0xf] %v128_v34  ;;  %131 = vst [vmem:[#allocation2 + $0x9c] sm:$0xff] %v130_v35   ;;  %v134_v36 = vld [vmem:[%s5378_s4 + $0xb0] sm:$0xf]  ;;  %v146_v42 = vld [vmem:[%s5378_s4 + $0xbc] sm:$0xff]  }
  0x18   :  { %v136_v37 = vld [vmem:[%s5378_s4 + $0xa4] sm:$0xf]  ;;  %v138_v38 = vld [vmem:[%s5378_s4 + $0xb4] sm:$0xf]  ;;  %135 = vst [vmem:[#allocation2 + $0xa4] sm:$0xf] %v134_v36 }
  0x19   :  { %137 = vst [vmem:[#allocation2 + $0xa8] sm:$0xf] %v136_v37  ;;  %139 = vst [vmem:[#allocation2 + $0xac] sm:$0xf] %v138_v38  ;;  %v140_v39 = vld [vmem:[%s5378_s4 + $0xa8] sm:$0xf] }
  0x1a   :  { %v142_v40 = vld [vmem:[%s5378_s4 + $0xb8] sm:$0xf]  ;;  %v144_v41 = vld [vmem:[%s5378_s4 + $0xac] sm:$0xf]  ;;  %141 = vst [vmem:[#allocation2 + $0xb0] sm:$0xf] %v140_v39 }
  0x1b   :  { %143 = vst [vmem:[#allocation2 + $0xb4] sm:$0xf] %v142_v40  ;;  %145 = vst [vmem:[#allocation2 + $0xb8] sm:$0xf] %v144_v41  ;;  %v150_v43 = vld [vmem:[%s5378_s4 + $0xd0] sm:$0xf] }
  0x1c   :  { %v152_v44 = vld [vmem:[%s5378_s4 + $0xc4] sm:$0xf]  ;;  %147 = vst [vmem:[#allocation2 + $0xbc] sm:$0xff] %v146_v42   ;;  %151 = vst [vmem:[#allocation2 + $0xc4] sm:$0xf] %v150_v43  ;;  %v162_v49 = vld [vmem:[%s5378_s4 + $0xdc] sm:$0xff]  }
  0x1d   :  { %153 = vst [vmem:[#allocation2 + $0xc8] sm:$0xf] %v152_v44  ;;  %v154_v45 = vld [vmem:[%s5378_s4 + $0xd4] sm:$0xf]  ;;  %v156_v46 = vld [vmem:[%s5378_s4 + $0xc8] sm:$0xf] }
  0x1e   :  { %v158_v47 = vld [vmem:[%s5378_s4 + $0xd8] sm:$0xf]  ;;  %155 = vst [vmem:[#allocation2 + $0xcc] sm:$0xf] %v154_v45  ;;  %157 = vst [vmem:[#allocation2 + $0xd0] sm:$0xf] %v156_v46 }
  0x1f   :  { %159 = vst [vmem:[#allocation2 + $0xd4] sm:$0xf] %v158_v47  ;;  %v160_v48 = vld [vmem:[%s5378_s4 + $0xcc] sm:$0xf]  ;;  %v166_v50 = vld [vmem:[%s5378_s4 + $0xf0] sm:$0xf] }
  0x20   :  { %161 = vst [vmem:[#allocation2 + $0xd8] sm:$0xf] %v160_v48  ;;  %163 = vst [vmem:[#allocation2 + $0xdc] sm:$0xff] %v162_v49   ;;  %v168_v51 = vld [vmem:[%s5378_s4 + $0xe4] sm:$0xf]  ;;  %v178_v56 = vld [vmem:[%s5378_s4 + $0xfc] sm:$0xff]  }
  0x21   :  { %167 = vst [vmem:[#allocation2 + $0xe4] sm:$0xf] %v166_v50  ;;  %v170_v52 = vld [vmem:[%s5378_s4 + $0xf4] sm:$0xf]  ;;  %v172_v53 = vld [vmem:[%s5378_s4 + $0xe8] sm:$0xf] }
  0x22   :  { %169 = vst [vmem:[#allocation2 + $0xe8] sm:$0xf] %v168_v51  ;;  %171 = vst [vmem:[#allocation2 + $0xec] sm:$0xf] %v170_v52  ;;  %v174_v54 = vld [vmem:[%s5378_s4 + $0xf8] sm:$0xf] }
  0x23   :  { %173 = vst [vmem:[#allocation2 + $0xf0] sm:$0xf] %v172_v53  ;;  %v176_v55 = vld [vmem:[%s5378_s4 + $0xec] sm:$0xf]  ;;  %175 = vst [vmem:[#allocation2 + $0xf4] sm:$0xf] %v174_v54 }
  0x24   :  { %177 = vst [vmem:[#allocation2 + $0xf8] sm:$0xf] %v176_v55  ;;  %179 = vst [vmem:[#allocation2 + $0xfc] sm:$0xff] %v178_v56   ;;  %v182_v57 = vld [vmem:[%s5378_s4 + $0x110] sm:$0xf]  ;;  %v194_v63 = vld [vmem:[%s5378_s4 + $0x11c] sm:$0xff]  }
  0x25   :  { %v184_v58 = vld [vmem:[%s5378_s4 + $0x104] sm:$0xf]  ;;  %v186_v59 = vld [vmem:[%s5378_s4 + $0x114] sm:$0xf]  ;;  %183 = vst [vmem:[#allocation2 + $0x104] sm:$0xf] %v182_v57 }
  0x26   :  { %185 = vst [vmem:[#allocation2 + $0x108] sm:$0xf] %v184_v58  ;;  %187 = vst [vmem:[#allocation2 + $0x10c] sm:$0xf] %v186_v59  ;;  %v188_v60 = vld [vmem:[%s5378_s4 + $0x108] sm:$0xf] }
  0x27   :  { %v190_v61 = vld [vmem:[%s5378_s4 + $0x118] sm:$0xf]  ;;  %v192_v62 = vld [vmem:[%s5378_s4 + $0x10c] sm:$0xf]  ;;  %189 = vst [vmem:[#allocation2 + $0x110] sm:$0xf] %v188_v60 }
  0x28   :  { %191 = vst [vmem:[#allocation2 + $0x114] sm:$0xf] %v190_v61  ;;  %193 = vst [vmem:[#allocation2 + $0x118] sm:$0xf] %v192_v62  ;;  %v198_v0 = vld [vmem:[%s5378_s4 + $0x130] sm:$0xf] }
  0x29   :  { %v200_v1 = vld [vmem:[%s5378_s4 + $0x124] sm:$0xf]  ;;  %195 = vst [vmem:[#allocation2 + $0x11c] sm:$0xff] %v194_v63   ;;  %199 = vst [vmem:[#allocation2 + $0x124] sm:$0xf] %v198_v0  ;;  %v210_v6 = vld [vmem:[%s5378_s4 + $0x13c] sm:$0xff]  }
  0x2a   :  { %201 = vst [vmem:[#allocation2 + $0x128] sm:$0xf] %v200_v1  ;;  %v202_v2 = vld [vmem:[%s5378_s4 + $0x134] sm:$0xf]  ;;  %v204_v3 = vld [vmem:[%s5378_s4 + $0x128] sm:$0xf] }
  0x2b   :  { %v206_v4 = vld [vmem:[%s5378_s4 + $0x138] sm:$0xf]  ;;  %203 = vst [vmem:[#allocation2 + $0x12c] sm:$0xf] %v202_v2  ;;  %205 = vst [vmem:[#allocation2 + $0x130] sm:$0xf] %v204_v3 }
  0x2c   :  { %207 = vst [vmem:[#allocation2 + $0x134] sm:$0xf] %v206_v4  ;;  %v208_v5 = vld [vmem:[%s5378_s4 + $0x12c] sm:$0xf]  ;;  %v214_v7 = vld [vmem:[%s5378_s4 + $0x150] sm:$0xf] }
  0x2d   :  { %209 = vst [vmem:[#allocation2 + $0x138] sm:$0xf] %v208_v5  ;;  %211 = vst [vmem:[#allocation2 + $0x13c] sm:$0xff] %v210_v6   ;;  %v216_v8 = vld [vmem:[%s5378_s4 + $0x144] sm:$0xf]  ;;  %v226_v13 = vld [vmem:[%s5378_s4 + $0x15c] sm:$0xff]  }
  0x2e   :  { %215 = vst [vmem:[#allocation2 + $0x144] sm:$0xf] %v214_v7  ;;  %v218_v9 = vld [vmem:[%s5378_s4 + $0x154] sm:$0xf]  ;;  %v220_v10 = vld [vmem:[%s5378_s4 + $0x148] sm:$0xf] }
  0x2f   :  { %217 = vst [vmem:[#allocation2 + $0x148] sm:$0xf] %v216_v8  ;;  %219 = vst [vmem:[#allocation2 + $0x14c] sm:$0xf] %v218_v9  ;;  %v222_v11 = vld [vmem:[%s5378_s4 + $0x158] sm:$0xf] }
  0x30   :  { %221 = vst [vmem:[#allocation2 + $0x150] sm:$0xf] %v220_v10  ;;  %v224_v12 = vld [vmem:[%s5378_s4 + $0x14c] sm:$0xf]  ;;  %223 = vst [vmem:[#allocation2 + $0x154] sm:$0xf] %v222_v11 }
  0x31   :  { %225 = vst [vmem:[#allocation2 + $0x158] sm:$0xf] %v224_v12  ;;  %227 = vst [vmem:[#allocation2 + $0x15c] sm:$0xff] %v226_v13   ;;  %v230_v14 = vld [vmem:[%s5378_s4 + $0x170] sm:$0xf]  ;;  %v242_v20 = vld [vmem:[%s5378_s4 + $0x17c] sm:$0xff]  }
  0x32   :  { %v232_v15 = vld [vmem:[%s5378_s4 + $0x164] sm:$0xf]  ;;  %v234_v16 = vld [vmem:[%s5378_s4 + $0x174] sm:$0xf]  ;;  %231 = vst [vmem:[#allocation2 + $0x164] sm:$0xf] %v230_v14 }
  0x33   :  { %233 = vst [vmem:[#allocation2 + $0x168] sm:$0xf] %v232_v15  ;;  %235 = vst [vmem:[#allocation2 + $0x16c] sm:$0xf] %v234_v16  ;;  %v236_v17 = vld [vmem:[%s5378_s4 + $0x168] sm:$0xf] }
  0x34   :  { %v238_v18 = vld [vmem:[%s5378_s4 + $0x178] sm:$0xf]  ;;  %v240_v19 = vld [vmem:[%s5378_s4 + $0x16c] sm:$0xf]  ;;  %237 = vst [vmem:[#allocation2 + $0x170] sm:$0xf] %v236_v17 }
  0x35   :  { %239 = vst [vmem:[#allocation2 + $0x174] sm:$0xf] %v238_v18  ;;  %241 = vst [vmem:[#allocation2 + $0x178] sm:$0xf] %v240_v19  ;;  %v246_v21 = vld [vmem:[%s5378_s4 + $0x190] sm:$0xf] }
  0x36   :  { %v248_v22 = vld [vmem:[%s5378_s4 + $0x184] sm:$0xf]  ;;  %243 = vst [vmem:[#allocation2 + $0x17c] sm:$0xff] %v242_v20   ;;  %247 = vst [vmem:[#allocation2 + $0x184] sm:$0xf] %v246_v21  ;;  %v258_v27 = vld [vmem:[%s5378_s4 + $0x19c] sm:$0xff]  }
  0x37   :  { %249 = vst [vmem:[#allocation2 + $0x188] sm:$0xf] %v248_v22  ;;  %v250_v23 = vld [vmem:[%s5378_s4 + $0x194] sm:$0xf]  ;;  %v252_v24 = vld [vmem:[%s5378_s4 + $0x188] sm:$0xf] }
  0x38   :  { %v254_v25 = vld [vmem:[%s5378_s4 + $0x198] sm:$0xf]  ;;  %251 = vst [vmem:[#allocation2 + $0x18c] sm:$0xf] %v250_v23  ;;  %253 = vst [vmem:[#allocation2 + $0x190] sm:$0xf] %v252_v24 }
  0x39   :  { %255 = vst [vmem:[#allocation2 + $0x194] sm:$0xf] %v254_v25  ;;  %v256_v26 = vld [vmem:[%s5378_s4 + $0x18c] sm:$0xf]  ;;  %v262_v28 = vld [vmem:[%s5378_s4 + $0x1b0] sm:$0xf] }
  0x3a   :  { %257 = vst [vmem:[#allocation2 + $0x198] sm:$0xf] %v256_v26  ;;  %259 = vst [vmem:[#allocation2 + $0x19c] sm:$0xff] %v258_v27   ;;  %v264_v29 = vld [vmem:[%s5378_s4 + $0x1a4] sm:$0xf]  ;;  %v274_v34 = vld [vmem:[%s5378_s4 + $0x1bc] sm:$0xff]  }
  0x3b   :  { %263 = vst [vmem:[#allocation2 + $0x1a4] sm:$0xf] %v262_v28  ;;  %v266_v30 = vld [vmem:[%s5378_s4 + $0x1b4] sm:$0xf]  ;;  %v268_v31 = vld [vmem:[%s5378_s4 + $0x1a8] sm:$0xf] }
  0x3c   :  { %265 = vst [vmem:[#allocation2 + $0x1a8] sm:$0xf] %v264_v29  ;;  %267 = vst [vmem:[#allocation2 + $0x1ac] sm:$0xf] %v266_v30  ;;  %v270_v32 = vld [vmem:[%s5378_s4 + $0x1b8] sm:$0xf] }
  0x3d   :  { %269 = vst [vmem:[#allocation2 + $0x1b0] sm:$0xf] %v268_v31  ;;  %v272_v33 = vld [vmem:[%s5378_s4 + $0x1ac] sm:$0xf]  ;;  %271 = vst [vmem:[#allocation2 + $0x1b4] sm:$0xf] %v270_v32 }
  0x3e   :  { %273 = vst [vmem:[#allocation2 + $0x1b8] sm:$0xf] %v272_v33  ;;  %275 = vst [vmem:[#allocation2 + $0x1bc] sm:$0xff] %v274_v34   ;;  %v278_v35 = vld [vmem:[%s5378_s4 + $0x1d0] sm:$0xf]  ;;  %v290_v41 = vld [vmem:[%s5378_s4 + $0x1dc] sm:$0xff]  }
  0x3f   :  { %v280_v36 = vld [vmem:[%s5378_s4 + $0x1c4] sm:$0xf]  ;;  %v282_v37 = vld [vmem:[%s5378_s4 + $0x1d4] sm:$0xf]  ;;  %279 = vst [vmem:[#allocation2 + $0x1c4] sm:$0xf] %v278_v35 }
  0x40   :  { %281 = vst [vmem:[#allocation2 + $0x1c8] sm:$0xf] %v280_v36  ;;  %283 = vst [vmem:[#allocation2 + $0x1cc] sm:$0xf] %v282_v37  ;;  %v284_v38 = vld [vmem:[%s5378_s4 + $0x1c8] sm:$0xf] }
  0x41   :  { %v286_v39 = vld [vmem:[%s5378_s4 + $0x1d8] sm:$0xf]  ;;  %v288_v40 = vld [vmem:[%s5378_s4 + $0x1cc] sm:$0xf]  ;;  %285 = vst [vmem:[#allocation2 + $0x1d0] sm:$0xf] %v284_v38 }
  0x42   :  { %287 = vst [vmem:[#allocation2 + $0x1d4] sm:$0xf] %v286_v39  ;;  %289 = vst [vmem:[#allocation2 + $0x1d8] sm:$0xf] %v288_v40  ;;  %v294_v42 = vld [vmem:[%s5378_s4 + $0x1f0] sm:$0xf] }
  0x43   :  { %v296_v43 = vld [vmem:[%s5378_s4 + $0x1e4] sm:$0xf]  ;;  %291 = vst [vmem:[#allocation2 + $0x1dc] sm:$0xff] %v290_v41   ;;  %295 = vst [vmem:[#allocation2 + $0x1e4] sm:$0xf] %v294_v42 }
  0x44   :  { %297 = vst [vmem:[#allocation2 + $0x1e8] sm:$0xf] %v296_v43  ;;  %v298_v44 = vld [vmem:[%s5378_s4 + $0x1f4] sm:$0xf]  ;;  %v300_v45 = vld [vmem:[%s5378_s4 + $0x1e8] sm:$0xf] }
  0x45   :  { %v302_v46 = vld [vmem:[%s5378_s4 + $0x1f8] sm:$0xf]  ;;  %299 = vst [vmem:[#allocation2 + $0x1ec] sm:$0xf] %v298_v44  ;;  %301 = vst [vmem:[#allocation2 + $0x1f0] sm:$0xf] %v300_v45 }
  0x46   :  { %303 = vst [vmem:[#allocation2 + $0x1f4] sm:$0xf] %v302_v46  ;;  %v304_v47 = vld [vmem:[%s5378_s4 + $0x1ec] sm:$0xf]  ;;  %v306_v48 = vld [vmem:[%s5378_s4 + $0x1fc] sm:$0xf] }
  0x47   :  { %305 = vst [vmem:[#allocation2 + $0x1f8] sm:$0xf] %v304_v47  ;;  %307 = vst [vmem:[#allocation2 + $0x1fc] sm:$0xf] %v306_v48 }
  0x48   :  { %594 = vsyncadd [#allocation5], 8192  ;;  %v3826_v49 = vld [vmem:[%s5380_s6] sm:$0xff]  ;;  %v3831_v50 = vld [vmem:[%s5380_s6 + $0x8] sm:$0xff] }
  0x49   :  { %5626 = vst [vmem:[#allocation10_spill] sm:$0xff] %v3826_v49  ;;  %5627 = vst [vmem:[#allocation11_spill] sm:$0xff] %v3831_v50  ;;  %v3836_v51 = vld [vmem:[%s5380_s6 + $0x10] sm:$0xff]  ;;  %v3841_v52 = vld [vmem:[%s5380_s6 + $0x18] sm:$0xff] }
  0x4a   :  { %5628 = vst [vmem:[#allocation12_spill] sm:$0xff] %v3836_v51  ;;  %5629 = vst [vmem:[#allocation13_spill] sm:$0xff] %v3841_v52  ;;  %v3846_v53 = vld [vmem:[%s5380_s6 + $0x20] sm:$0xff]  ;;  %v3851_v54 = vld [vmem:[%s5380_s6 + $0x28] sm:$0xff] }
  0x4b   :  { %5630 = vst [vmem:[#allocation14_spill] sm:$0xff] %v3846_v53  ;;  %5631 = vst [vmem:[#allocation15_spill] sm:$0xff] %v3851_v54  ;;  %v3856_v55 = vld [vmem:[%s5380_s6 + $0x30] sm:$0xff]  ;;  %v3861_v56 = vld [vmem:[%s5380_s6 + $0x38] sm:$0xff] }
  0x4c   :  { %5632 = vst [vmem:[#allocation16_spill] sm:$0xff] %v3856_v55  ;;  %5633 = vst [vmem:[#allocation17_spill] sm:$0xff] %v3861_v56 }
  0x4d   :  { %651 = vsyncadd [#allocation5 + $0x1], 1024  ;;  %v664_v57 = vld [vmem:[%s5375_s1] sm:$0xff]  ;;  %v667_v58 = vlaneseq  ;;  %v3415_v59 = vmov 1983009808   ;;  %v3869_v61 = vld [vmem:[%s5382_s8 + $0x8] sm:$0xff] }
  0x4e   :  { %v690_v60 = vunpack.c.l.s4 %v3415_v59  ;;  %v5390_v63 = vmov 0   ;;  %v3878_v0 = vld [vmem:[%s5383_s9 + $0x8] sm:$0xff]  ;;  %v688_v2 = vcombine.high %v664_v57, %v664_v57  ;;  %v3883_v3 = vld [vmem:[%s5379_s5] sm:$0xf]  ;;  %vm718_vm0 = vcmask 1041408   ;;  %v654_v22 = vld [vmem:[%s5374_s0 + $0x10] sm:$0xff] }
  0x4f   :  { %v3871_v62 = vshrl.u32 %v667_v58, 7  ;;  %763 = vmatprep.mubr.bf16.mxu0 %v5390_v63  ;;  %836 = vmatprep.mubr.bf16.mxu1 %v5390_v63  ;;  %5635 = vst [vmem:[#allocation19_spill] sm:$0xff] %v3878_v0  ;;  %5636 = vst [vmem:[#allocation20_spill] sm:$0xff] %v3883_v3  ;;  %v652_v7 = vld [vmem:[%s5374_s0] sm:$0xff]  ;;  %v653_v8 = vld [vmem:[%s5374_s0 + $0x8] sm:$0xff]  ;;  %vm705_vm1 = vcmask 31744  }
  0x50   :  { %v691_v1 = vunpack.c.0.s8 %v690_v60  ;;  %v3895_v9 = vld [vmem:[%s5376_s2 + $0x4] ss:$16 sps:$4 sm:$0xff]   ;;  %v3900_v14 = vld [vmem:[%s5376_s2 + $0xc] ss:$16 sps:$4 sm:$0xff]   ;;  %v660_v15 = vpack.c.bf16 %v653_v8, %v652_v7  ;;  %v3905_v16 = vld [vmem:[%s5376_s2] ss:$16 sps:$4 sm:$0xff]  }
  0x51   :  { %5634 = vst [vmem:[#allocation18_spill] sm:$0xff] %v3871_v62  ;;  %5637 = vst [vmem:[#allocation21_spill] sm:$0xff] %v3895_v9  ;;  %v3910_v17 = vld [vmem:[%s5376_s2 + $0x8] ss:$16 sps:$4 sm:$0xff]   ;;  %v3917_v18 = vld [vmem:[%s5376_s2 + $0x24] ss:$16 sps:$4 sm:$0xff]  }
  0x52   :  { %v694_v4 = vsub.s32 %v691_v1, %v3871_v62  ;;  %5638 = vst [vmem:[#allocation22_spill] sm:$0xff] %v3900_v14  ;;  %v3922_v19 = vld [vmem:[%s5376_s2 + $0x2c] ss:$16 sps:$4 sm:$0xff]   ;;  %v3927_v20 = vld [vmem:[%s5376_s2 + $0x20] ss:$16 sps:$4 sm:$0xff]   ;;  %v5388_v7 = vsub.s32 3, %v3871_v62 }
  0x53   :  { %v3932_v21 = vld [vmem:[%s5376_s2 + $0x28] ss:$16 sps:$4 sm:$0xff]   ;;  %v3947_v24 = vld [vmem:[%s5376_s2 + $0x44] ss:$16 sps:$4 sm:$0xff]   ;;  %v3954_v25 = vld [vmem:[%s5376_s2 + $0x4c] ss:$16 sps:$4 sm:$0xff]  }
  0x54   :  { %v695_v5 = vrot.slane %v664_v57, %v694_v4  ;;  %v702_v6 = vrot.slane %v688_v2, %v694_v4  ;;  %v655_v23 = vld [vmem:[%s5374_s0 + $0x18] sm:$0xff]  ;;  %v3963_v27 = vld [vmem:[%s5376_s2 + $0x40] ss:$16 sps:$4 sm:$0xff]   ;;  %v3975_v29 = vld [vmem:[%s5376_s2 + $0x64] ss:$16 sps:$4 sm:$0xff]   ;;  %v5389_v8 = vsub.s32 0, %v3871_v62 }
  0x55   :  { %v661_v26 = vpack.c.bf16 %v655_v23, %v654_v22  ;;  %v3968_v28 = vld [vmem:[%s5376_s2 + $0x48] ss:$16 sps:$4 sm:$0xff]   ;;  %v3980_v30 = vld [vmem:[%s5376_s2 + $0x6c] ss:$16 sps:$4 sm:$0xff]   ;;  %v3985_v31 = vld [vmem:[%s5376_s2 + $0x60] ss:$16 sps:$4 sm:$0xff]  }
  0x56   :  { %v703_v10 = vcombine.high %v695_v5, %v695_v5  ;;  %v704_v11 = vcombine.high %v702_v6, %v702_v6  ;;  %v720_v12 = vsel %vm718_vm0, %v695_v5, 0  ;;  %v726_v13 = vsel %vm718_vm0, %v702_v6, 0  ;;  %v3992_v32 = vld [vmem:[%s5376_s2 + $0x68] ss:$16 sps:$4 sm:$0xff]   ;;  %v656_v33 = vld [vmem:[%s5374_s0 + $0x20] sm:$0xff]  ;;  %v658_v44 = vld [vmem:[%s5374_s0 + $0x30] sm:$0xff] }
  0x57   :  { %v657_v34 = vld [vmem:[%s5374_s0 + $0x28] sm:$0xff]  ;;  %v4007_v35 = vld [vmem:[%s5376_s2 + $0x84] ss:$16 sps:$4 sm:$0xff]   ;;  %v4021_v38 = vld [vmem:[%s5376_s2 + $0x80] ss:$16 sps:$4 sm:$0xff]   ;;  %v5387_v6 = vsub.s32 2, %v3871_v62 }
  0x58   :  { %2992 = vmatprep.subr.msk.bf16.mxu0 %vm718_vm0, %v703_v10  ;;  %2997 = vmatprep.subr.msk.bf16.mxu1 %vm718_vm0, %v704_v11  ;;  %v4012_v36 = vld [vmem:[%s5376_s2 + $0x8c] ss:$16 sps:$4 sm:$0xff]   ;;  %v662_v37 = vpack.c.bf16 %v657_v34, %v656_v33  ;;  %v4026_v39 = vld [vmem:[%s5376_s2 + $0x88] ss:$16 sps:$4 sm:$0xff]   ;;  %v4033_v40 = vld [vmem:[%s5376_s2 + $0xa4] ss:$16 sps:$4 sm:$0xff]  }
  0x59   :  { %732 = vmatpush1.bf16.msra.mxu0 %v720_v12  ;;  %805 = vmatpush1.bf16.msra.mxu1 %v726_v13  ;;  %v4038_v41 = vld [vmem:[%s5376_s2 + $0xac] ss:$16 sps:$4 sm:$0xff]   ;;  %v4045_v42 = vld [vmem:[%s5376_s2 + $0xa0] ss:$16 sps:$4 sm:$0xff]   ;;  %v4052_v43 = vld [vmem:[%s5376_s2 + $0xa8] ss:$16 sps:$4 sm:$0xff]  }
  0x5a   :  { %1113 = vmatprep.subr.bf16.mxu0 %v3895_v9  ;;  %1154 = vmatprep.subr.bf16.mxu1 %v3900_v14  ;;  %v659_v45 = vld [vmem:[%s5374_s0 + $0x38] sm:$0xff]  ;;  %v4065_v46 = vld [vmem:[%s5376_s2 + $0xc4] ss:$16 sps:$4 sm:$0xff]   ;;  %v4079_v57 = vld [vmem:[%s5376_s2 + $0xc0] ss:$16 sps:$4 sm:$0xff]   ;;  %v5392_v11 = vsub.s32 1, %v3871_v62 }
  0x5b   :  { %v4070_v47 = vld [vmem:[%s5376_s2 + $0xcc] ss:$16 sps:$4 sm:$0xff]   ;;  %v663_v48 = vpack.c.bf16 %v659_v45, %v658_v44  ;;  %v4084_v58 = vld [vmem:[%s5376_s2 + $0xc8] ss:$16 sps:$4 sm:$0xff]   ;;  %v4091_v59 = vld [vmem:[%s5376_s2 + $0xe4] ss:$16 sps:$4 sm:$0xff]  }
  0x5c   :  { %2993 = vmatmul.mubr.msk.bf16.vlgmr.msra.gmra.mrb[0].mxu0 %vm705_vm1, %v660_v15  ;;  %2998 = vmatmul.mubr.msk.bf16.vlgmr.msra.gmra.mrb[0].mxu1 %vm705_vm1, %v660_v15  ;;  %v4096_v60 = vld [vmem:[%s5376_s2 + $0xec] ss:$16 sps:$4 sm:$0xff]   ;;  %v4105_v1 = vld [vmem:[%s5376_s2 + $0xe0] ss:$16 sps:$4 sm:$0xff]   ;;  %v4110_v2 = vld [vmem:[%s5376_s2 + $0xe8] ss:$16 sps:$4 sm:$0xff]  }
  0x5d   :  { %1114 = vmatpush1.bf16.msra.mxu0 %v3905_v16  ;;  %1155 = vmatpush1.bf16.msra.mxu1 %v3910_v17  ;;  %v909_v4 = vld [vmem:[%s5382_s8] sm:$0xff] }
  0x5e   :  { %1115 = vmatprep.subr.bf16.mxu0 %v3917_v18  ;;  %1156 = vmatprep.subr.bf16.mxu1 %v3922_v19  ;;  %v952_v5 = vpack.c.bf16 %v909_v4, %v909_v4  ;;  %v665_v10 = vld [vmem:[%s5377_s3] sm:$0xf] }
  0x5f   :  { %773 = vmatprep.mubr.bf16.mxu0 %v5390_v63  ;;  %846 = vmatprep.mubr.bf16.mxu1 %v5390_v63  ;;  %v4130_v12 = vrot.slane %v665_v10, %v5387_v6  ;;  %v4138_v22 = vrot.slane %v665_v10, %v5388_v7  ;;  %v670_v23 = vrot.slane %v665_v10, %v5389_v8 }
  0x60   :  { %v674_v34 = vrot.slane %v665_v10, %v5392_v11 }
  0x61   :  { %1116 = vmatpush1.bf16.msra.mxu0 %v3927_v20  ;;  %1157 = vmatpush1.bf16.msra.mxu1 %v3932_v21 }
  0x62   :  { %1117 = vmatprep.subr.bf16.mxu0 %v3947_v24  ;;  %1158 = vmatprep.subr.bf16.mxu1 %v3954_v25 }
  0x64   :  { %2994 = vmatmul.mubr.msk.bf16.gmra.mrb[4].mxu0 %vm705_vm1, %v661_v26  ;;  %2999 = vmatmul.mubr.msk.bf16.gmra.mrb[4].mxu1 %vm705_vm1, %v661_v26 }
  0x65   :  { %1118 = vmatpush1.bf16.msra.mxu0 %v3963_v27  ;;  %1159 = vmatpush1.bf16.msra.mxu1 %v3968_v28 }
  0x66   :  { %1119 = vmatprep.subr.bf16.mxu0 %v3975_v29  ;;  %1160 = vmatprep.subr.bf16.mxu1 %v3980_v30 }
  0x67   :  { %783 = vmatprep.mubr.bf16.mxu0 %v5390_v63  ;;  %856 = vmatprep.mubr.bf16.mxu1 %v5390_v63 }
  0x69   :  { %1120 = vmatpush1.bf16.msra.mxu0 %v3985_v31  ;;  %1161 = vmatpush1.bf16.msra.mxu1 %v3992_v32 }
  0x6a   :  { %1121 = vmatprep.subr.bf16.mxu0 %v4007_v35  ;;  %1162 = vmatprep.subr.bf16.mxu1 %v4012_v36 }
  0x6c   :  { %2995 = vmatmul.mubr.msk.bf16.gmra.mrb[8].mxu0 %vm705_vm1, %v662_v37  ;;  %3000 = vmatmul.mubr.msk.bf16.gmra.mrb[8].mxu1 %vm705_vm1, %v662_v37 }
  0x6d   :  { %1122 = vmatpush1.bf16.msra.mxu0 %v4021_v38  ;;  %1163 = vmatpush1.bf16.msra.mxu1 %v4026_v39 }
  0x6e   :  { %1123 = vmatprep.subr.bf16.mxu0 %v4033_v40  ;;  %1164 = vmatprep.subr.bf16.mxu1 %v4038_v41 }
  0x6f   :  { %793 = vmatprep.mubr.bf16.mxu0 %v5390_v63  ;;  %866 = vmatprep.mubr.bf16.mxu1 %v5390_v63 }
  0x71   :  { %1124 = vmatpush1.bf16.msra.mxu0 %v4045_v42  ;;  %1165 = vmatpush1.bf16.msra.mxu1 %v4052_v43 }
  0x72   :  { %1125 = vmatprep.subr.bf16.mxu0 %v4065_v46  ;;  %1166 = vmatprep.subr.bf16.mxu1 %v4070_v47 }
  0x74   :  { %2996 = vmatmul.mubr.msk.bf16.gmra.mrb[12].mxu0 %vm705_vm1, %v663_v48  ;;  %3001 = vmatmul.mubr.msk.bf16.gmra.mrb[12].mxu1 %vm705_vm1, %v663_v48 }
  0x75   :  { %1126 = vmatpush1.bf16.msra.mxu0 %v4079_v57  ;;  %1167 = vmatpush1.bf16.msra.mxu1 %v4084_v58 }
  0x76   :  { %1127 = vmatprep.subr.bf16.mxu0 %v4091_v59  ;;  %1168 = vmatprep.subr.bf16.mxu1 %v4096_v60 }
  0x77   :  { %1145 = vmatprep.mubr.bf16.mxu0 %v5390_v63  ;;  %1186 = vmatprep.mubr.bf16.mxu1 %v5390_v63 }
  0x79   :  { %1128 = vmatpush1.bf16.msra.mxu0 %v4105_v1  ;;  %1169 = vmatpush1.bf16.msra.mxu1 %v4110_v2 }
  0x7c   :  { %1146 = vmatmul.mubr.bf16.vlgmr.msra.gmra.mrb[16].mxu0 %v952_v5  ;;  %1187 = vmatmul.mubr.bf16.vlgmr.msra.gmra.mrb[16].mxu1 %v952_v5 }
 0x12f   :  { %v4132_v13 = vpop.f32.mrb[0].mxu0  ;;  %v4134_v15 = vpop.f32.mrb[0].mxu1 }
 0x130   :  { %v767_v26 = vpop.f32.mrb[1].mxu0  ;;  %v840_v33 = vpop.f32.mrb[1].mxu1 }
 0x131   :  { %v769_v37 = vpop.f32.mrb[2].mxu0  ;;  %v842_v44 = vpop.f32.mrb[2].mxu1 }
 0x132   :  { %v4144_v45 = vadd.f32 %v769_v37, %v670_v23  ;;  %v771_v48 = vpop.f32.mrb[3].mxu0  ;;  %v4147_v4 = vadd.f32 %v842_v44, %v4130_v12  ;;  %v844_v5 = vpop.f32.mrb[3].mxu1 }
 0x133   :  { %v4149_v6 = vadd.f32 %v771_v48, %v674_v34  ;;  %v4152_v7 = vadd.f32 %v844_v5, %v4138_v22 }
 0x134   :  { %5639 = vst [vmem:[#allocation23_spill] sm:$0xff] %v4144_v45  ;;  %5640 = vst [vmem:[#allocation24_spill] sm:$0xff] %v4147_v4 }
 0x135   :  { %5641 = vst [vmem:[#allocation25_spill] sm:$0xff] %v4149_v6  ;;  %5642 = vst [vmem:[#allocation26_spill] sm:$0xff] %v4152_v7 }
 0x137   :  { %v775_v8 = vpop.f32.mrb[4].mxu0  ;;  %v848_v63 = vpop.f32.mrb[4].mxu1 }
 0x138   :  { %v4154_v56 = vadd.f32 %v775_v8, %v670_v23  ;;  %v777_v55 = vpop.f32.mrb[5].mxu0  ;;  %v4157_v10 = vadd.f32 %v848_v63, %v4130_v12  ;;  %v850_v37 = vpop.f32.mrb[5].mxu1 }
 0x139   :  { %v4159_v11 = vadd.f32 %v777_v55, %v674_v34  ;;  %v779_v54 = vpop.f32.mrb[6].mxu0  ;;  %v4162_v44 = vadd.f32 %v850_v37, %v4138_v22  ;;  %v852_v48 = vpop.f32.mrb[6].mxu1 }
 0x13a   :  { %5643 = vst [vmem:[#allocation27_spill] sm:$0xff] %v4154_v56  ;;  %5644 = vst [vmem:[#allocation28_spill] sm:$0xff] %v4157_v10  ;;  %v4164_v53 = vadd.f32 %v779_v54, %v670_v23  ;;  %v781_v5 = vpop.f32.mrb[7].mxu0  ;;  %v4167_v52 = vadd.f32 %v852_v48, %v4130_v12  ;;  %v854_v8 = vpop.f32.mrb[7].mxu1 }
 0x13b   :  { %5645 = vst [vmem:[#allocation29_spill] sm:$0xff] %v4159_v11  ;;  %5646 = vst [vmem:[#allocation30_spill] sm:$0xff] %v4162_v44  ;;  %v4169_v51 = vadd.f32 %v781_v5, %v674_v34  ;;  %v4172_v63 = vadd.f32 %v854_v8, %v4138_v22 }
 0x13c   :  { %5647 = vst [vmem:[#allocation31_spill] sm:$0xff] %v4164_v53  ;;  %5648 = vst [vmem:[#allocation32_spill] sm:$0xff] %v4167_v52 }
 0x13d   :  { %5649 = vst [vmem:[#allocation33_spill] sm:$0xff] %v4169_v51  ;;  %5650 = vst [vmem:[#allocation34_spill] sm:$0xff] %v4172_v63 }
 0x13f   :  { %v785_v50 = vpop.f32.mrb[8].mxu0  ;;  %v858_v55 = vpop.f32.mrb[8].mxu1 }
 0x140   :  { %v4174_v49 = vadd.f32 %v785_v50, %v670_v23  ;;  %v787_v10 = vpop.f32.mrb[9].mxu0  ;;  %v4177_v37 = vadd.f32 %v858_v55, %v4130_v12  ;;  %v860_v54 = vpop.f32.mrb[9].mxu1 }
 0x141   :  { %v4179_v53 = vadd.f32 %v787_v10, %v674_v34  ;;  %v789_v44 = vpop.f32.mrb[10].mxu0  ;;  %v4182_v48 = vadd.f32 %v860_v54, %v4138_v22  ;;  %v862_v5 = vpop.f32.mrb[10].mxu1 }
 0x142   :  { %5651 = vst [vmem:[#allocation35_spill] sm:$0xff] %v4174_v49  ;;  %5652 = vst [vmem:[#allocation36_spill] sm:$0xff] %v4177_v37  ;;  %v4184_v52 = vadd.f32 %v789_v44, %v670_v23  ;;  %v791_v8 = vpop.f32.mrb[11].mxu0  ;;  %v4187_v63 = vadd.f32 %v862_v5, %v4130_v12  ;;  %v864_v50 = vpop.f32.mrb[11].mxu1 }
 0x143   :  { %5653 = vst [vmem:[#allocation37_spill] sm:$0xff] %v4179_v53  ;;  %5654 = vst [vmem:[#allocation38_spill] sm:$0xff] %v4182_v48  ;;  %v4189_v49 = vadd.f32 %v791_v8, %v674_v34  ;;  %v4192_v55 = vadd.f32 %v864_v50, %v4138_v22 }
 0x144   :  { %5655 = vst [vmem:[#allocation39_spill] sm:$0xff] %v4184_v52  ;;  %5656 = vst [vmem:[#allocation40_spill] sm:$0xff] %v4187_v63 }
 0x145   :  { %5657 = vst [vmem:[#allocation41_spill] sm:$0xff] %v4189_v49  ;;  %5658 = vst [vmem:[#allocation42_spill] sm:$0xff] %v4192_v55 }
 0x147   :  { %v795_v37 = vpop.f32.mrb[12].mxu0  ;;  %v868_v10 = vpop.f32.mrb[12].mxu1 }
 0x148   :  { %v4194_v53 = vadd.f32 %v795_v37, %v670_v23  ;;  %v797_v51 = vpop.f32.mrb[13].mxu0  ;;  %v4197_v54 = vadd.f32 %v868_v10, %v4130_v12  ;;  %v870_v44 = vpop.f32.mrb[13].mxu1 }
 0x149   :  { %v4199_v52 = vadd.f32 %v797_v51, %v674_v34  ;;  %v799_v48 = vpop.f32.mrb[14].mxu0  ;;  %v4202_v5 = vadd.f32 %v870_v44, %v4138_v22  ;;  %v872_v8 = vpop.f32.mrb[14].mxu1  ;;  %v766_v51 = vadd.f32 %v4132_v13, %v670_v23  ;;  %v768_v44 = vadd.f32 %v767_v26, %v674_v34 }
 0x14a   :  { %5659 = vst [vmem:[#allocation43_spill] sm:$0xff] %v4194_v53  ;;  %5660 = vst [vmem:[#allocation44_spill] sm:$0xff] %v4197_v54  ;;  %v4204_v63 = vadd.f32 %v799_v48, %v670_v23  ;;  %v801_v50 = vpop.f32.mrb[15].mxu0  ;;  %v4207_v55 = vadd.f32 %v872_v8, %v4130_v12  ;;  %v874_v37 = vpop.f32.mrb[15].mxu1  ;;  %v839_v54 = vadd.f32 %v4134_v15, %v4130_v12 }
 0x14b   :  { %5661 = vst [vmem:[#allocation45_spill] sm:$0xff] %v4199_v52  ;;  %5662 = vst [vmem:[#allocation46_spill] sm:$0xff] %v4202_v5  ;;  %v4209_v53 = vadd.f32 %v801_v50, %v674_v34  ;;  %v4212_v10 = vadd.f32 %v874_v37, %v4138_v22  ;;  %v841_v5 = vadd.f32 %v840_v33, %v4138_v22  ;;  %v910_v34 = vld [vmem:[%s5383_s9] sm:$0xff] }
 0x14c   :  { %5663 = vst [vmem:[#allocation47_spill] sm:$0xff] %v4204_v63  ;;  %5664 = vst [vmem:[#allocation48_spill] sm:$0xff] %v4207_v55 }
 0x14d   :  { %5665 = vst [vmem:[#allocation49_spill] sm:$0xff] %v4209_v53  ;;  %5666 = vst [vmem:[#allocation50_spill] sm:$0xff] %v4212_v10 }
 0x14f   :  { %v1147_v48 = vpop.f32.mrb[16].mxu0  ;;  %v1188_v63 = vpop.f32.mrb[16].mxu1 }
 0x150   :  { %v1195_v52 = vadd.f32 %v1147_v48, %v766_v51  ;;  %v1197_v49 = vadd.f32 %v1188_v63, %v839_v54  ;;  %v1149_v8 = vpop.f32.mrb[17].mxu0  ;;  %v1190_v55 = vpop.f32.mrb[17].mxu1 }
 0x151   :  { %v1196_v11 = vadd.f32 %v1149_v8, %v768_v44  ;;  %v1198_v50 = vadd.f32 %v1190_v55, %v841_v5  ;;  %v1151_v53 = vpop.f32.mrb[18].mxu0  ;;  %v1192_v56 = vpop.f32.mrb[18].mxu1 }
 0x152   :  { %v1199_v37 = vmul.f32 0.5, %v1195_v52  ;;  %v1152_v10 = vpop.f32.mrb[19].mxu0  ;;  %v1193_v7 = vpop.f32.mrb[19].mxu1 }
 0x153   :  { %v1203_v13 = vmul.f32 0.5, %v1196_v11  ;;  %v1208_v12 = vmul.f32 0.5, %v1198_v50 }
 0x154   :  { %3123 = vtanh.f32 %v1199_v37 }
 0x155   :  { %3125 = vtanh.f32 %v1203_v13 }
 0x156   :  { %3127 = vtanh.f32 %v1197_v49 }
 0x157   :  { %3129 = vtanh.f32 %v1208_v12 }
 0x15e   :  { %v3124_v15 = vpop.eup %3123 }
 0x15f   :  { %v3126_v22 = vpop.eup %3125  ;;  %v1201_v23 = vmul.f32 0.5, %v3124_v15 }
 0x160   :  { %v1205_v26 = vmul.f32 0.5, %v3126_v22  ;;  %v3128_v53 = vpop.eup %3127 }
 0x161   :  { %v1202_v33 = vadd.f32 0.5, %v1201_v23  ;;  %v3130_v49 = vpop.eup %3129 }
 0x162   :  { %v1206_v56 = vadd.f32 0.5, %v1205_v26  ;;  %v1210_v11 = vmul.f32 0.5, %v3130_v49 }
 0x163   :  { %v1213_v52 = vmul.f32 %v3128_v53, %v1202_v33 }
 0x164   :  { %v1212_v63 = vmul.f32 %v1206_v56, %v910_v34  ;;  %v1211_v55 = vadd.f32 0.5, %v1210_v11 }
 0x166   :  { %v4221_v7 = vadd.f32 %v1213_v52, %v1212_v63 }
 0x168   :  { %5667 = vst [vmem:[#allocation51_spill] sm:$0xff] %v4221_v7  ;;  %3131 = vtanh.f32 %v4221_v7 }
 0x172   :  { %v3132_v54 = vpop.eup %3131 }
 0x173   :  { %v4224_v5 = vmul.f32 %v3132_v54, %v1211_v55 }
 0x174   :  { %3411 = dma.done.wait [#allocation5], 8192 }
 0x175   :  { %3412 = vsyncadd [#allocation5], 4294959104  ;;  %v1222_v10 = vpack.c.bf16 %v3869_v61, %v3869_v61  ;;  %v4228_v51 = vld [vmem:[#allocation2 + $0x8] sm:$0xff]  ;;  %v4230_v44 = vld [vmem:[#allocation2] sm:$0xff] }
 0x176   :  { %v4232_v48 = vld [vmem:[#allocation2 + $0x28] sm:$0xff]  ;;  %1308 = vmatprep.subr.bf16.mxu0 %v4228_v51  ;;  %v4235_v8 = vld [vmem:[#allocation2 + $0x18] sm:$0xff]  ;;  %v4237_v50 = vld [vmem:[#allocation2 + $0x10] sm:$0xff] }
 0x177   :  { %1340 = vmatprep.mubr.bf16.mxu0 %v1222_v10  ;;  %1381 = vmatprep.mubr.bf16.mxu1 %v1222_v10  ;;  %v4241_v37 = vld [vmem:[#allocation2 + $0x38] sm:$0xff]  ;;  %v4244_v61 = vld [vmem:[#allocation2 + $0x20] sm:$0xff]  ;;  %v4247_v13 = vld [vmem:[#allocation2 + $0x48] sm:$0xff] }
 0x178   :  { %1309 = vmatpush1.bf16.msra.mxu0 %v4230_v44  ;;  %1349 = vmatprep.subr.bf16.mxu1 %v4235_v8  ;;  %v4250_v12 = vld [vmem:[#allocation2 + $0x30] sm:$0xff]  ;;  %v4252_v15 = vld [vmem:[#allocation2 + $0x58] sm:$0xff]  ;;  %v4256_v22 = vld [vmem:[#allocation2 + $0x40] sm:$0xff] }
 0x179   :  { %1310 = vmatprep.subr.bf16.mxu0 %v4232_v48  ;;  %1350 = vmatpush1.bf16.msra.mxu1 %v4237_v50  ;;  %v4259_v23 = vld [vmem:[#allocation2 + $0x68] sm:$0xff]  ;;  %v4262_v26 = vld [vmem:[#allocation2 + $0x50] sm:$0xff]  ;;  %v4264_v33 = vld [vmem:[#allocation2 + $0x78] sm:$0xff] }
 0x17a   :  { %1351 = vmatprep.subr.bf16.mxu1 %v4241_v37  ;;  %5668 = vst [vmem:[#allocation52_spill] sm:$0xff] %v4259_v23  ;;  %5669 = vst [vmem:[#allocation53_spill] sm:$0xff] %v4264_v33  ;;  %v4268_v34 = vld [vmem:[#allocation2 + $0x60] sm:$0xff]  ;;  %v4271_v53 = vld [vmem:[#allocation2 + $0x88] sm:$0xff] }
 0x17b   :  { %5670 = vst [vmem:[#allocation54_spill] sm:$0xff] %v4268_v34  ;;  %5671 = vst [vmem:[#allocation55_spill] sm:$0xff] %v4271_v53  ;;  %v4274_v56 = vld [vmem:[#allocation2 + $0x70] sm:$0xff]  ;;  %v4276_v52 = vld [vmem:[#allocation2 + $0x98] sm:$0xff] }
 0x17c   :  { %1311 = vmatpush1.bf16.msra.mxu0 %v4244_v61  ;;  %5672 = vst [vmem:[#allocation56_spill] sm:$0xff] %v4274_v56  ;;  %5673 = vst [vmem:[#allocation57_spill] sm:$0xff] %v4276_v52  ;;  %v4280_v63 = vld [vmem:[#allocation2 + $0x80] sm:$0xff]  ;;  %v4283_v49 = vld [vmem:[#allocation2 + $0xa8] sm:$0xff] }
 0x17d   :  { %1312 = vmatprep.subr.bf16.mxu0 %v4247_v13  ;;  %1352 = vmatpush1.bf16.msra.mxu1 %v4250_v12  ;;  %5674 = vst [vmem:[#allocation58_spill] sm:$0xff] %v4280_v63  ;;  %5675 = vst [vmem:[#allocation59_spill] sm:$0xff] %v4283_v49  ;;  %v4286_v11 = vld [vmem:[#allocation2 + $0x90] sm:$0xff]  ;;  %v4288_v55 = vld [vmem:[#allocation2 + $0xb8] sm:$0xff] }
 0x17e   :  { %1353 = vmatprep.subr.bf16.mxu1 %v4252_v15  ;;  %5676 = vst [vmem:[#allocation60_spill] sm:$0xff] %v4286_v11  ;;  %5677 = vst [vmem:[#allocation61_spill] sm:$0xff] %v4288_v55  ;;  %v4292_v54 = vld [vmem:[#allocation2 + $0xa0] sm:$0xff]  ;;  %v4295_v10 = vld [vmem:[#allocation2 + $0xc8] sm:$0xff] }
 0x17f   :  { %5678 = vst [vmem:[#allocation62_spill] sm:$0xff] %v4292_v54  ;;  %5679 = vst [vmem:[#allocation63_spill] sm:$0xff] %v4295_v10  ;;  %v4298_v7 = vld [vmem:[#allocation2 + $0xb0] sm:$0xff]  ;;  %v4300_v4 = vld [vmem:[#allocation2 + $0xd8] sm:$0xff] }
 0x180   :  { %1313 = vmatpush1.bf16.msra.mxu0 %v4256_v22  ;;  %5680 = vst [vmem:[#allocation64_spill] sm:$0xff] %v4298_v7  ;;  %5681 = vst [vmem:[#allocation65_spill] sm:$0xff] %v4300_v4  ;;  %v4304_v6 = vld [vmem:[#allocation2 + $0xc0] sm:$0xff]  ;;  %v4307_v45 = vld [vmem:[#allocation2 + $0xe8] sm:$0xff] }
 0x181   :  { %1314 = vmatprep.subr.bf16.mxu0 %v4259_v23  ;;  %1354 = vmatpush1.bf16.msra.mxu1 %v4262_v26  ;;  %5682 = vst [vmem:[#allocation66_spill] sm:$0xff] %v4304_v6  ;;  %5683 = vst [vmem:[#allocation67_spill] sm:$0xff] %v4307_v45  ;;  %v4310_v0 = vld [vmem:[#allocation2 + $0xd0] sm:$0xff]  ;;  %v4312_v3 = vld [vmem:[#allocation2 + $0xf8] sm:$0xff] }
 0x182   :  { %1355 = vmatprep.subr.bf16.mxu1 %v4264_v33  ;;  %5684 = vst [vmem:[#allocation68_spill] sm:$0xff] %v4310_v0  ;;  %5685 = vst [vmem:[#allocation69_spill] sm:$0xff] %v4312_v3  ;;  %v4316_v62 = vld [vmem:[#allocation2 + $0xe0] sm:$0xff] }
 0x183   :  { %5686 = vst [vmem:[#allocation70_spill] sm:$0xff] %v4316_v62 }
 0x184   :  { %1315 = vmatpush1.bf16.msra.mxu0 %v4268_v34 }
 0x185   :  { %1316 = vmatprep.subr.bf16.mxu0 %v4271_v53  ;;  %1356 = vmatpush1.bf16.msra.mxu1 %v4274_v56 }
 0x186   :  { %1357 = vmatprep.subr.bf16.mxu1 %v4276_v52 }
 0x188   :  { %1317 = vmatpush1.bf16.msra.mxu0 %v4280_v63 }
 0x189   :  { %1318 = vmatprep.subr.bf16.mxu0 %v4283_v49  ;;  %1358 = vmatpush1.bf16.msra.mxu1 %v4286_v11 }
 0x18a   :  { %1359 = vmatprep.subr.bf16.mxu1 %v4288_v55 }
 0x18c   :  { %1319 = vmatpush1.bf16.msra.mxu0 %v4292_v54  ;;  %v4324_v54 = vld [vmem:[#allocation2 + $0x118] sm:$0xff] }
 0x18d   :  { %1320 = vmatprep.subr.bf16.mxu0 %v4295_v10  ;;  %1360 = vmatpush1.bf16.msra.mxu1 %v4298_v7  ;;  %v4319_v10 = vld [vmem:[#allocation2 + $0x108] sm:$0xff]  ;;  %v4322_v7 = vld [vmem:[#allocation2 + $0xf0] sm:$0xff]  ;;  %5689 = vst [vmem:[#allocation73_spill] sm:$0xff] %v4324_v54 }
 0x18e   :  { %1361 = vmatprep.subr.bf16.mxu1 %v4300_v4  ;;  %5687 = vst [vmem:[#allocation71_spill] sm:$0xff] %v4319_v10  ;;  %5688 = vst [vmem:[#allocation72_spill] sm:$0xff] %v4322_v7  ;;  %v4328_v4 = vld [vmem:[#allocation2 + $0x100] sm:$0xff] }
 0x18f   :  { %5690 = vst [vmem:[#allocation74_spill] sm:$0xff] %v4328_v4 }
 0x190   :  { %1321 = vmatpush1.bf16.msra.mxu0 %v4304_v6  ;;  %v4336_v6 = vld [vmem:[#allocation2 + $0x138] sm:$0xff] }
 0x191   :  { %1322 = vmatprep.subr.bf16.mxu0 %v4307_v45  ;;  %1362 = vmatpush1.bf16.msra.mxu1 %v4310_v0  ;;  %v4331_v45 = vld [vmem:[#allocation2 + $0x128] sm:$0xff]  ;;  %v4334_v0 = vld [vmem:[#allocation2 + $0x110] sm:$0xff]  ;;  %5693 = vst [vmem:[#allocation77_spill] sm:$0xff] %v4336_v6 }
 0x192   :  { %1363 = vmatprep.subr.bf16.mxu1 %v4312_v3  ;;  %5691 = vst [vmem:[#allocation75_spill] sm:$0xff] %v4331_v45  ;;  %5692 = vst [vmem:[#allocation76_spill] sm:$0xff] %v4334_v0  ;;  %v4340_v3 = vld [vmem:[#allocation2 + $0x120] sm:$0xff] }
 0x193   :  { %5694 = vst [vmem:[#allocation78_spill] sm:$0xff] %v4340_v3 }
 0x194   :  { %1323 = vmatpush1.bf16.msra.mxu0 %v4316_v62  ;;  %v4348_v62 = vld [vmem:[#allocation2 + $0x158] sm:$0xff] }
 0x195   :  { %1324 = vmatprep.subr.bf16.mxu0 %v4319_v10  ;;  %1364 = vmatpush1.bf16.msra.mxu1 %v4322_v7  ;;  %v4343_v10 = vld [vmem:[#allocation2 + $0x148] sm:$0xff]  ;;  %v4346_v7 = vld [vmem:[#allocation2 + $0x130] sm:$0xff]  ;;  %5697 = vst [vmem:[#allocation81_spill] sm:$0xff] %v4348_v62 }
 0x196   :  { %1365 = vmatprep.subr.bf16.mxu1 %v4324_v54  ;;  %5695 = vst [vmem:[#allocation79_spill] sm:$0xff] %v4343_v10  ;;  %5696 = vst [vmem:[#allocation80_spill] sm:$0xff] %v4346_v7  ;;  %v4352_v54 = vld [vmem:[#allocation2 + $0x140] sm:$0xff] }
 0x197   :  { %5698 = vst [vmem:[#allocation82_spill] sm:$0xff] %v4352_v54 }
 0x198   :  { %1325 = vmatpush1.bf16.msra.mxu0 %v4328_v4  ;;  %v4360_v4 = vld [vmem:[#allocation2 + $0x178] sm:$0xff] }
 0x199   :  { %1326 = vmatprep.subr.bf16.mxu0 %v4331_v45  ;;  %1366 = vmatpush1.bf16.msra.mxu1 %v4334_v0  ;;  %v4355_v45 = vld [vmem:[#allocation2 + $0x168] sm:$0xff]  ;;  %v4358_v0 = vld [vmem:[#allocation2 + $0x150] sm:$0xff]  ;;  %5701 = vst [vmem:[#allocation85_spill] sm:$0xff] %v4360_v4 }
 0x19a   :  { %1367 = vmatprep.subr.bf16.mxu1 %v4336_v6  ;;  %5699 = vst [vmem:[#allocation83_spill] sm:$0xff] %v4355_v45  ;;  %5700 = vst [vmem:[#allocation84_spill] sm:$0xff] %v4358_v0  ;;  %v4364_v6 = vld [vmem:[#allocation2 + $0x160] sm:$0xff] }
 0x19b   :  { %5702 = vst [vmem:[#allocation86_spill] sm:$0xff] %v4364_v6 }
 0x19c   :  { %1327 = vmatpush1.bf16.msra.mxu0 %v4340_v3  ;;  %v4372_v3 = vld [vmem:[#allocation2 + $0x198] sm:$0xff] }
 0x19d   :  { %1328 = vmatprep.subr.bf16.mxu0 %v4343_v10  ;;  %1368 = vmatpush1.bf16.msra.mxu1 %v4346_v7  ;;  %v4367_v10 = vld [vmem:[#allocation2 + $0x188] sm:$0xff]  ;;  %v4370_v7 = vld [vmem:[#allocation2 + $0x170] sm:$0xff]  ;;  %5705 = vst [vmem:[#allocation89_spill] sm:$0xff] %v4372_v3 }
 0x19e   :  { %1369 = vmatprep.subr.bf16.mxu1 %v4348_v62  ;;  %5703 = vst [vmem:[#allocation87_spill] sm:$0xff] %v4367_v10  ;;  %5704 = vst [vmem:[#allocation88_spill] sm:$0xff] %v4370_v7  ;;  %v4376_v62 = vld [vmem:[#allocation2 + $0x180] sm:$0xff] }
 0x19f   :  { %5706 = vst [vmem:[#allocation90_spill] sm:$0xff] %v4376_v62 }
 0x1a0   :  { %1329 = vmatpush1.bf16.msra.mxu0 %v4352_v54  ;;  %v4384_v54 = vld [vmem:[#allocation2 + $0x1b8] sm:$0xff] }
 0x1a1   :  { %1330 = vmatprep.subr.bf16.mxu0 %v4355_v45  ;;  %1370 = vmatpush1.bf16.msra.mxu1 %v4358_v0  ;;  %v4379_v45 = vld [vmem:[#allocation2 + $0x1a8] sm:$0xff]  ;;  %v4382_v0 = vld [vmem:[#allocation2 + $0x190] sm:$0xff]  ;;  %5709 = vst [vmem:[#allocation93_spill] sm:$0xff] %v4384_v54 }
 0x1a2   :  { %1371 = vmatprep.subr.bf16.mxu1 %v4360_v4  ;;  %5707 = vst [vmem:[#allocation91_spill] sm:$0xff] %v4379_v45  ;;  %5708 = vst [vmem:[#allocation92_spill] sm:$0xff] %v4382_v0  ;;  %v4388_v4 = vld [vmem:[#allocation2 + $0x1a0] sm:$0xff] }
 0x1a3   :  { %5710 = vst [vmem:[#allocation94_spill] sm:$0xff] %v4388_v4 }
 0x1a4   :  { %1331 = vmatpush1.bf16.msra.mxu0 %v4364_v6  ;;  %v4396_v6 = vld [vmem:[#allocation2 + $0x1d8] sm:$0xff] }
 0x1a5   :  { %1332 = vmatprep.subr.bf16.mxu0 %v4367_v10  ;;  %1372 = vmatpush1.bf16.msra.mxu1 %v4370_v7  ;;  %v4391_v10 = vld [vmem:[#allocation2 + $0x1c8] sm:$0xff]  ;;  %v4394_v7 = vld [vmem:[#allocation2 + $0x1b0] sm:$0xff]  ;;  %5713 = vst [vmem:[#allocation97_spill] sm:$0xff] %v4396_v6 }
 0x1a6   :  { %1373 = vmatprep.subr.bf16.mxu1 %v4372_v3  ;;  %5711 = vst [vmem:[#allocation95_spill] sm:$0xff] %v4391_v10  ;;  %5712 = vst [vmem:[#allocation96_spill] sm:$0xff] %v4394_v7  ;;  %v4400_v3 = vld [vmem:[#allocation2 + $0x1c0] sm:$0xff] }
 0x1a7   :  { %5714 = vst [vmem:[#allocation98_spill] sm:$0xff] %v4400_v3 }
 0x1a8   :  { %1333 = vmatpush1.bf16.msra.mxu0 %v4376_v62  ;;  %v4408_v62 = vld [vmem:[#allocation2 + $0x1f8] sm:$0xff] }
 0x1a9   :  { %1334 = vmatprep.subr.bf16.mxu0 %v4379_v45  ;;  %1374 = vmatpush1.bf16.msra.mxu1 %v4382_v0  ;;  %v4403_v45 = vld [vmem:[#allocation2 + $0x1e8] sm:$0xff]  ;;  %v4406_v0 = vld [vmem:[#allocation2 + $0x1d0] sm:$0xff]  ;;  %5717 = vst [vmem:[#allocation101_spill] sm:$0xff] %v4408_v62 }
 0x1aa   :  { %1375 = vmatprep.subr.bf16.mxu1 %v4384_v54  ;;  %5715 = vst [vmem:[#allocation99_spill] sm:$0xff] %v4403_v45  ;;  %5716 = vst [vmem:[#allocation100_spill] sm:$0xff] %v4406_v0  ;;  %v4412_v54 = vld [vmem:[#allocation2 + $0x1e0] sm:$0xff] }
 0x1ab   :  { %5718 = vst [vmem:[#allocation102_spill] sm:$0xff] %v4412_v54 }
 0x1ac   :  { %1335 = vmatpush1.bf16.msra.mxu0 %v4388_v4 }
 0x1ad   :  { %1336 = vmatprep.subr.bf16.mxu0 %v4391_v10  ;;  %1376 = vmatpush1.bf16.msra.mxu1 %v4394_v7  ;;  %v4416_v10 = vld [vmem:[#allocation2 + $0x1f0] sm:$0xff]  ;;  %v1221_v7 = vpack.c.bf16 %v4224_v5, %v4224_v5 }
 0x1ae   :  { %1377 = vmatprep.subr.bf16.mxu1 %v4396_v6  ;;  %5719 = vst [vmem:[#allocation103_spill] sm:$0xff] %v4416_v10  ;;  %v5722_v5 = vld [vmem:[#allocation64_spill] sm:$0xff] }
 0x1b0   :  { %1337 = vmatpush1.bf16.msra.mxu0 %v4400_v3 }
 0x1b1   :  { %1338 = vmatprep.subr.bf16.mxu0 %v4403_v45  ;;  %1378 = vmatpush1.bf16.msra.mxu1 %v4406_v0 }
 0x1b2   :  { %1379 = vmatprep.subr.bf16.mxu1 %v4408_v62  ;;  %v5720_v62 = vmov 0  }
 0x1b4   :  { %1339 = vmatpush1.bf16.msra.mxu0 %v4412_v54 }
 0x1b5   :  { %1412 = vmatprep.subr.bf16.mxu0 %v3895_v9  ;;  %1380 = vmatpush1.bf16.msra.mxu1 %v4416_v10 }
 0x1b6   :  { %1453 = vmatprep.subr.bf16.mxu1 %v3900_v14 }
 0x1b7   :  { %1341 = vmatmul.mubr.bf16.vlgmr.msra.gmra.mrb[20].mxu0 %v1221_v7 }
 0x1b8   :  { %1413 = vmatpush1.bf16.msra.mxu0 %v3905_v16  ;;  %1382 = vmatmul.mubr.bf16.vlgmr.msra.gmra.mrb[20].mxu1 %v1221_v7 }
 0x1b9   :  { %1414 = vmatprep.subr.bf16.mxu0 %v3917_v18  ;;  %1454 = vmatpush1.bf16.msra.mxu1 %v3910_v17 }
 0x1ba   :  { %1455 = vmatprep.subr.bf16.mxu1 %v3922_v19  ;;  %1444 = vmatprep.mubr.bf16.mxu0 %v5720_v62 }
 0x1bb   :  { %1485 = vmatprep.mubr.bf16.mxu1 %v5720_v62 }
 0x1bc   :  { %1415 = vmatpush1.bf16.msra.mxu0 %v3927_v20 }
 0x1bd   :  { %1416 = vmatprep.subr.bf16.mxu0 %v3947_v24  ;;  %1456 = vmatpush1.bf16.msra.mxu1 %v3932_v21 }
 0x1be   :  { %1457 = vmatprep.subr.bf16.mxu1 %v3954_v25 }
 0x1c0   :  { %1417 = vmatpush1.bf16.msra.mxu0 %v3963_v27 }
 0x1c1   :  { %1418 = vmatprep.subr.bf16.mxu0 %v3975_v29  ;;  %1458 = vmatpush1.bf16.msra.mxu1 %v3968_v28 }
 0x1c2   :  { %1459 = vmatprep.subr.bf16.mxu1 %v3980_v30 }
 0x1c4   :  { %1419 = vmatpush1.bf16.msra.mxu0 %v3985_v31 }
 0x1c5   :  { %1420 = vmatprep.subr.bf16.mxu0 %v4007_v35  ;;  %1460 = vmatpush1.bf16.msra.mxu1 %v3992_v32 }
 0x1c6   :  { %1461 = vmatprep.subr.bf16.mxu1 %v4012_v36 }
 0x1c8   :  { %1421 = vmatpush1.bf16.msra.mxu0 %v4021_v38 }
 0x1c9   :  { %1422 = vmatprep.subr.bf16.mxu0 %v4033_v40  ;;  %1462 = vmatpush1.bf16.msra.mxu1 %v4026_v39 }
 0x1ca   :  { %1463 = vmatprep.subr.bf16.mxu1 %v4038_v41 }
 0x1cc   :  { %1423 = vmatpush1.bf16.msra.mxu0 %v4045_v42 }
 0x1cd   :  { %1424 = vmatprep.subr.bf16.mxu0 %v4065_v46  ;;  %1464 = vmatpush1.bf16.msra.mxu1 %v4052_v43 }
 0x1ce   :  { %1465 = vmatprep.subr.bf16.mxu1 %v4070_v47 }
 0x1d0   :  { %1425 = vmatpush1.bf16.msra.mxu0 %v4079_v57 }
 0x1d1   :  { %1426 = vmatprep.subr.bf16.mxu0 %v4091_v59  ;;  %1466 = vmatpush1.bf16.msra.mxu1 %v4084_v58 }
 0x1d2   :  { %1467 = vmatprep.subr.bf16.mxu1 %v4096_v60 }
 0x1d4   :  { %1427 = vmatpush1.bf16.msra.mxu0 %v4105_v1 }
 0x1d5   :  { %1468 = vmatpush1.bf16.msra.mxu1 %v4110_v2  ;;  %1518 = vmatprep.subr.bf16.mxu0 %v4228_v51 }
 0x1d6   :  { %1559 = vmatprep.subr.bf16.mxu1 %v4235_v8 }
 0x1d7   :  { %1445 = vmatmul.mubr.bf16.vlgmr.msra.gmra.mrb[24].mxu0 %v1221_v7 }
 0x1d8   :  { %1486 = vmatmul.mubr.bf16.vlgmr.msra.gmra.mrb[24].mxu1 %v1221_v7  ;;  %1519 = vmatpush1.bf16.msra.mxu0 %v4230_v44  ;;  %v5721_v7 = vld [vmem:[#allocation62_spill] sm:$0xff] }
 0x1d9   :  { %1560 = vmatpush1.bf16.msra.mxu1 %v4237_v50  ;;  %1520 = vmatprep.subr.bf16.mxu0 %v4232_v48 }
 0x1da   :  { %1561 = vmatprep.subr.bf16.mxu1 %v4241_v37 }
 0x1dc   :  { %1521 = vmatpush1.bf16.msra.mxu0 %v4244_v61 }
 0x1dd   :  { %1562 = vmatpush1.bf16.msra.mxu1 %v4250_v12  ;;  %1522 = vmatprep.subr.bf16.mxu0 %v4247_v13 }
 0x1de   :  { %1563 = vmatprep.subr.bf16.mxu1 %v4252_v15 }
 0x1e0   :  { %1523 = vmatpush1.bf16.msra.mxu0 %v4256_v22 }
 0x1e1   :  { %1564 = vmatpush1.bf16.msra.mxu1 %v4262_v26  ;;  %1524 = vmatprep.subr.bf16.mxu0 %v4259_v23 }
 0x1e2   :  { %1565 = vmatprep.subr.bf16.mxu1 %v4264_v33  ;;  %v5723_v33 = vld [vmem:[#allocation63_spill] sm:$0xff] }
 0x1e4   :  { %1525 = vmatpush1.bf16.msra.mxu0 %v4268_v34  ;;  %v5724_v34 = vld [vmem:[#allocation65_spill] sm:$0xff] }
 0x1e5   :  { %1566 = vmatpush1.bf16.msra.mxu1 %v4274_v56  ;;  %1526 = vmatprep.subr.bf16.mxu0 %v4271_v53  ;;  %v5725_v56 = vld [vmem:[#allocation66_spill] sm:$0xff]  ;;  %v5726_v53 = vld [vmem:[#allocation68_spill] sm:$0xff] }
 0x1e6   :  { %1567 = vmatprep.subr.bf16.mxu1 %v4276_v52  ;;  %v5727_v52 = vld [vmem:[#allocation67_spill] sm:$0xff] }
 0x1e8   :  { %1527 = vmatpush1.bf16.msra.mxu0 %v4280_v63  ;;  %v5728_v63 = vld [vmem:[#allocation69_spill] sm:$0xff] }
 0x1e9   :  { %1568 = vmatpush1.bf16.msra.mxu1 %v4286_v11  ;;  %1528 = vmatprep.subr.bf16.mxu0 %v4283_v49  ;;  %v5729_v11 = vld [vmem:[#allocation70_spill] sm:$0xff]  ;;  %v5730_v49 = vld [vmem:[#allocation72_spill] sm:$0xff] }
 0x1ea   :  { %1569 = vmatprep.subr.bf16.mxu1 %v4288_v55  ;;  %v5731_v55 = vld [vmem:[#allocation71_spill] sm:$0xff] }
 0x1ec   :  { %1529 = vmatpush1.bf16.msra.mxu0 %v5721_v7  ;;  %v5732_v7 = vld [vmem:[#allocation73_spill] sm:$0xff] }
 0x1ed   :  { %1570 = vmatpush1.bf16.msra.mxu1 %v5722_v5  ;;  %1530 = vmatprep.subr.bf16.mxu0 %v5723_v33  ;;  %v5733_v5 = vld [vmem:[#allocation74_spill] sm:$0xff]  ;;  %v5734_v33 = vld [vmem:[#allocation76_spill] sm:$0xff] }
 0x1ee   :  { %1571 = vmatprep.subr.bf16.mxu1 %v5724_v34  ;;  %v5735_v34 = vld [vmem:[#allocation75_spill] sm:$0xff] }
 0x1f0   :  { %1531 = vmatpush1.bf16.msra.mxu0 %v5725_v56  ;;  %v5736_v56 = vld [vmem:[#allocation77_spill] sm:$0xff] }
 0x1f1   :  { %1572 = vmatpush1.bf16.msra.mxu1 %v5726_v53  ;;  %1532 = vmatprep.subr.bf16.mxu0 %v5727_v52  ;;  %v5737_v53 = vld [vmem:[#allocation78_spill] sm:$0xff]  ;;  %v5738_v52 = vld [vmem:[#allocation80_spill] sm:$0xff] }
 0x1f2   :  { %1573 = vmatprep.subr.bf16.mxu1 %v5728_v63  ;;  %v5739_v63 = vld [vmem:[#allocation79_spill] sm:$0xff] }
 0x1f4   :  { %1533 = vmatpush1.bf16.msra.mxu0 %v5729_v11  ;;  %v5740_v11 = vld [vmem:[#allocation81_spill] sm:$0xff] }
 0x1f5   :  { %1574 = vmatpush1.bf16.msra.mxu1 %v5730_v49  ;;  %1534 = vmatprep.subr.bf16.mxu0 %v5731_v55  ;;  %v5741_v49 = vld [vmem:[#allocation82_spill] sm:$0xff]  ;;  %v5742_v55 = vld [vmem:[#allocation84_spill] sm:$0xff] }
 0x1f6   :  { %1575 = vmatprep.subr.bf16.mxu1 %v5732_v7  ;;  %v5743_v7 = vld [vmem:[#allocation83_spill] sm:$0xff] }
 0x1f8   :  { %1535 = vmatpush1.bf16.msra.mxu0 %v5733_v5  ;;  %v5744_v5 = vld [vmem:[#allocation85_spill] sm:$0xff] }
 0x1f9   :  { %1576 = vmatpush1.bf16.msra.mxu1 %v5734_v33  ;;  %1536 = vmatprep.subr.bf16.mxu0 %v5735_v34  ;;  %v5745_v33 = vld [vmem:[#allocation86_spill] sm:$0xff]  ;;  %v5746_v34 = vld [vmem:[#allocation88_spill] sm:$0xff] }
 0x1fa   :  { %1577 = vmatprep.subr.bf16.mxu1 %v5736_v56  ;;  %v5747_v56 = vld [vmem:[#allocation87_spill] sm:$0xff] }
 0x1fc   :  { %1537 = vmatpush1.bf16.msra.mxu0 %v5737_v53  ;;  %v5748_v53 = vld [vmem:[#allocation89_spill] sm:$0xff] }
 0x1fd   :  { %1578 = vmatpush1.bf16.msra.mxu1 %v5738_v52  ;;  %1538 = vmatprep.subr.bf16.mxu0 %v5739_v63  ;;  %v5749_v52 = vld [vmem:[#allocation90_spill] sm:$0xff]  ;;  %v5750_v63 = vld [vmem:[#allocation92_spill] sm:$0xff] }
 0x1fe   :  { %1579 = vmatprep.subr.bf16.mxu1 %v5740_v11  ;;  %v5751_v11 = vld [vmem:[#allocation91_spill] sm:$0xff] }
 0x200   :  { %1539 = vmatpush1.bf16.msra.mxu0 %v5741_v49  ;;  %v5752_v49 = vld [vmem:[#allocation93_spill] sm:$0xff] }
 0x201   :  { %1580 = vmatpush1.bf16.msra.mxu1 %v5742_v55  ;;  %1540 = vmatprep.subr.bf16.mxu0 %v5743_v7  ;;  %v5753_v7 = vld [vmem:[#allocation96_spill] sm:$0xff] }
 0x202   :  { %1581 = vmatprep.subr.bf16.mxu1 %v5744_v5  ;;  %v5754_v5 = vld [vmem:[#allocation95_spill] sm:$0xff] }
 0x204   :  { %1541 = vmatpush1.bf16.msra.mxu0 %v5745_v33 }
 0x205   :  { %1582 = vmatpush1.bf16.msra.mxu1 %v5746_v34  ;;  %1542 = vmatprep.subr.bf16.mxu0 %v5747_v56 }
 0x206   :  { %1583 = vmatprep.subr.bf16.mxu1 %v5748_v53 }
 0x208   :  { %1543 = vmatpush1.bf16.msra.mxu0 %v5749_v52  ;;  %v5755_v52 = vld [vmem:[#allocation101_spill] sm:$0xff] }
 0x209   :  { %1584 = vmatpush1.bf16.msra.mxu1 %v5750_v63  ;;  %1544 = vmatprep.subr.bf16.mxu0 %v5751_v11 }
 0x20a   :  { %1585 = vmatprep.subr.bf16.mxu1 %v5752_v49 }
 0x20c   :  { %1545 = vmatpush1.bf16.msra.mxu0 %v4388_v4  ;;  %v5758_v4 = vld [vmem:[#allocation20_spill] sm:$0xff] }
 0x20d   :  { %1586 = vmatpush1.bf16.msra.mxu1 %v5753_v7  ;;  %1546 = vmatprep.subr.bf16.mxu0 %v5754_v5  ;;  %v5756_v7 = vld [vmem:[#allocation18_spill] sm:$0xff] }
 0x20e   :  { %1587 = vmatprep.subr.bf16.mxu1 %v4396_v6  ;;  %v5757_v5 = vsub.s32 0, %v5756_v7 }
 0x210   :  { %1547 = vmatpush1.bf16.msra.mxu0 %v4400_v3  ;;  %v4525_v6 = vrot.slane %v5758_v4, %v5757_v5  ;;  %v5760_v3 = vsub.s32 1, %v5756_v7 }
 0x211   :  { %1588 = vmatpush1.bf16.msra.mxu1 %v4406_v0  ;;  %1548 = vmatprep.subr.bf16.mxu0 %v4403_v45 }
 0x212   :  { %1589 = vmatprep.subr.bf16.mxu1 %v5755_v52  ;;  %5759 = vst [vmem:[#allocation18_spill] sm:$0xff] %v4525_v6  ;;  %v4530_v0 = vrot.slane %v5758_v4, %v5760_v3  ;;  %v5762_v52 = vsub.s32 2, %v5756_v7 }
 0x214   :  { %1549 = vmatpush1.bf16.msra.mxu0 %v4412_v54  ;;  %5761 = vst [vmem:[#allocation20_spill] sm:$0xff] %v4530_v0  ;;  %v4535_v54 = vrot.slane %v5758_v4, %v5762_v52  ;;  %v5764_v52 = vsub.s32 3, %v5756_v7 }
 0x215   :  { %1590 = vmatpush1.bf16.msra.mxu1 %v4416_v10  ;;  %1622 = vmatprep.subr.bf16.mxu0 %v3895_v9 }
 0x216   :  { %1663 = vmatprep.subr.bf16.mxu1 %v3900_v14  ;;  %5763 = vst [vmem:[#allocation104_spill] sm:$0xff] %v4535_v54  ;;  %v4543_v55 = vrot.slane %v5758_v4, %v5764_v52 }
 0x218   :  { %5765 = vst [vmem:[#allocation105_spill] sm:$0xff] %v4543_v55 }
 0x28a   :  { %v1342_v10 = vpop.f32.mrb[20].mxu0 }
 0x28b   :  { %v1343_v9 = vadd.f32 %v1342_v10, %v4525_v6  ;;  %v1344_v45 = vpop.f32.mrb[21].mxu0  ;;  %v1383_v14 = vpop.f32.mrb[20].mxu1 }
 0x28c   :  { %v1345_v49 = vadd.f32 %v1344_v45, %v4530_v0  ;;  %v1346_v11 = vpop.f32.mrb[22].mxu0  ;;  %v1385_v5 = vpop.f32.mrb[21].mxu1  ;;  %v1384_v56 = vadd.f32 %v1383_v14, %v4535_v54  ;;  %v5769_v54 = vld [vmem:[#allocation25_spill] sm:$0xff] }
 0x28d   :  { %v1390_v63 = vmul.f32 0.5, %v1343_v9  ;;  %v1347_v53 = vpop.f32.mrb[23].mxu0  ;;  %v1387_v3 = vpop.f32.mrb[22].mxu1  ;;  %v1386_v10 = vadd.f32 %v1385_v5, %v4543_v55  ;;  %v5768_v5 = vld [vmem:[#allocation23_spill] sm:$0xff] }
 0x28e   :  { %v1394_v34 = vmul.f32 0.5, %v1345_v49  ;;  %v1388_v33 = vpop.f32.mrb[23].mxu1 }
 0x28f   :  { %3133 = vtanh.f32 %v1390_v63  ;;  %v1399_v45 = vmul.f32 0.5, %v1386_v10  ;;  %v5766_v63 = vld [vmem:[#allocation19_spill] sm:$0xff] }
 0x290   :  { %3135 = vtanh.f32 %v1394_v34 }
 0x291   :  { %3137 = vtanh.f32 %v1384_v56 }
 0x292   :  { %3139 = vtanh.f32 %v1399_v45 }
 0x299   :  { %v3134_v11 = vpop.eup %3133 }
 0x29a   :  { %v3136_v0 = vpop.eup %3135  ;;  %v1392_v9 = vmul.f32 0.5, %v3134_v11 }
 0x29b   :  { %v3138_v53 = vpop.eup %3137  ;;  %v1396_v6 = vmul.f32 0.5, %v3136_v0 }
 0x29c   :  { %v1393_v14 = vadd.f32 0.5, %v1392_v9  ;;  %v3140_v4 = vpop.eup %3139 }
 0x29d   :  { %v1397_v49 = vadd.f32 0.5, %v1396_v6  ;;  %v1401_v34 = vmul.f32 0.5, %v3140_v4 }
 0x29e   :  { %v1404_v33 = vmul.f32 %v3138_v53, %v1393_v14 }
 0x29f   :  { %v1403_v3 = vmul.f32 %v5766_v63, %v1397_v49  ;;  %v1402_v11 = vadd.f32 0.5, %v1401_v34  ;;  %v5770_v49 = vld [vmem:[#allocation24_spill] sm:$0xff]  ;;  %v5771_v34 = vld [vmem:[#allocation26_spill] sm:$0xff] }
 0x2a1   :  { %v4547_v7 = vadd.f32 %v1404_v33, %v1403_v3 }
 0x2a3   :  { %5767 = vst [vmem:[#allocation19_spill] sm:$0xff] %v4547_v7  ;;  %3141 = vtanh.f32 %v4547_v7 }
 0x2aa   :  { %v1446_v56 = vpop.f32.mrb[24].mxu0 }
 0x2ab   :  { %v1494_v52 = vadd.f32 %v1446_v56, %v5768_v5  ;;  %v1448_v10 = vpop.f32.mrb[25].mxu0  ;;  %v1487_v55 = vpop.f32.mrb[24].mxu1 }
 0x2ac   :  { %v1495_v0 = vadd.f32 %v1448_v10, %v5769_v54  ;;  %v1450_v45 = vpop.f32.mrb[26].mxu0  ;;  %v1489_v9 = vpop.f32.mrb[25].mxu1  ;;  %v1496_v33 = vadd.f32 %v1487_v55, %v5770_v49 }
 0x2ad   :  { %v3142_v6 = vpop.eup %3141  ;;  %v1498_v53 = vmul.f32 0.5, %v1494_v52  ;;  %v1451_v14 = vpop.f32.mrb[27].mxu0  ;;  %v1497_v56 = vadd.f32 %v1489_v9, %v5771_v34  ;;  %v5786_v34 = vld [vmem:[#allocation65_spill] sm:$0xff] }
 0x2ae   :  { %v1491_v63 = vpop.f32.mrb[26].mxu1  ;;  %v1502_v3 = vmul.f32 0.5, %v1495_v0  ;;  %v1407_v23 = vmul.f32 %v3142_v6, %v1402_v11 }
 0x2af   :  { %v1492_v7 = vpop.f32.mrb[27].mxu1  ;;  %3143 = vtanh.f32 %v1498_v53  ;;  %v1507_v54 = vmul.f32 0.5, %v1497_v56  ;;  %v5787_v56 = vld [vmem:[#allocation66_spill] sm:$0xff] }
 0x2b0   :  { %3145 = vtanh.f32 %v1502_v3  ;;  %v1517_v4 = vpack.c.bf16 %v1407_v23, %v1407_v23  ;;  %v5772_v7 = vld [vmem:[#allocation51_spill] sm:$0xff] }
 0x2b1   :  { %3147 = vtanh.f32 %v1496_v33 }
 0x2b2   :  { %1550 = vmatprep.mubr.bf16.mxu0 %v1517_v4  ;;  %1591 = vmatprep.mubr.bf16.mxu1 %v1517_v4  ;;  %3149 = vtanh.f32 %v1507_v54  ;;  %v5785_v4 = vld [vmem:[#allocation63_spill] sm:$0xff]  ;;  %v5788_v54 = vld [vmem:[#allocation68_spill] sm:$0xff] }
 0x2b9   :  { %v3144_v5 = vpop.eup %3143 }
 0x2ba   :  { %v3146_v10 = vpop.eup %3145  ;;  %v1500_v45 = vmul.f32 0.5, %v3144_v5  ;;  %v5789_v5 = vld [vmem:[#allocation67_spill] sm:$0xff] }
 0x2bb   :  { %v3148_v52 = vpop.eup %3147  ;;  %v1504_v14 = vmul.f32 0.5, %v3146_v10  ;;  %v5790_v10 = vld [vmem:[#allocation69_spill] sm:$0xff] }
 0x2bc   :  { %v1501_v55 = vadd.f32 0.5, %v1500_v45  ;;  %v3150_v23 = vpop.eup %3149  ;;  %v5791_v45 = vld [vmem:[#allocation70_spill] sm:$0xff] }
 0x2bd   :  { %v1505_v49 = vadd.f32 0.5, %v1504_v14  ;;  %v1509_v53 = vmul.f32 0.5, %v3150_v23  ;;  %v5793_v14 = vld [vmem:[#allocation71_spill] sm:$0xff]  ;;  %v5799_v23 = vld [vmem:[#allocation78_spill] sm:$0xff] }
 0x2be   :  { %v1512_v0 = vmul.f32 %v3148_v52, %v1501_v55  ;;  %v5792_v52 = vld [vmem:[#allocation72_spill] sm:$0xff]  ;;  %v5794_v55 = vld [vmem:[#allocation73_spill] sm:$0xff] }
 0x2bf   :  { %v1511_v11 = vmul.f32 %v1505_v49, %v5772_v7  ;;  %v1510_v33 = vadd.f32 0.5, %v1509_v53  ;;  %v5795_v49 = vld [vmem:[#allocation74_spill] sm:$0xff]  ;;  %v5797_v7 = vld [vmem:[#allocation75_spill] sm:$0xff]  ;;  %v5800_v53 = vld [vmem:[#allocation80_spill] sm:$0xff] }
 0x2c1   :  { %v4555_v6 = vadd.f32 %v1512_v0, %v1511_v11  ;;  %v5796_v0 = vld [vmem:[#allocation76_spill] sm:$0xff]  ;;  %v5798_v11 = vld [vmem:[#allocation77_spill] sm:$0xff] }
 0x2c3   :  { %3151 = vtanh.f32 %v4555_v6 }
 0x2cd   :  { %v3152_v9 = vpop.eup %3151 }
 0x2ce   :  { %v1515_v63 = vmul.f32 %v3152_v9, %v1510_v33  ;;  %v5801_v33 = vld [vmem:[#allocation79_spill] sm:$0xff]  ;;  %v5802_v9 = vld [vmem:[#allocation81_spill] sm:$0xff] }
 0x2d0   :  { %v1516_v3 = vpack.c.bf16 %v1515_v63, %v1515_v63  ;;  %v5803_v63 = vld [vmem:[#allocation82_spill] sm:$0xff] }
 0x2d2   :  { %1551 = vmatmul.mubr.bf16.vlgmr.msra.gmra.mrb[28].mxu0 %v1516_v3  ;;  %1592 = vmatmul.mubr.bf16.vlgmr.msra.gmra.mrb[28].mxu1 %v1516_v3 }
 0x2d3   :  { %1623 = vmatpush1.bf16.msra.mxu0 %v3905_v16  ;;  %1664 = vmatpush1.bf16.msra.mxu1 %v3910_v17 }
 0x2d4   :  { %1624 = vmatprep.subr.bf16.mxu0 %v3917_v18  ;;  %1665 = vmatprep.subr.bf16.mxu1 %v3922_v19 }
 0x2d5   :  { %1654 = vmatprep.mubr.bf16.mxu0 %v5720_v62  ;;  %1695 = vmatprep.mubr.bf16.mxu1 %v5720_v62 }
 0x2d7   :  { %1625 = vmatpush1.bf16.msra.mxu0 %v3927_v20  ;;  %1666 = vmatpush1.bf16.msra.mxu1 %v3932_v21 }
 0x2d8   :  { %1626 = vmatprep.subr.bf16.mxu0 %v3947_v24  ;;  %1667 = vmatprep.subr.bf16.mxu1 %v3954_v25 }
 0x2db   :  { %1627 = vmatpush1.bf16.msra.mxu0 %v3963_v27  ;;  %1668 = vmatpush1.bf16.msra.mxu1 %v3968_v28 }
 0x2dc   :  { %1628 = vmatprep.subr.bf16.mxu0 %v3975_v29  ;;  %1669 = vmatprep.subr.bf16.mxu1 %v3980_v30 }
 0x2df   :  { %1629 = vmatpush1.bf16.msra.mxu0 %v3985_v31  ;;  %1670 = vmatpush1.bf16.msra.mxu1 %v3992_v32 }
 0x2e0   :  { %1630 = vmatprep.subr.bf16.mxu0 %v4007_v35  ;;  %1671 = vmatprep.subr.bf16.mxu1 %v4012_v36 }
 0x2e3   :  { %1631 = vmatpush1.bf16.msra.mxu0 %v4021_v38  ;;  %1672 = vmatpush1.bf16.msra.mxu1 %v4026_v39 }
 0x2e4   :  { %1632 = vmatprep.subr.bf16.mxu0 %v4033_v40  ;;  %1673 = vmatprep.subr.bf16.mxu1 %v4038_v41 }
 0x2e7   :  { %1633 = vmatpush1.bf16.msra.mxu0 %v4045_v42  ;;  %1674 = vmatpush1.bf16.msra.mxu1 %v4052_v43 }
 0x2e8   :  { %1634 = vmatprep.subr.bf16.mxu0 %v4065_v46  ;;  %1675 = vmatprep.subr.bf16.mxu1 %v4070_v47 }
 0x2eb   :  { %1635 = vmatpush1.bf16.msra.mxu0 %v4079_v57  ;;  %1676 = vmatpush1.bf16.msra.mxu1 %v4084_v58 }
 0x2ec   :  { %1636 = vmatprep.subr.bf16.mxu0 %v4091_v59  ;;  %1677 = vmatprep.subr.bf16.mxu1 %v4096_v60 }
 0x2ef   :  { %1637 = vmatpush1.bf16.msra.mxu0 %v4105_v1  ;;  %1678 = vmatpush1.bf16.msra.mxu1 %v4110_v2 }
 0x2f0   :  { %1728 = vmatprep.subr.bf16.mxu0 %v4228_v51  ;;  %1769 = vmatprep.subr.bf16.mxu1 %v4235_v8  ;;  %v5773_v51 = vld [vmem:[#allocation52_spill] sm:$0xff]  ;;  %v5775_v8 = vld [vmem:[#allocation54_spill] sm:$0xff] }
 0x2f2   :  { %1655 = vmatmul.mubr.bf16.vlgmr.msra.gmra.mrb[32].mxu0 %v1516_v3  ;;  %1696 = vmatmul.mubr.bf16.vlgmr.msra.gmra.mrb[32].mxu1 %v1516_v3  ;;  %v5804_v3 = vld [vmem:[#allocation84_spill] sm:$0xff] }
 0x2f3   :  { %1729 = vmatpush1.bf16.msra.mxu0 %v4230_v44  ;;  %1770 = vmatpush1.bf16.msra.mxu1 %v4237_v50  ;;  %v5774_v44 = vld [vmem:[#allocation53_spill] sm:$0xff]  ;;  %v5777_v50 = vld [vmem:[#allocation55_spill] sm:$0xff] }
 0x2f4   :  { %1730 = vmatprep.subr.bf16.mxu0 %v4232_v48  ;;  %1771 = vmatprep.subr.bf16.mxu1 %v4241_v37  ;;  %v5776_v48 = vld [vmem:[#allocation56_spill] sm:$0xff]  ;;  %v5778_v37 = vld [vmem:[#allocation57_spill] sm:$0xff] }
 0x2f7   :  { %1731 = vmatpush1.bf16.msra.mxu0 %v4244_v61  ;;  %1772 = vmatpush1.bf16.msra.mxu1 %v4250_v12  ;;  %v5779_v61 = vld [vmem:[#allocation58_spill] sm:$0xff]  ;;  %v5781_v12 = vld [vmem:[#allocation59_spill] sm:$0xff] }
 0x2f8   :  { %1732 = vmatprep.subr.bf16.mxu0 %v4247_v13  ;;  %1773 = vmatprep.subr.bf16.mxu1 %v4252_v15  ;;  %v5780_v13 = vld [vmem:[#allocation60_spill] sm:$0xff]  ;;  %v5782_v15 = vld [vmem:[#allocation61_spill] sm:$0xff] }
 0x2fb   :  { %1733 = vmatpush1.bf16.msra.mxu0 %v4256_v22  ;;  %1774 = vmatpush1.bf16.msra.mxu1 %v4262_v26  ;;  %v5783_v22 = vld [vmem:[#allocation62_spill] sm:$0xff]  ;;  %v5784_v26 = vld [vmem:[#allocation64_spill] sm:$0xff] }
 0x2fc   :  { %1734 = vmatprep.subr.bf16.mxu0 %v5773_v51  ;;  %1775 = vmatprep.subr.bf16.mxu1 %v5774_v44  ;;  %v5805_v51 = vld [vmem:[#allocation83_spill] sm:$0xff]  ;;  %v5806_v44 = vld [vmem:[#allocation85_spill] sm:$0xff] }
 0x2ff   :  { %1735 = vmatpush1.bf16.msra.mxu0 %v5775_v8  ;;  %1776 = vmatpush1.bf16.msra.mxu1 %v5776_v48 }
 0x300   :  { %1736 = vmatprep.subr.bf16.mxu0 %v5777_v50  ;;  %1777 = vmatprep.subr.bf16.mxu1 %v5778_v37 }
 0x303   :  { %1737 = vmatpush1.bf16.msra.mxu0 %v5779_v61  ;;  %1778 = vmatpush1.bf16.msra.mxu1 %v5780_v13 }
 0x304   :  { %1738 = vmatprep.subr.bf16.mxu0 %v5781_v12  ;;  %1779 = vmatprep.subr.bf16.mxu1 %v5782_v15 }
 0x307   :  { %1739 = vmatpush1.bf16.msra.mxu0 %v5783_v22  ;;  %1780 = vmatpush1.bf16.msra.mxu1 %v5784_v26 }
 0x308   :  { %1740 = vmatprep.subr.bf16.mxu0 %v5785_v4  ;;  %1781 = vmatprep.subr.bf16.mxu1 %v5786_v34 }
 0x30b   :  { %1741 = vmatpush1.bf16.msra.mxu0 %v5787_v56  ;;  %1782 = vmatpush1.bf16.msra.mxu1 %v5788_v54 }
 0x30c   :  { %1742 = vmatprep.subr.bf16.mxu0 %v5789_v5  ;;  %1783 = vmatprep.subr.bf16.mxu1 %v5790_v10 }
 0x30f   :  { %1743 = vmatpush1.bf16.msra.mxu0 %v5791_v45  ;;  %1784 = vmatpush1.bf16.msra.mxu1 %v5792_v52 }
 0x310   :  { %1744 = vmatprep.subr.bf16.mxu0 %v5793_v14  ;;  %1785 = vmatprep.subr.bf16.mxu1 %v5794_v55  ;;  %v5828_v14 = vld [vmem:[#allocation20_spill] sm:$0xff] }
 0x313   :  { %1745 = vmatpush1.bf16.msra.mxu0 %v5795_v49  ;;  %1786 = vmatpush1.bf16.msra.mxu1 %v5796_v0  ;;  %v5807_v0 = vld [vmem:[#allocation86_spill] sm:$0xff] }
 0x314   :  { %1746 = vmatprep.subr.bf16.mxu0 %v5797_v7  ;;  %1787 = vmatprep.subr.bf16.mxu1 %v5798_v11  ;;  %v5808_v7 = vld [vmem:[#allocation88_spill] sm:$0xff]  ;;  %v5809_v11 = vld [vmem:[#allocation87_spill] sm:$0xff]  ;;  %v5827_v49 = vld [vmem:[#allocation18_spill] sm:$0xff] }
 0x317   :  { %1747 = vmatpush1.bf16.msra.mxu0 %v5799_v23  ;;  %1788 = vmatpush1.bf16.msra.mxu1 %v5800_v53  ;;  %v5810_v23 = vld [vmem:[#allocation89_spill] sm:$0xff]  ;;  %v5811_v53 = vld [vmem:[#allocation90_spill] sm:$0xff] }
 0x318   :  { %1748 = vmatprep.subr.bf16.mxu0 %v5801_v33  ;;  %1789 = vmatprep.subr.bf16.mxu1 %v5802_v9  ;;  %v5812_v33 = vld [vmem:[#allocation92_spill] sm:$0xff]  ;;  %v5813_v9 = vld [vmem:[#allocation91_spill] sm:$0xff] }
 0x31b   :  { %1749 = vmatpush1.bf16.msra.mxu0 %v5803_v63  ;;  %1790 = vmatpush1.bf16.msra.mxu1 %v5804_v3  ;;  %v5814_v63 = vld [vmem:[#allocation93_spill] sm:$0xff]  ;;  %v5815_v3 = vld [vmem:[#allocation94_spill] sm:$0xff] }
 0x31c   :  { %1750 = vmatprep.subr.bf16.mxu0 %v5805_v51  ;;  %1791 = vmatprep.subr.bf16.mxu1 %v5806_v44  ;;  %v5816_v51 = vld [vmem:[#allocation96_spill] sm:$0xff]  ;;  %v5817_v44 = vld [vmem:[#allocation95_spill] sm:$0xff] }
 0x31f   :  { %1751 = vmatpush1.bf16.msra.mxu0 %v5807_v0  ;;  %1792 = vmatpush1.bf16.msra.mxu1 %v5808_v7  ;;  %v5818_v0 = vld [vmem:[#allocation97_spill] sm:$0xff]  ;;  %v5819_v7 = vld [vmem:[#allocation98_spill] sm:$0xff] }
 0x320   :  { %1752 = vmatprep.subr.bf16.mxu0 %v5809_v11  ;;  %1793 = vmatprep.subr.bf16.mxu1 %v5810_v23  ;;  %v5820_v11 = vld [vmem:[#allocation100_spill] sm:$0xff]  ;;  %v5821_v23 = vld [vmem:[#allocation99_spill] sm:$0xff] }
 0x323   :  { %1753 = vmatpush1.bf16.msra.mxu0 %v5811_v53  ;;  %1794 = vmatpush1.bf16.msra.mxu1 %v5812_v33  ;;  %v5822_v53 = vld [vmem:[#allocation101_spill] sm:$0xff]  ;;  %v5823_v33 = vld [vmem:[#allocation102_spill] sm:$0xff] }
 0x324   :  { %1754 = vmatprep.subr.bf16.mxu0 %v5813_v9  ;;  %1795 = vmatprep.subr.bf16.mxu1 %v5814_v63  ;;  %v5824_v9 = vld [vmem:[#allocation103_spill] sm:$0xff]  ;;  %v5825_v63 = vld [vmem:[#allocation21_spill] sm:$0xff] }
 0x327   :  { %1755 = vmatpush1.bf16.msra.mxu0 %v5815_v3  ;;  %1796 = vmatpush1.bf16.msra.mxu1 %v5816_v51  ;;  %v5826_v3 = vld [vmem:[#allocation22_spill] sm:$0xff] }
 0x328   :  { %1756 = vmatprep.subr.bf16.mxu0 %v5817_v44  ;;  %1797 = vmatprep.subr.bf16.mxu1 %v5818_v0 }
 0x32b   :  { %1757 = vmatpush1.bf16.msra.mxu0 %v5819_v7  ;;  %1798 = vmatpush1.bf16.msra.mxu1 %v5820_v11 }
 0x32c   :  { %1758 = vmatprep.subr.bf16.mxu0 %v5821_v23  ;;  %1799 = vmatprep.subr.bf16.mxu1 %v5822_v53 }
 0x32f   :  { %1759 = vmatpush1.bf16.msra.mxu0 %v5823_v33  ;;  %1800 = vmatpush1.bf16.msra.mxu1 %v5824_v9  ;;  %v5829_v9 = vld [vmem:[#allocation104_spill] sm:$0xff] }
 0x330   :  { %1832 = vmatprep.subr.bf16.mxu0 %v5825_v63  ;;  %1873 = vmatprep.subr.bf16.mxu1 %v5826_v3  ;;  %v5830_v3 = vld [vmem:[#allocation105_spill] sm:$0xff] }
 0x3a5   :  { %v1552_v51 = vpop.f32.mrb[28].mxu0  ;;  %v1593_v44 = vpop.f32.mrb[28].mxu1 }
 0x3a6   :  { %v1553_v0 = vadd.f32 %v1552_v51, %v5827_v49  ;;  %v1554_v55 = vpop.f32.mrb[29].mxu0  ;;  %v1595_v7 = vpop.f32.mrb[29].mxu1  ;;  %v1594_v5 = vadd.f32 %v1593_v44, %v5829_v9 }
 0x3a7   :  { %v1555_v11 = vadd.f32 %v1554_v55, %v5828_v14  ;;  %v1556_v52 = vpop.f32.mrb[30].mxu0  ;;  %v1597_v23 = vpop.f32.mrb[30].mxu1  ;;  %v1596_v63 = vadd.f32 %v1595_v7, %v5830_v3 }
 0x3a8   :  { %v1600_v45 = vmul.f32 0.5, %v1553_v0  ;;  %v1557_v53 = vpop.f32.mrb[31].mxu0  ;;  %v1598_v10 = vpop.f32.mrb[31].mxu1 }
 0x3a9   :  { %v1604_v33 = vmul.f32 0.5, %v1555_v11  ;;  %v1609_v54 = vmul.f32 0.5, %v1596_v63  ;;  %v5831_v53 = vld [vmem:[#allocation19_spill] sm:$0xff] }
 0x3aa   :  { %3153 = vtanh.f32 %v1600_v45  ;;  %v5833_v63 = vld [vmem:[#allocation27_spill] sm:$0xff] }
 0x3ab   :  { %3155 = vtanh.f32 %v1604_v33 }
 0x3ac   :  { %3157 = vtanh.f32 %v1594_v5 }
 0x3ad   :  { %3159 = vtanh.f32 %v1609_v54  ;;  %v5834_v54 = vld [vmem:[#allocation29_spill] sm:$0xff] }
 0x3b4   :  { %v3154_v56 = vpop.eup %3153 }
 0x3b5   :  { %v3156_v51 = vpop.eup %3155  ;;  %v1602_v49 = vmul.f32 0.5, %v3154_v56 }
 0x3b6   :  { %v1606_v34 = vmul.f32 0.5, %v3156_v51  ;;  %v3158_v52 = vpop.eup %3157 }
 0x3b7   :  { %v1603_v55 = vadd.f32 0.5, %v1602_v49  ;;  %v3160_v45 = vpop.eup %3159 }
 0x3b8   :  { %v1607_v23 = vadd.f32 0.5, %v1606_v34  ;;  %v1611_v5 = vmul.f32 0.5, %v3160_v45 }
 0x3b9   :  { %v1614_v0 = vmul.f32 %v3158_v52, %v1603_v55 }
 0x3ba   :  { %v1613_v10 = vmul.f32 %v1607_v23, %v5831_v53  ;;  %v1612_v51 = vadd.f32 0.5, %v1611_v5 }
 0x3bc   :  { %v4661_v11 = vadd.f32 %v1614_v0, %v1613_v10 }
 0x3be   :  { %5832 = vst [vmem:[#allocation23_spill] sm:$0xff] %v4661_v11  ;;  %3161 = vtanh.f32 %v4661_v11  ;;  %v5835_v11 = vld [vmem:[#allocation28_spill] sm:$0xff] }
 0x3c5   :  { %v1656_v33 = vpop.f32.mrb[32].mxu0  ;;  %v1697_v7 = vpop.f32.mrb[32].mxu1 }
 0x3c6   :  { %v1704_v44 = vadd.f32 %v1656_v33, %v5833_v63  ;;  %v1658_v3 = vpop.f32.mrb[33].mxu0  ;;  %v1699_v56 = vpop.f32.mrb[33].mxu1  ;;  %v1706_v45 = vadd.f32 %v1697_v7, %v5835_v11  ;;  %v5836_v33 = vld [vmem:[#allocation30_spill] sm:$0xff] }
 0x3c7   :  { %v1705_v49 = vadd.f32 %v1658_v3, %v5834_v54  ;;  %v1660_v9 = vpop.f32.mrb[34].mxu0  ;;  %v1701_v34 = vpop.f32.mrb[34].mxu1  ;;  %v1707_v5 = vadd.f32 %v1699_v56, %v5836_v33  ;;  %v4713_v33 = vld [vmem:[#allocation2 + $0x10] sm:$0xff] }
 0x3c8   :  { %v3162_v55 = vpop.eup %3161  ;;  %v1708_v52 = vmul.f32 0.5, %v1704_v44  ;;  %v1661_v23 = vpop.f32.mrb[35].mxu0 }
 0x3c9   :  { %v1702_v0 = vpop.f32.mrb[35].mxu1  ;;  %v1712_v53 = vmul.f32 0.5, %v1705_v49  ;;  %v1617_v10 = vmul.f32 %v3162_v55, %v1612_v51  ;;  %v1717_v63 = vmul.f32 0.5, %v1707_v5  ;;  %v4716_v5 = vld [vmem:[#allocation2 + $0x28] sm:$0xff] }
 0x3ca   :  { %3163 = vtanh.f32 %v1708_v52 }
 0x3cb   :  { %3165 = vtanh.f32 %v1712_v53  ;;  %v1727_v14 = vpack.c.bf16 %v1617_v10, %v1617_v10  ;;  %v4707_v10 = vld [vmem:[#allocation2 + $0x18] sm:$0xff] }
 0x3cc   :  { %3167 = vtanh.f32 %v1706_v45  ;;  %v4710_v45 = vld [vmem:[#allocation2] sm:$0xff] }
 0x3cd   :  { %1760 = vmatprep.mubr.bf16.mxu0 %v1727_v14  ;;  %1801 = vmatprep.mubr.bf16.mxu1 %v1727_v14  ;;  %3169 = vtanh.f32 %v1717_v63  ;;  %v4719_v63 = vld [vmem:[#allocation2 + $0x38] sm:$0xff] }
 0x3d4   :  { %v3164_v3 = vpop.eup %3163 }
 0x3d5   :  { %v3166_v9 = vpop.eup %3165  ;;  %v1710_v54 = vmul.f32 0.5, %v3164_v3  ;;  %v4722_v3 = vld [vmem:[#allocation2 + $0x20] sm:$0xff] }
 0x3d6   :  { %v1714_v34 = vmul.f32 0.5, %v3166_v9  ;;  %v3168_v23 = vpop.eup %3167  ;;  %v4725_v9 = vld [vmem:[#allocation2 + $0x30] sm:$0xff] }
 0x3d7   :  { %v1711_v44 = vadd.f32 0.5, %v1710_v54  ;;  %v3170_v14 = vpop.eup %3169  ;;  %v4728_v54 = vld [vmem:[#allocation2 + $0x48] sm:$0xff] }
 0x3d8   :  { %v1715_v49 = vadd.f32 0.5, %v1714_v34  ;;  %v1719_v7 = vmul.f32 0.5, %v3170_v14  ;;  %v4731_v34 = vld [vmem:[#allocation2 + $0x58] sm:$0xff] }
 0x3d9   :  { %v1722_v51 = vmul.f32 %v3168_v23, %v1711_v44  ;;  %v4734_v44 = vld [vmem:[#allocation2 + $0x40] sm:$0xff]  ;;  %v4737_v23 = vld [vmem:[#allocation2 + $0x50] sm:$0xff]  ;;  %v5852_v14 = vld [vmem:[#allocation77_spill] sm:$0xff] }
 0x3da   :  { %v1721_v55 = vmul.f32 %v1715_v49, %v4555_v6  ;;  %v1720_v52 = vadd.f32 0.5, %v1719_v7  ;;  %v4704_v6 = vld [vmem:[#allocation2 + $0x8] sm:$0xff]  ;;  %5837 = vst [vmem:[#allocation25_spill] sm:$0xff] %v4737_v23  ;;  %v5853_v7 = vld [vmem:[#allocation78_spill] sm:$0xff] }
 0x3db   :  { %v4740_v49 = vld [vmem:[#allocation2 + $0x68] sm:$0xff] }
 0x3dc   :  { %v4669_v11 = vadd.f32 %v1722_v51, %v1721_v55  ;;  %5838 = vst [vmem:[#allocation24_spill] sm:$0xff] %v4740_v49  ;;  %v4743_v51 = vld [vmem:[#allocation2 + $0x78] sm:$0xff]  ;;  %v5851_v55 = vld [vmem:[#allocation75_spill] sm:$0xff] }
 0x3dd   :  { %5839 = vst [vmem:[#allocation26_spill] sm:$0xff] %v4743_v51 }
 0x3de   :  { %3171 = vtanh.f32 %v4669_v11 }
 0x3e8   :  { %v3172_v56 = vpop.eup %3171 }
 0x3e9   :  { %v1725_v0 = vmul.f32 %v3172_v56, %v1720_v52  ;;  %v5854_v52 = vld [vmem:[#allocation80_spill] sm:$0xff]  ;;  %v5855_v56 = vld [vmem:[#allocation79_spill] sm:$0xff] }
 0x3eb   :  { %v1726_v53 = vpack.c.bf16 %v1725_v0, %v1725_v0  ;;  %v5856_v0 = vld [vmem:[#allocation81_spill] sm:$0xff] }
 0x3ed   :  { %1761 = vmatmul.mubr.bf16.vlgmr.msra.gmra.mrb[36].mxu0 %v1726_v53  ;;  %1802 = vmatmul.mubr.bf16.vlgmr.msra.gmra.mrb[36].mxu1 %v1726_v53 }
 0x3ee   :  { %1833 = vmatpush1.bf16.msra.mxu0 %v3905_v16  ;;  %1874 = vmatpush1.bf16.msra.mxu1 %v3910_v17 }
 0x3ef   :  { %1834 = vmatprep.subr.bf16.mxu0 %v3917_v18  ;;  %1875 = vmatprep.subr.bf16.mxu1 %v3922_v19 }
 0x3f0   :  { %1864 = vmatprep.mubr.bf16.mxu0 %v5720_v62  ;;  %1905 = vmatprep.mubr.bf16.mxu1 %v5720_v62 }
 0x3f2   :  { %1835 = vmatpush1.bf16.msra.mxu0 %v3927_v20  ;;  %1876 = vmatpush1.bf16.msra.mxu1 %v3932_v21 }
 0x3f3   :  { %1836 = vmatprep.subr.bf16.mxu0 %v3947_v24  ;;  %1877 = vmatprep.subr.bf16.mxu1 %v3954_v25 }
 0x3f6   :  { %1837 = vmatpush1.bf16.msra.mxu0 %v3963_v27  ;;  %1878 = vmatpush1.bf16.msra.mxu1 %v3968_v28 }
 0x3f7   :  { %1838 = vmatprep.subr.bf16.mxu0 %v3975_v29  ;;  %1879 = vmatprep.subr.bf16.mxu1 %v3980_v30 }
 0x3fa   :  { %1839 = vmatpush1.bf16.msra.mxu0 %v3985_v31  ;;  %1880 = vmatpush1.bf16.msra.mxu1 %v3992_v32 }
 0x3fb   :  { %1840 = vmatprep.subr.bf16.mxu0 %v4007_v35  ;;  %1881 = vmatprep.subr.bf16.mxu1 %v4012_v36 }
 0x3fe   :  { %1841 = vmatpush1.bf16.msra.mxu0 %v4021_v38  ;;  %1882 = vmatpush1.bf16.msra.mxu1 %v4026_v39 }
 0x3ff   :  { %1842 = vmatprep.subr.bf16.mxu0 %v4033_v40  ;;  %1883 = vmatprep.subr.bf16.mxu1 %v4038_v41 }
 0x402   :  { %1843 = vmatpush1.bf16.msra.mxu0 %v4045_v42  ;;  %1884 = vmatpush1.bf16.msra.mxu1 %v4052_v43 }
 0x403   :  { %1844 = vmatprep.subr.bf16.mxu0 %v4065_v46  ;;  %1885 = vmatprep.subr.bf16.mxu1 %v4070_v47 }
 0x406   :  { %1845 = vmatpush1.bf16.msra.mxu0 %v4079_v57  ;;  %1886 = vmatpush1.bf16.msra.mxu1 %v4084_v58 }
 0x407   :  { %1846 = vmatprep.subr.bf16.mxu0 %v4091_v59  ;;  %1887 = vmatprep.subr.bf16.mxu1 %v4096_v60 }
 0x40a   :  { %1847 = vmatpush1.bf16.msra.mxu0 %v4105_v1  ;;  %1888 = vmatpush1.bf16.msra.mxu1 %v4110_v2 }
 0x40b   :  { %1938 = vmatprep.subr.bf16.mxu0 %v4704_v6  ;;  %1979 = vmatprep.subr.bf16.mxu1 %v4707_v10 }
 0x40d   :  { %1865 = vmatmul.mubr.bf16.vlgmr.msra.gmra.mrb[40].mxu0 %v1726_v53  ;;  %1906 = vmatmul.mubr.bf16.vlgmr.msra.gmra.mrb[40].mxu1 %v1726_v53  ;;  %v5857_v53 = vld [vmem:[#allocation82_spill] sm:$0xff] }
 0x40e   :  { %1939 = vmatpush1.bf16.msra.mxu0 %v4710_v45  ;;  %1980 = vmatpush1.bf16.msra.mxu1 %v4713_v33 }
 0x40f   :  { %1940 = vmatprep.subr.bf16.mxu0 %v4716_v5  ;;  %1981 = vmatprep.subr.bf16.mxu1 %v4719_v63 }
 0x412   :  { %1941 = vmatpush1.bf16.msra.mxu0 %v4722_v3  ;;  %1982 = vmatpush1.bf16.msra.mxu1 %v4725_v9 }
 0x413   :  { %1942 = vmatprep.subr.bf16.mxu0 %v4728_v54  ;;  %1983 = vmatprep.subr.bf16.mxu1 %v4731_v34 }
 0x416   :  { %1943 = vmatpush1.bf16.msra.mxu0 %v4734_v44  ;;  %1984 = vmatpush1.bf16.msra.mxu1 %v4737_v23 }
 0x417   :  { %1944 = vmatprep.subr.bf16.mxu0 %v4740_v49  ;;  %1985 = vmatprep.subr.bf16.mxu1 %v4743_v51 }
 0x41a   :  { %1945 = vmatpush1.bf16.msra.mxu0 %v5775_v8  ;;  %1986 = vmatpush1.bf16.msra.mxu1 %v5776_v48  ;;  %v5840_v8 = vld [vmem:[#allocation65_spill] sm:$0xff]  ;;  %v5841_v48 = vld [vmem:[#allocation66_spill] sm:$0xff] }
 0x41b   :  { %1946 = vmatprep.subr.bf16.mxu0 %v5777_v50  ;;  %1987 = vmatprep.subr.bf16.mxu1 %v5778_v37  ;;  %v5842_v50 = vld [vmem:[#allocation68_spill] sm:$0xff]  ;;  %v5843_v37 = vld [vmem:[#allocation67_spill] sm:$0xff] }
 0x41e   :  { %1947 = vmatpush1.bf16.msra.mxu0 %v5779_v61  ;;  %1988 = vmatpush1.bf16.msra.mxu1 %v5780_v13  ;;  %v5844_v61 = vld [vmem:[#allocation69_spill] sm:$0xff]  ;;  %v5845_v13 = vld [vmem:[#allocation70_spill] sm:$0xff] }
 0x41f   :  { %1948 = vmatprep.subr.bf16.mxu0 %v5781_v12  ;;  %1989 = vmatprep.subr.bf16.mxu1 %v5782_v15  ;;  %v5846_v12 = vld [vmem:[#allocation72_spill] sm:$0xff]  ;;  %v5847_v15 = vld [vmem:[#allocation71_spill] sm:$0xff] }
 0x422   :  { %1949 = vmatpush1.bf16.msra.mxu0 %v5783_v22  ;;  %1990 = vmatpush1.bf16.msra.mxu1 %v5784_v26  ;;  %v5848_v22 = vld [vmem:[#allocation73_spill] sm:$0xff]  ;;  %v5849_v26 = vld [vmem:[#allocation74_spill] sm:$0xff] }
 0x423   :  { %1950 = vmatprep.subr.bf16.mxu0 %v5785_v4  ;;  %1991 = vmatprep.subr.bf16.mxu1 %v5840_v8  ;;  %v5850_v4 = vld [vmem:[#allocation76_spill] sm:$0xff] }
 0x424   :  { %v5858_v8 = vld [vmem:[#allocation84_spill] sm:$0xff] }
 0x426   :  { %1951 = vmatpush1.bf16.msra.mxu0 %v5841_v48  ;;  %1992 = vmatpush1.bf16.msra.mxu1 %v5842_v50  ;;  %v5859_v48 = vld [vmem:[#allocation83_spill] sm:$0xff]  ;;  %v5860_v50 = vld [vmem:[#allocation85_spill] sm:$0xff] }
 0x427   :  { %1952 = vmatprep.subr.bf16.mxu0 %v5843_v37  ;;  %1993 = vmatprep.subr.bf16.mxu1 %v5844_v61  ;;  %v5861_v37 = vld [vmem:[#allocation86_spill] sm:$0xff]  ;;  %v5862_v61 = vld [vmem:[#allocation88_spill] sm:$0xff] }
 0x42a   :  { %1953 = vmatpush1.bf16.msra.mxu0 %v5845_v13  ;;  %1994 = vmatpush1.bf16.msra.mxu1 %v5846_v12  ;;  %v5863_v13 = vld [vmem:[#allocation87_spill] sm:$0xff]  ;;  %v5864_v12 = vld [vmem:[#allocation89_spill] sm:$0xff] }
 0x42b   :  { %1954 = vmatprep.subr.bf16.mxu0 %v5847_v15  ;;  %1995 = vmatprep.subr.bf16.mxu1 %v5848_v22  ;;  %v5865_v15 = vld [vmem:[#allocation90_spill] sm:$0xff]  ;;  %v5866_v22 = vld [vmem:[#allocation92_spill] sm:$0xff] }
 0x42e   :  { %1955 = vmatpush1.bf16.msra.mxu0 %v5849_v26  ;;  %1996 = vmatpush1.bf16.msra.mxu1 %v5850_v4  ;;  %v5867_v26 = vld [vmem:[#allocation91_spill] sm:$0xff]  ;;  %v5868_v4 = vld [vmem:[#allocation93_spill] sm:$0xff] }
 0x42f   :  { %1956 = vmatprep.subr.bf16.mxu0 %v5851_v55  ;;  %1997 = vmatprep.subr.bf16.mxu1 %v5852_v14  ;;  %v5869_v55 = vld [vmem:[#allocation94_spill] sm:$0xff]  ;;  %v5870_v14 = vld [vmem:[#allocation96_spill] sm:$0xff] }
 0x432   :  { %1957 = vmatpush1.bf16.msra.mxu0 %v5853_v7  ;;  %1998 = vmatpush1.bf16.msra.mxu1 %v5854_v52  ;;  %v5871_v7 = vld [vmem:[#allocation95_spill] sm:$0xff]  ;;  %v5872_v52 = vld [vmem:[#allocation97_spill] sm:$0xff] }
 0x433   :  { %1958 = vmatprep.subr.bf16.mxu0 %v5855_v56  ;;  %1999 = vmatprep.subr.bf16.mxu1 %v5856_v0  ;;  %v5873_v56 = vld [vmem:[#allocation98_spill] sm:$0xff]  ;;  %v5874_v0 = vld [vmem:[#allocation100_spill] sm:$0xff] }
 0x436   :  { %1959 = vmatpush1.bf16.msra.mxu0 %v5857_v53  ;;  %2000 = vmatpush1.bf16.msra.mxu1 %v5858_v8  ;;  %v5875_v53 = vld [vmem:[#allocation99_spill] sm:$0xff]  ;;  %v5876_v8 = vld [vmem:[#allocation101_spill] sm:$0xff] }
 0x437   :  { %1960 = vmatprep.subr.bf16.mxu0 %v5859_v48  ;;  %2001 = vmatprep.subr.bf16.mxu1 %v5860_v50  ;;  %v5877_v48 = vld [vmem:[#allocation102_spill] sm:$0xff]  ;;  %v5878_v50 = vld [vmem:[#allocation103_spill] sm:$0xff] }
 0x43a   :  { %1961 = vmatpush1.bf16.msra.mxu0 %v5861_v37  ;;  %2002 = vmatpush1.bf16.msra.mxu1 %v5862_v61  ;;  %v5879_v37 = vld [vmem:[#allocation21_spill] sm:$0xff]  ;;  %v5880_v61 = vld [vmem:[#allocation22_spill] sm:$0xff] }
 0x43b   :  { %1962 = vmatprep.subr.bf16.mxu0 %v5863_v13  ;;  %2003 = vmatprep.subr.bf16.mxu1 %v5864_v12 }
 0x43e   :  { %1963 = vmatpush1.bf16.msra.mxu0 %v5865_v15  ;;  %2004 = vmatpush1.bf16.msra.mxu1 %v5866_v22  ;;  %v5881_v15 = vld [vmem:[#allocation18_spill] sm:$0xff] }
 0x43f   :  { %1964 = vmatprep.subr.bf16.mxu0 %v5867_v26  ;;  %2005 = vmatprep.subr.bf16.mxu1 %v5868_v4 }
 0x442   :  { %1965 = vmatpush1.bf16.msra.mxu0 %v5869_v55  ;;  %2006 = vmatpush1.bf16.msra.mxu1 %v5870_v14  ;;  %v5882_v55 = vld [vmem:[#allocation20_spill] sm:$0xff] }
 0x443   :  { %1966 = vmatprep.subr.bf16.mxu0 %v5871_v7  ;;  %2007 = vmatprep.subr.bf16.mxu1 %v5872_v52 }
 0x446   :  { %1967 = vmatpush1.bf16.msra.mxu0 %v5873_v56  ;;  %2008 = vmatpush1.bf16.msra.mxu1 %v5874_v0 }
 0x447   :  { %1968 = vmatprep.subr.bf16.mxu0 %v5875_v53  ;;  %2009 = vmatprep.subr.bf16.mxu1 %v5876_v8 }
 0x44a   :  { %1969 = vmatpush1.bf16.msra.mxu0 %v5877_v48  ;;  %2010 = vmatpush1.bf16.msra.mxu1 %v5878_v50  ;;  %v5883_v48 = vld [vmem:[#allocation104_spill] sm:$0xff] }
 0x44b   :  { %2042 = vmatprep.subr.bf16.mxu0 %v5879_v37  ;;  %2083 = vmatprep.subr.bf16.mxu1 %v5880_v61  ;;  %v5884_v61 = vld [vmem:[#allocation105_spill] sm:$0xff] }
 0x4c0   :  { %v1762_v13 = vpop.f32.mrb[36].mxu0  ;;  %v1803_v12 = vpop.f32.mrb[36].mxu1 }
 0x4c1   :  { %v1763_v22 = vadd.f32 %v1762_v13, %v5881_v15  ;;  %v1764_v26 = vpop.f32.mrb[37].mxu0  ;;  %v1805_v4 = vpop.f32.mrb[37].mxu1  ;;  %v1804_v50 = vadd.f32 %v1803_v12, %v5883_v48 }
 0x4c2   :  { %v1765_v14 = vadd.f32 %v1764_v26, %v5882_v55  ;;  %v1766_v7 = vpop.f32.mrb[38].mxu0  ;;  %v1807_v52 = vpop.f32.mrb[38].mxu1  ;;  %v1806_v37 = vadd.f32 %v1805_v4, %v5884_v61 }
 0x4c3   :  { %v1810_v56 = vmul.f32 0.5, %v1763_v22  ;;  %v1767_v0 = vpop.f32.mrb[39].mxu0  ;;  %v1808_v53 = vpop.f32.mrb[39].mxu1 }
 0x4c4   :  { %v1814_v8 = vmul.f32 0.5, %v1765_v14  ;;  %v1819_v51 = vmul.f32 0.5, %v1806_v37  ;;  %v5885_v0 = vld [vmem:[#allocation23_spill] sm:$0xff] }
 0x4c5   :  { %3173 = vtanh.f32 %v1810_v56  ;;  %v5887_v37 = vld [vmem:[#allocation31_spill] sm:$0xff] }
 0x4c6   :  { %3175 = vtanh.f32 %v1814_v8 }
 0x4c7   :  { %3177 = vtanh.f32 %v1804_v50 }
 0x4c8   :  { %3179 = vtanh.f32 %v1819_v51  ;;  %v5888_v51 = vld [vmem:[#allocation33_spill] sm:$0xff] }
 0x4cf   :  { %v3174_v49 = vpop.eup %3173 }
 0x4d0   :  { %v3176_v13 = vpop.eup %3175  ;;  %v1812_v15 = vmul.f32 0.5, %v3174_v49 }
 0x4d1   :  { %v1816_v23 = vmul.f32 0.5, %v3176_v13  ;;  %v3178_v7 = vpop.eup %3177 }
 0x4d2   :  { %v1813_v26 = vadd.f32 0.5, %v1812_v15  ;;  %v3180_v12 = vpop.eup %3179 }
 0x4d3   :  { %v1817_v52 = vadd.f32 0.5, %v1816_v23  ;;  %v1821_v56 = vmul.f32 0.5, %v3180_v12 }
 0x4d4   :  { %v1824_v22 = vmul.f32 %v3178_v7, %v1813_v26 }
 0x4d5   :  { %v1823_v53 = vmul.f32 %v1817_v52, %v5885_v0  ;;  %v1822_v13 = vadd.f32 0.5, %v1821_v56 }
 0x4d7   :  { %v4803_v14 = vadd.f32 %v1824_v22, %v1823_v53 }
 0x4d9   :  { %5886 = vst [vmem:[#allocation51_spill] sm:$0xff] %v4803_v14  ;;  %3181 = vtanh.f32 %v4803_v14  ;;  %v5889_v14 = vld [vmem:[#allocation32_spill] sm:$0xff] }
 0x4e0   :  { %v1866_v8 = vpop.f32.mrb[40].mxu0  ;;  %v1907_v4 = vpop.f32.mrb[40].mxu1 }
 0x4e1   :  { %v1914_v50 = vadd.f32 %v1866_v8, %v5887_v37  ;;  %v1868_v61 = vpop.f32.mrb[41].mxu0  ;;  %v1909_v49 = vpop.f32.mrb[41].mxu1  ;;  %v1916_v12 = vadd.f32 %v1907_v4, %v5889_v14  ;;  %v5890_v8 = vld [vmem:[#allocation34_spill] sm:$0xff] }
 0x4e2   :  { %v1915_v15 = vadd.f32 %v1868_v61, %v5888_v51  ;;  %v1870_v48 = vpop.f32.mrb[42].mxu0  ;;  %v1911_v23 = vpop.f32.mrb[42].mxu1  ;;  %v1917_v56 = vadd.f32 %v1909_v49, %v5890_v8  ;;  %v4860_v8 = vld [vmem:[#allocation2 + $0x60] sm:$0xff] }
 0x4e3   :  { %v3182_v26 = vpop.eup %3181  ;;  %v1918_v7 = vmul.f32 0.5, %v1914_v50  ;;  %v1871_v52 = vpop.f32.mrb[43].mxu0  ;;  %5894 = vst [vmem:[#allocation52_spill] sm:$0xff] %v4860_v8 }
 0x4e4   :  { %v1912_v22 = vpop.f32.mrb[43].mxu1  ;;  %v1922_v0 = vmul.f32 0.5, %v1915_v15  ;;  %v1827_v53 = vmul.f32 %v3182_v26, %v1822_v13  ;;  %v1927_v37 = vmul.f32 0.5, %v1917_v56  ;;  %v4863_v56 = vld [vmem:[#allocation2 + $0x70] sm:$0xff] }
 0x4e5   :  { %3183 = vtanh.f32 %v1918_v7  ;;  %5895 = vst [vmem:[#allocation53_spill] sm:$0xff] %v4863_v56 }
 0x4e6   :  { %3185 = vtanh.f32 %v1922_v0  ;;  %v1937_v55 = vpack.c.bf16 %v1827_v53, %v1827_v53  ;;  %v5892_v53 = vld [vmem:[#allocation24_spill] sm:$0xff] }
 0x4e7   :  { %3187 = vtanh.f32 %v1916_v12  ;;  %v5893_v12 = vld [vmem:[#allocation26_spill] sm:$0xff] }
 0x4e8   :  { %1970 = vmatprep.mubr.bf16.mxu0 %v1937_v55  ;;  %2011 = vmatprep.mubr.bf16.mxu1 %v1937_v55  ;;  %3189 = vtanh.f32 %v1927_v37  ;;  %v4866_v37 = vld [vmem:[#allocation2 + $0x88] sm:$0xff] }
 0x4e9   :  { %5896 = vst [vmem:[#allocation54_spill] sm:$0xff] %v4866_v37 }
 0x4ef   :  { %v3184_v61 = vpop.eup %3183 }
 0x4f0   :  { %v3186_v48 = vpop.eup %3185  ;;  %v1920_v51 = vmul.f32 0.5, %v3184_v61  ;;  %v4869_v61 = vld [vmem:[#allocation2 + $0x98] sm:$0xff] }
 0x4f1   :  { %v1924_v23 = vmul.f32 0.5, %v3186_v48  ;;  %v3188_v52 = vpop.eup %3187  ;;  %5897 = vst [vmem:[#allocation56_spill] sm:$0xff] %v4869_v61  ;;  %v4872_v48 = vld [vmem:[#allocation2 + $0x80] sm:$0xff] }
 0x4f2   :  { %v1921_v50 = vadd.f32 0.5, %v1920_v51  ;;  %v3190_v55 = vpop.eup %3189  ;;  %5898 = vst [vmem:[#allocation55_spill] sm:$0xff] %v4872_v48  ;;  %v4875_v51 = vld [vmem:[#allocation2 + $0x90] sm:$0xff] }
 0x4f3   :  { %v1925_v15 = vadd.f32 0.5, %v1924_v23  ;;  %v1929_v4 = vmul.f32 0.5, %v3190_v55  ;;  %5899 = vst [vmem:[#allocation57_spill] sm:$0xff] %v4875_v51  ;;  %v4878_v23 = vld [vmem:[#allocation2 + $0xa8] sm:$0xff]  ;;  %v4896_v55 = vld [vmem:[#allocation2 + $0xc0] sm:$0xff] }
 0x4f4   :  { %v1932_v13 = vmul.f32 %v3188_v52, %v1921_v50  ;;  %5900 = vst [vmem:[#allocation58_spill] sm:$0xff] %v4878_v23  ;;  %v4881_v50 = vld [vmem:[#allocation2 + $0xb8] sm:$0xff]  ;;  %v4884_v52 = vld [vmem:[#allocation2 + $0xa0] sm:$0xff]  ;;  %5906 = vst [vmem:[#allocation63_spill] sm:$0xff] %v4896_v55 }
 0x4f5   :  { %v1931_v26 = vmul.f32 %v1925_v15, %v4669_v11  ;;  %v1930_v7 = vadd.f32 0.5, %v1929_v4  ;;  %v5891_v11 = vld [vmem:[#allocation25_spill] sm:$0xff]  ;;  %5901 = vst [vmem:[#allocation60_spill] sm:$0xff] %v4881_v50  ;;  %5902 = vst [vmem:[#allocation59_spill] sm:$0xff] %v4884_v52  ;;  %v4887_v15 = vld [vmem:[#allocation2 + $0xb0] sm:$0xff] }
 0x4f6   :  { %5903 = vst [vmem:[#allocation61_spill] sm:$0xff] %v4887_v15  ;;  %v4899_v4 = vld [vmem:[#allocation2 + $0xd0] sm:$0xff] }
 0x4f7   :  { %v4811_v14 = vadd.f32 %v1932_v13, %v1931_v26  ;;  %v4890_v13 = vld [vmem:[#allocation2 + $0xc8] sm:$0xff]  ;;  %v4893_v26 = vld [vmem:[#allocation2 + $0xd8] sm:$0xff]  ;;  %5907 = vst [vmem:[#allocation19_spill] sm:$0xff] %v4899_v4 }
 0x4f8   :  { %5904 = vst [vmem:[#allocation62_spill] sm:$0xff] %v4890_v13  ;;  %5905 = vst [vmem:[#allocation64_spill] sm:$0xff] %v4893_v26 }
 0x4f9   :  { %3191 = vtanh.f32 %v4811_v14 }
 0x503   :  { %v3192_v49 = vpop.eup %3191 }
 0x504   :  { %v1935_v22 = vmul.f32 %v3192_v49, %v1930_v7  ;;  %v4902_v7 = vld [vmem:[#allocation2 + $0xe8] sm:$0xff]  ;;  %v4905_v49 = vld [vmem:[#allocation2 + $0xf8] sm:$0xff] }
 0x505   :  { %5908 = vst [vmem:[#allocation27_spill] sm:$0xff] %v4902_v7  ;;  %5909 = vst [vmem:[#allocation29_spill] sm:$0xff] %v4905_v49 }
 0x506   :  { %v1936_v0 = vpack.c.bf16 %v1935_v22, %v1935_v22  ;;  %v4908_v22 = vld [vmem:[#allocation2 + $0xe0] sm:$0xff] }
 0x507   :  { %5910 = vst [vmem:[#allocation28_spill] sm:$0xff] %v4908_v22 }
 0x508   :  { %1971 = vmatmul.mubr.bf16.vlgmr.msra.gmra.mrb[44].mxu0 %v1936_v0  ;;  %2012 = vmatmul.mubr.bf16.vlgmr.msra.gmra.mrb[44].mxu1 %v1936_v0 }
 0x509   :  { %2043 = vmatpush1.bf16.msra.mxu0 %v3905_v16  ;;  %2084 = vmatpush1.bf16.msra.mxu1 %v3910_v17 }
 0x50a   :  { %2044 = vmatprep.subr.bf16.mxu0 %v3917_v18  ;;  %2085 = vmatprep.subr.bf16.mxu1 %v3922_v19 }
 0x50b   :  { %2074 = vmatprep.mubr.bf16.mxu0 %v5720_v62  ;;  %2115 = vmatprep.mubr.bf16.mxu1 %v5720_v62 }
 0x50d   :  { %2045 = vmatpush1.bf16.msra.mxu0 %v3927_v20  ;;  %2086 = vmatpush1.bf16.msra.mxu1 %v3932_v21 }
 0x50e   :  { %2046 = vmatprep.subr.bf16.mxu0 %v3947_v24  ;;  %2087 = vmatprep.subr.bf16.mxu1 %v3954_v25 }
 0x511   :  { %2047 = vmatpush1.bf16.msra.mxu0 %v3963_v27  ;;  %2088 = vmatpush1.bf16.msra.mxu1 %v3968_v28 }
 0x512   :  { %2048 = vmatprep.subr.bf16.mxu0 %v3975_v29  ;;  %2089 = vmatprep.subr.bf16.mxu1 %v3980_v30 }
 0x515   :  { %2049 = vmatpush1.bf16.msra.mxu0 %v3985_v31  ;;  %2090 = vmatpush1.bf16.msra.mxu1 %v3992_v32 }
 0x516   :  { %2050 = vmatprep.subr.bf16.mxu0 %v4007_v35  ;;  %2091 = vmatprep.subr.bf16.mxu1 %v4012_v36 }
 0x519   :  { %2051 = vmatpush1.bf16.msra.mxu0 %v4021_v38  ;;  %2092 = vmatpush1.bf16.msra.mxu1 %v4026_v39 }
 0x51a   :  { %2052 = vmatprep.subr.bf16.mxu0 %v4033_v40  ;;  %2093 = vmatprep.subr.bf16.mxu1 %v4038_v41 }
 0x51d   :  { %2053 = vmatpush1.bf16.msra.mxu0 %v4045_v42  ;;  %2094 = vmatpush1.bf16.msra.mxu1 %v4052_v43 }
 0x51e   :  { %2054 = vmatprep.subr.bf16.mxu0 %v4065_v46  ;;  %2095 = vmatprep.subr.bf16.mxu1 %v4070_v47 }
 0x521   :  { %2055 = vmatpush1.bf16.msra.mxu0 %v4079_v57  ;;  %2096 = vmatpush1.bf16.msra.mxu1 %v4084_v58 }
 0x522   :  { %2056 = vmatprep.subr.bf16.mxu0 %v4091_v59  ;;  %2097 = vmatprep.subr.bf16.mxu1 %v4096_v60 }
 0x525   :  { %2057 = vmatpush1.bf16.msra.mxu0 %v4105_v1  ;;  %2098 = vmatpush1.bf16.msra.mxu1 %v4110_v2 }
 0x526   :  { %2148 = vmatprep.subr.bf16.mxu0 %v4704_v6  ;;  %2189 = vmatprep.subr.bf16.mxu1 %v4707_v10 }
 0x528   :  { %2075 = vmatmul.mubr.bf16.vlgmr.msra.gmra.mrb[48].mxu0 %v1936_v0  ;;  %2116 = vmatmul.mubr.bf16.vlgmr.msra.gmra.mrb[48].mxu1 %v1936_v0  ;;  %v4911_v0 = vld [vmem:[#allocation2 + $0xf0] sm:$0xff] }
 0x529   :  { %2149 = vmatpush1.bf16.msra.mxu0 %v4710_v45  ;;  %2190 = vmatpush1.bf16.msra.mxu1 %v4713_v33  ;;  %5911 = vst [vmem:[#allocation30_spill] sm:$0xff] %v4911_v0 }
 0x52a   :  { %2150 = vmatprep.subr.bf16.mxu0 %v4716_v5  ;;  %2191 = vmatprep.subr.bf16.mxu1 %v4719_v63 }
 0x52d   :  { %2151 = vmatpush1.bf16.msra.mxu0 %v4722_v3  ;;  %2192 = vmatpush1.bf16.msra.mxu1 %v4725_v9 }
 0x52e   :  { %2152 = vmatprep.subr.bf16.mxu0 %v4728_v54  ;;  %2193 = vmatprep.subr.bf16.mxu1 %v4731_v34 }
 0x531   :  { %2153 = vmatpush1.bf16.msra.mxu0 %v4734_v44  ;;  %2194 = vmatpush1.bf16.msra.mxu1 %v5891_v11 }
 0x532   :  { %2154 = vmatprep.subr.bf16.mxu0 %v5892_v53  ;;  %2195 = vmatprep.subr.bf16.mxu1 %v5893_v12 }
 0x535   :  { %2155 = vmatpush1.bf16.msra.mxu0 %v4860_v8  ;;  %2196 = vmatpush1.bf16.msra.mxu1 %v4863_v56 }
 0x536   :  { %2156 = vmatprep.subr.bf16.mxu0 %v4866_v37  ;;  %2197 = vmatprep.subr.bf16.mxu1 %v4869_v61 }
 0x539   :  { %2157 = vmatpush1.bf16.msra.mxu0 %v4872_v48  ;;  %2198 = vmatpush1.bf16.msra.mxu1 %v4875_v51 }
 0x53a   :  { %2158 = vmatprep.subr.bf16.mxu0 %v4878_v23  ;;  %2199 = vmatprep.subr.bf16.mxu1 %v4881_v50  ;;  %v5947_v23 = vld [vmem:[#allocation20_spill] sm:$0xff] }
 0x53d   :  { %2159 = vmatpush1.bf16.msra.mxu0 %v4884_v52  ;;  %2200 = vmatpush1.bf16.msra.mxu1 %v4887_v15  ;;  %v5946_v15 = vld [vmem:[#allocation18_spill] sm:$0xff] }
 0x53e   :  { %2160 = vmatprep.subr.bf16.mxu0 %v4890_v13  ;;  %2201 = vmatprep.subr.bf16.mxu1 %v4893_v26  ;;  %v5945_v26 = vld [vmem:[#allocation22_spill] sm:$0xff] }
 0x541   :  { %2161 = vmatpush1.bf16.msra.mxu0 %v4896_v55  ;;  %2202 = vmatpush1.bf16.msra.mxu1 %v4899_v4  ;;  %v4914_v55 = vld [vmem:[#allocation2 + $0x108] sm:$0xff]  ;;  %v4917_v4 = vld [vmem:[#allocation2 + $0x118] sm:$0xff] }
 0x542   :  { %2162 = vmatprep.subr.bf16.mxu0 %v4902_v7  ;;  %2203 = vmatprep.subr.bf16.mxu1 %v4905_v49  ;;  %5912 = vst [vmem:[#allocation65_spill] sm:$0xff] %v4914_v55  ;;  %5913 = vst [vmem:[#allocation66_spill] sm:$0xff] %v4917_v4  ;;  %v4920_v7 = vld [vmem:[#allocation2 + $0x100] sm:$0xff]  ;;  %v4923_v49 = vld [vmem:[#allocation2 + $0x110] sm:$0xff] }
 0x543   :  { %5914 = vst [vmem:[#allocation68_spill] sm:$0xff] %v4920_v7  ;;  %5915 = vst [vmem:[#allocation67_spill] sm:$0xff] %v4923_v49 }
 0x545   :  { %2163 = vmatpush1.bf16.msra.mxu0 %v4908_v22  ;;  %2204 = vmatpush1.bf16.msra.mxu1 %v4911_v0  ;;  %v4926_v22 = vld [vmem:[#allocation2 + $0x128] sm:$0xff]  ;;  %v4929_v0 = vld [vmem:[#allocation2 + $0x138] sm:$0xff] }
 0x546   :  { %2164 = vmatprep.subr.bf16.mxu0 %v4914_v55  ;;  %2205 = vmatprep.subr.bf16.mxu1 %v4917_v4  ;;  %5916 = vst [vmem:[#allocation69_spill] sm:$0xff] %v4926_v22  ;;  %5917 = vst [vmem:[#allocation70_spill] sm:$0xff] %v4929_v0  ;;  %v4932_v55 = vld [vmem:[#allocation2 + $0x120] sm:$0xff]  ;;  %v4935_v4 = vld [vmem:[#allocation2 + $0x130] sm:$0xff] }
 0x547   :  { %5918 = vst [vmem:[#allocation72_spill] sm:$0xff] %v4932_v55  ;;  %5919 = vst [vmem:[#allocation71_spill] sm:$0xff] %v4935_v4 }
 0x549   :  { %2165 = vmatpush1.bf16.msra.mxu0 %v4920_v7  ;;  %2206 = vmatpush1.bf16.msra.mxu1 %v4923_v49  ;;  %v4938_v7 = vld [vmem:[#allocation2 + $0x148] sm:$0xff]  ;;  %v4941_v49 = vld [vmem:[#allocation2 + $0x158] sm:$0xff] }
 0x54a   :  { %2166 = vmatprep.subr.bf16.mxu0 %v4926_v22  ;;  %2207 = vmatprep.subr.bf16.mxu1 %v4929_v0  ;;  %5920 = vst [vmem:[#allocation73_spill] sm:$0xff] %v4938_v7  ;;  %5921 = vst [vmem:[#allocation74_spill] sm:$0xff] %v4941_v49  ;;  %v4944_v22 = vld [vmem:[#allocation2 + $0x140] sm:$0xff]  ;;  %v4947_v0 = vld [vmem:[#allocation2 + $0x150] sm:$0xff] }
 0x54b   :  { %5922 = vst [vmem:[#allocation76_spill] sm:$0xff] %v4944_v22  ;;  %5923 = vst [vmem:[#allocation75_spill] sm:$0xff] %v4947_v0 }
 0x54d   :  { %2167 = vmatpush1.bf16.msra.mxu0 %v4932_v55  ;;  %2208 = vmatpush1.bf16.msra.mxu1 %v4935_v4  ;;  %v4950_v55 = vld [vmem:[#allocation2 + $0x168] sm:$0xff]  ;;  %v4953_v4 = vld [vmem:[#allocation2 + $0x178] sm:$0xff] }
 0x54e   :  { %2168 = vmatprep.subr.bf16.mxu0 %v4938_v7  ;;  %2209 = vmatprep.subr.bf16.mxu1 %v4941_v49  ;;  %5924 = vst [vmem:[#allocation77_spill] sm:$0xff] %v4950_v55  ;;  %5925 = vst [vmem:[#allocation78_spill] sm:$0xff] %v4953_v4  ;;  %v4956_v7 = vld [vmem:[#allocation2 + $0x160] sm:$0xff]  ;;  %v4959_v49 = vld [vmem:[#allocation2 + $0x170] sm:$0xff] }
 0x54f   :  { %5926 = vst [vmem:[#allocation80_spill] sm:$0xff] %v4956_v7  ;;  %5927 = vst [vmem:[#allocation79_spill] sm:$0xff] %v4959_v49 }
 0x551   :  { %2169 = vmatpush1.bf16.msra.mxu0 %v4944_v22  ;;  %2210 = vmatpush1.bf16.msra.mxu1 %v4947_v0  ;;  %v4962_v22 = vld [vmem:[#allocation2 + $0x188] sm:$0xff]  ;;  %v4965_v0 = vld [vmem:[#allocation2 + $0x198] sm:$0xff] }
 0x552   :  { %2170 = vmatprep.subr.bf16.mxu0 %v4950_v55  ;;  %2211 = vmatprep.subr.bf16.mxu1 %v4953_v4  ;;  %5928 = vst [vmem:[#allocation81_spill] sm:$0xff] %v4962_v22  ;;  %5929 = vst [vmem:[#allocation82_spill] sm:$0xff] %v4965_v0  ;;  %v4968_v55 = vld [vmem:[#allocation2 + $0x180] sm:$0xff]  ;;  %v4971_v4 = vld [vmem:[#allocation2 + $0x190] sm:$0xff] }
 0x553   :  { %5930 = vst [vmem:[#allocation84_spill] sm:$0xff] %v4968_v55  ;;  %5931 = vst [vmem:[#allocation83_spill] sm:$0xff] %v4971_v4 }
 0x555   :  { %2171 = vmatpush1.bf16.msra.mxu0 %v4956_v7  ;;  %2212 = vmatpush1.bf16.msra.mxu1 %v4959_v49  ;;  %v4974_v7 = vld [vmem:[#allocation2 + $0x1a8] sm:$0xff]  ;;  %v4977_v49 = vld [vmem:[#allocation2 + $0x1b8] sm:$0xff] }
 0x556   :  { %2172 = vmatprep.subr.bf16.mxu0 %v4962_v22  ;;  %2213 = vmatprep.subr.bf16.mxu1 %v4965_v0  ;;  %5932 = vst [vmem:[#allocation85_spill] sm:$0xff] %v4974_v7  ;;  %5933 = vst [vmem:[#allocation86_spill] sm:$0xff] %v4977_v49  ;;  %v4980_v22 = vld [vmem:[#allocation2 + $0x1a0] sm:$0xff]  ;;  %v4983_v0 = vld [vmem:[#allocation2 + $0x1b0] sm:$0xff] }
 0x557   :  { %5934 = vst [vmem:[#allocation88_spill] sm:$0xff] %v4980_v22  ;;  %5935 = vst [vmem:[#allocation87_spill] sm:$0xff] %v4983_v0 }
 0x559   :  { %2173 = vmatpush1.bf16.msra.mxu0 %v4968_v55  ;;  %2214 = vmatpush1.bf16.msra.mxu1 %v4971_v4  ;;  %v4986_v55 = vld [vmem:[#allocation2 + $0x1c8] sm:$0xff]  ;;  %v4989_v4 = vld [vmem:[#allocation2 + $0x1d8] sm:$0xff] }
 0x55a   :  { %2174 = vmatprep.subr.bf16.mxu0 %v4974_v7  ;;  %2215 = vmatprep.subr.bf16.mxu1 %v4977_v49  ;;  %5936 = vst [vmem:[#allocation89_spill] sm:$0xff] %v4986_v55  ;;  %5937 = vst [vmem:[#allocation90_spill] sm:$0xff] %v4989_v4  ;;  %v4992_v7 = vld [vmem:[#allocation2 + $0x1c0] sm:$0xff]  ;;  %v4995_v49 = vld [vmem:[#allocation2 + $0x1d0] sm:$0xff] }
 0x55b   :  { %5938 = vst [vmem:[#allocation92_spill] sm:$0xff] %v4992_v7  ;;  %5939 = vst [vmem:[#allocation91_spill] sm:$0xff] %v4995_v49 }
 0x55d   :  { %2175 = vmatpush1.bf16.msra.mxu0 %v4980_v22  ;;  %2216 = vmatpush1.bf16.msra.mxu1 %v4983_v0  ;;  %v4998_v22 = vld [vmem:[#allocation2 + $0x1e8] sm:$0xff]  ;;  %v5001_v0 = vld [vmem:[#allocation2 + $0x1f8] sm:$0xff] }
 0x55e   :  { %2176 = vmatprep.subr.bf16.mxu0 %v4986_v55  ;;  %2217 = vmatprep.subr.bf16.mxu1 %v4989_v4  ;;  %5940 = vst [vmem:[#allocation93_spill] sm:$0xff] %v4998_v22  ;;  %5941 = vst [vmem:[#allocation94_spill] sm:$0xff] %v5001_v0  ;;  %v5004_v55 = vld [vmem:[#allocation2 + $0x1e0] sm:$0xff]  ;;  %v5007_v4 = vld [vmem:[#allocation2 + $0x1f0] sm:$0xff] }
 0x55f   :  { %5942 = vst [vmem:[#allocation96_spill] sm:$0xff] %v5004_v55  ;;  %5943 = vst [vmem:[#allocation95_spill] sm:$0xff] %v5007_v4 }
 0x561   :  { %2177 = vmatpush1.bf16.msra.mxu0 %v4992_v7  ;;  %2218 = vmatpush1.bf16.msra.mxu1 %v4995_v49  ;;  %v5944_v7 = vld [vmem:[#allocation21_spill] sm:$0xff] }
 0x562   :  { %2178 = vmatprep.subr.bf16.mxu0 %v4998_v22  ;;  %2219 = vmatprep.subr.bf16.mxu1 %v5001_v0 }
 0x565   :  { %2179 = vmatpush1.bf16.msra.mxu0 %v5004_v55  ;;  %2220 = vmatpush1.bf16.msra.mxu1 %v5007_v4  ;;  %v5948_v4 = vld [vmem:[#allocation104_spill] sm:$0xff] }
 0x566   :  { %2252 = vmatprep.subr.bf16.mxu0 %v5944_v7  ;;  %2293 = vmatprep.subr.bf16.mxu1 %v5945_v26  ;;  %v5949_v26 = vld [vmem:[#allocation105_spill] sm:$0xff] }
 0x5db   :  { %v1972_v49 = vpop.f32.mrb[44].mxu0  ;;  %v2013_v13 = vpop.f32.mrb[44].mxu1 }
 0x5dc   :  { %v1973_v22 = vadd.f32 %v1972_v49, %v5946_v15  ;;  %v1974_v52 = vpop.f32.mrb[45].mxu0  ;;  %v2015_v50 = vpop.f32.mrb[45].mxu1  ;;  %v2014_v8 = vadd.f32 %v2013_v13, %v5948_v4  ;;  %v5952_v13 = vld [vmem:[#allocation35_spill] sm:$0xff] }
 0x5dd   :  { %v1975_v0 = vadd.f32 %v1974_v52, %v5947_v23  ;;  %v1976_v51 = vpop.f32.mrb[46].mxu0  ;;  %v2017_v48 = vpop.f32.mrb[46].mxu1  ;;  %v2016_v7 = vadd.f32 %v2015_v50, %v5949_v26 }
 0x5de   :  { %v2020_v61 = vmul.f32 0.5, %v1973_v22  ;;  %v1977_v55 = vpop.f32.mrb[47].mxu0  ;;  %v2018_v37 = vpop.f32.mrb[47].mxu1 }
 0x5df   :  { %v2024_v56 = vmul.f32 0.5, %v1975_v0  ;;  %v2029_v12 = vmul.f32 0.5, %v2016_v7  ;;  %v5950_v55 = vld [vmem:[#allocation51_spill] sm:$0xff] }
 0x5e0   :  { %3193 = vtanh.f32 %v2020_v61 }
 0x5e1   :  { %3195 = vtanh.f32 %v2024_v56 }
 0x5e2   :  { %3197 = vtanh.f32 %v2014_v8 }
 0x5e3   :  { %3199 = vtanh.f32 %v2029_v12  ;;  %v5953_v12 = vld [vmem:[#allocation37_spill] sm:$0xff] }
 0x5ea   :  { %v3194_v53 = vpop.eup %3193 }
 0x5eb   :  { %v3196_v49 = vpop.eup %3195  ;;  %v2022_v15 = vmul.f32 0.5, %v3194_v53 }
 0x5ec   :  { %v2026_v11 = vmul.f32 0.5, %v3196_v49  ;;  %v3198_v51 = vpop.eup %3197 }
 0x5ed   :  { %v2023_v52 = vadd.f32 0.5, %v2022_v15  ;;  %v3200_v56 = vpop.eup %3199 }
 0x5ee   :  { %v2027_v48 = vadd.f32 0.5, %v2026_v11  ;;  %v2031_v8 = vmul.f32 0.5, %v3200_v56 }
 0x5ef   :  { %v2034_v22 = vmul.f32 %v3198_v51, %v2023_v52 }
 0x5f0   :  { %v2033_v37 = vmul.f32 %v2027_v48, %v5950_v55  ;;  %v2032_v49 = vadd.f32 0.5, %v2031_v8 }
 0x5f2   :  { %v5017_v0 = vadd.f32 %v2034_v22, %v2033_v37 }
 0x5f4   :  { %5951 = vst [vmem:[#allocation97_spill] sm:$0xff] %v5017_v0  ;;  %3201 = vtanh.f32 %v5017_v0  ;;  %v5954_v0 = vld [vmem:[#allocation36_spill] sm:$0xff] }
 0x5fb   :  { %v2076_v61 = vpop.f32.mrb[48].mxu0  ;;  %v2117_v50 = vpop.f32.mrb[48].mxu1 }
 0x5fc   :  { %v2124_v7 = vadd.f32 %v2076_v61, %v5952_v13  ;;  %v2078_v26 = vpop.f32.mrb[49].mxu0  ;;  %v2119_v53 = vpop.f32.mrb[49].mxu1  ;;  %v2126_v56 = vadd.f32 %v2117_v50, %v5954_v0  ;;  %v5955_v61 = vld [vmem:[#allocation38_spill] sm:$0xff] }
 0x5fd   :  { %v2125_v15 = vadd.f32 %v2078_v26, %v5953_v12  ;;  %v2080_v4 = vpop.f32.mrb[50].mxu0  ;;  %v2121_v11 = vpop.f32.mrb[50].mxu1  ;;  %v2127_v8 = vadd.f32 %v2119_v53, %v5955_v61  ;;  %v5970_v61 = vld [vmem:[#allocation64_spill] sm:$0xff] }
 0x5fe   :  { %v3202_v52 = vpop.eup %3201  ;;  %v2128_v51 = vmul.f32 0.5, %v2124_v7  ;;  %v2081_v48 = vpop.f32.mrb[51].mxu0 }
 0x5ff   :  { %v2122_v22 = vpop.f32.mrb[51].mxu1  ;;  %v2132_v55 = vmul.f32 0.5, %v2125_v15  ;;  %v2037_v37 = vmul.f32 %v3202_v52, %v2032_v49  ;;  %v2137_v13 = vmul.f32 0.5, %v2127_v8  ;;  %v5971_v8 = vld [vmem:[#allocation63_spill] sm:$0xff] }
 0x600   :  { %3203 = vtanh.f32 %v2128_v51 }
 0x601   :  { %3205 = vtanh.f32 %v2132_v55  ;;  %v2147_v23 = vpack.c.bf16 %v2037_v37, %v2037_v37  ;;  %v5968_v37 = vld [vmem:[#allocation61_spill] sm:$0xff] }
 0x602   :  { %3207 = vtanh.f32 %v2126_v56  ;;  %v5969_v56 = vld [vmem:[#allocation62_spill] sm:$0xff] }
 0x603   :  { %2180 = vmatprep.mubr.bf16.mxu0 %v2147_v23  ;;  %2221 = vmatprep.mubr.bf16.mxu1 %v2147_v23  ;;  %3209 = vtanh.f32 %v2137_v13  ;;  %v5972_v13 = vld [vmem:[#allocation19_spill] sm:$0xff] }
 0x60a   :  { %v3204_v26 = vpop.eup %3203 }
 0x60b   :  { %v3206_v4 = vpop.eup %3205  ;;  %v2130_v12 = vmul.f32 0.5, %v3204_v26  ;;  %v5973_v26 = vld [vmem:[#allocation27_spill] sm:$0xff] }
 0x60c   :  { %v2134_v11 = vmul.f32 0.5, %v3206_v4  ;;  %v3208_v48 = vpop.eup %3207  ;;  %v5974_v4 = vld [vmem:[#allocation29_spill] sm:$0xff] }
 0x60d   :  { %v2131_v7 = vadd.f32 0.5, %v2130_v12  ;;  %v3210_v23 = vpop.eup %3209  ;;  %v5975_v12 = vld [vmem:[#allocation28_spill] sm:$0xff] }
 0x60e   :  { %v2135_v15 = vadd.f32 0.5, %v2134_v11  ;;  %v2139_v50 = vmul.f32 0.5, %v3210_v23  ;;  %v5976_v11 = vld [vmem:[#allocation30_spill] sm:$0xff] }
 0x60f   :  { %v2142_v49 = vmul.f32 %v3208_v48, %v2131_v7  ;;  %v5977_v7 = vld [vmem:[#allocation65_spill] sm:$0xff]  ;;  %v5978_v48 = vld [vmem:[#allocation66_spill] sm:$0xff] }
 0x610   :  { %v2141_v52 = vmul.f32 %v2135_v15, %v4811_v14  ;;  %v2140_v51 = vadd.f32 0.5, %v2139_v50  ;;  %v5967_v14 = vld [vmem:[#allocation59_spill] sm:$0xff]  ;;  %v5979_v15 = vld [vmem:[#allocation68_spill] sm:$0xff]  ;;  %v5982_v23 = vld [vmem:[#allocation70_spill] sm:$0xff] }
 0x611   :  { %v5983_v50 = vld [vmem:[#allocation72_spill] sm:$0xff] }
 0x612   :  { %v5025_v0 = vadd.f32 %v2142_v49, %v2141_v52  ;;  %v5980_v49 = vld [vmem:[#allocation67_spill] sm:$0xff]  ;;  %v5981_v52 = vld [vmem:[#allocation69_spill] sm:$0xff] }
 0x614   :  { %3211 = vtanh.f32 %v5025_v0 }
 0x61e   :  { %v3212_v53 = vpop.eup %3211 }
 0x61f   :  { %v2145_v22 = vmul.f32 %v3212_v53, %v2140_v51  ;;  %v5984_v51 = vld [vmem:[#allocation71_spill] sm:$0xff]  ;;  %v5985_v53 = vld [vmem:[#allocation73_spill] sm:$0xff] }
 0x621   :  { %v2146_v55 = vpack.c.bf16 %v2145_v22, %v2145_v22  ;;  %v5986_v22 = vld [vmem:[#allocation74_spill] sm:$0xff] }
 0x623   :  { %2181 = vmatmul.mubr.bf16.vlgmr.msra.gmra.mrb[52].mxu0 %v2146_v55  ;;  %2222 = vmatmul.mubr.bf16.vlgmr.msra.gmra.mrb[52].mxu1 %v2146_v55 }
 0x624   :  { %2253 = vmatpush1.bf16.msra.mxu0 %v3905_v16  ;;  %2294 = vmatpush1.bf16.msra.mxu1 %v3910_v17 }
 0x625   :  { %2254 = vmatprep.subr.bf16.mxu0 %v3917_v18  ;;  %2295 = vmatprep.subr.bf16.mxu1 %v3922_v19 }
 0x626   :  { %2284 = vmatprep.mubr.bf16.mxu0 %v5720_v62  ;;  %2325 = vmatprep.mubr.bf16.mxu1 %v5720_v62 }
 0x628   :  { %2255 = vmatpush1.bf16.msra.mxu0 %v3927_v20  ;;  %2296 = vmatpush1.bf16.msra.mxu1 %v3932_v21 }
 0x629   :  { %2256 = vmatprep.subr.bf16.mxu0 %v3947_v24  ;;  %2297 = vmatprep.subr.bf16.mxu1 %v3954_v25 }
 0x62c   :  { %2257 = vmatpush1.bf16.msra.mxu0 %v3963_v27  ;;  %2298 = vmatpush1.bf16.msra.mxu1 %v3968_v28 }
 0x62d   :  { %2258 = vmatprep.subr.bf16.mxu0 %v3975_v29  ;;  %2299 = vmatprep.subr.bf16.mxu1 %v3980_v30 }
 0x630   :  { %2259 = vmatpush1.bf16.msra.mxu0 %v3985_v31  ;;  %2300 = vmatpush1.bf16.msra.mxu1 %v3992_v32 }
 0x631   :  { %2260 = vmatprep.subr.bf16.mxu0 %v4007_v35  ;;  %2301 = vmatprep.subr.bf16.mxu1 %v4012_v36 }
 0x634   :  { %2261 = vmatpush1.bf16.msra.mxu0 %v4021_v38  ;;  %2302 = vmatpush1.bf16.msra.mxu1 %v4026_v39 }
 0x635   :  { %2262 = vmatprep.subr.bf16.mxu0 %v4033_v40  ;;  %2303 = vmatprep.subr.bf16.mxu1 %v4038_v41 }
 0x638   :  { %2263 = vmatpush1.bf16.msra.mxu0 %v4045_v42  ;;  %2304 = vmatpush1.bf16.msra.mxu1 %v4052_v43 }
 0x639   :  { %2264 = vmatprep.subr.bf16.mxu0 %v4065_v46  ;;  %2305 = vmatprep.subr.bf16.mxu1 %v4070_v47 }
 0x63c   :  { %2265 = vmatpush1.bf16.msra.mxu0 %v4079_v57  ;;  %2306 = vmatpush1.bf16.msra.mxu1 %v4084_v58 }
 0x63d   :  { %2266 = vmatprep.subr.bf16.mxu0 %v4091_v59  ;;  %2307 = vmatprep.subr.bf16.mxu1 %v4096_v60 }
 0x640   :  { %2267 = vmatpush1.bf16.msra.mxu0 %v4105_v1  ;;  %2308 = vmatpush1.bf16.msra.mxu1 %v4110_v2 }
 0x641   :  { %2358 = vmatprep.subr.bf16.mxu0 %v4704_v6  ;;  %2399 = vmatprep.subr.bf16.mxu1 %v4707_v10  ;;  %v5956_v6 = vld [vmem:[#allocation25_spill] sm:$0xff]  ;;  %v5957_v10 = vld [vmem:[#allocation24_spill] sm:$0xff] }
 0x643   :  { %2285 = vmatmul.mubr.bf16.vlgmr.msra.gmra.mrb[56].mxu0 %v2146_v55  ;;  %2326 = vmatmul.mubr.bf16.vlgmr.msra.gmra.mrb[56].mxu1 %v2146_v55  ;;  %v5987_v55 = vld [vmem:[#allocation76_spill] sm:$0xff] }
 0x644   :  { %2359 = vmatpush1.bf16.msra.mxu0 %v4710_v45  ;;  %2400 = vmatpush1.bf16.msra.mxu1 %v4713_v33  ;;  %v5958_v45 = vld [vmem:[#allocation26_spill] sm:$0xff]  ;;  %v5959_v33 = vld [vmem:[#allocation52_spill] sm:$0xff] }
 0x645   :  { %2360 = vmatprep.subr.bf16.mxu0 %v4716_v5  ;;  %2401 = vmatprep.subr.bf16.mxu1 %v4719_v63  ;;  %v5960_v5 = vld [vmem:[#allocation53_spill] sm:$0xff]  ;;  %v5961_v63 = vld [vmem:[#allocation54_spill] sm:$0xff] }
 0x648   :  { %2361 = vmatpush1.bf16.msra.mxu0 %v4722_v3  ;;  %2402 = vmatpush1.bf16.msra.mxu1 %v4725_v9  ;;  %v5962_v3 = vld [vmem:[#allocation56_spill] sm:$0xff]  ;;  %v5963_v9 = vld [vmem:[#allocation55_spill] sm:$0xff] }
 0x649   :  { %2362 = vmatprep.subr.bf16.mxu0 %v4728_v54  ;;  %2403 = vmatprep.subr.bf16.mxu1 %v4731_v34  ;;  %v5964_v54 = vld [vmem:[#allocation57_spill] sm:$0xff]  ;;  %v5965_v34 = vld [vmem:[#allocation58_spill] sm:$0xff] }
 0x64c   :  { %2363 = vmatpush1.bf16.msra.mxu0 %v4734_v44  ;;  %2404 = vmatpush1.bf16.msra.mxu1 %v5956_v6  ;;  %v5966_v44 = vld [vmem:[#allocation60_spill] sm:$0xff]  ;;  %v5988_v6 = vld [vmem:[#allocation75_spill] sm:$0xff] }
 0x64d   :  { %2364 = vmatprep.subr.bf16.mxu0 %v5957_v10  ;;  %2405 = vmatprep.subr.bf16.mxu1 %v5958_v45  ;;  %v5989_v10 = vld [vmem:[#allocation77_spill] sm:$0xff]  ;;  %v5990_v45 = vld [vmem:[#allocation78_spill] sm:$0xff] }
 0x650   :  { %2365 = vmatpush1.bf16.msra.mxu0 %v5959_v33  ;;  %2406 = vmatpush1.bf16.msra.mxu1 %v5960_v5 }
 0x651   :  { %2366 = vmatprep.subr.bf16.mxu0 %v5961_v63  ;;  %2407 = vmatprep.subr.bf16.mxu1 %v5962_v3 }
 0x654   :  { %2367 = vmatpush1.bf16.msra.mxu0 %v5963_v9  ;;  %2408 = vmatpush1.bf16.msra.mxu1 %v5964_v54 }
 0x655   :  { %2368 = vmatprep.subr.bf16.mxu0 %v5965_v34  ;;  %2409 = vmatprep.subr.bf16.mxu1 %v5966_v44 }
 0x658   :  { %2369 = vmatpush1.bf16.msra.mxu0 %v5967_v14  ;;  %2410 = vmatpush1.bf16.msra.mxu1 %v5968_v37 }
 0x659   :  { %2370 = vmatprep.subr.bf16.mxu0 %v5969_v56  ;;  %2411 = vmatprep.subr.bf16.mxu1 %v5970_v61 }
 0x65c   :  { %2371 = vmatpush1.bf16.msra.mxu0 %v5971_v8  ;;  %2412 = vmatpush1.bf16.msra.mxu1 %v5972_v13 }
 0x65d   :  { %2372 = vmatprep.subr.bf16.mxu0 %v5973_v26  ;;  %2413 = vmatprep.subr.bf16.mxu1 %v5974_v4 }
 0x660   :  { %2373 = vmatpush1.bf16.msra.mxu0 %v5975_v12  ;;  %2414 = vmatpush1.bf16.msra.mxu1 %v5976_v11 }
 0x661   :  { %2374 = vmatprep.subr.bf16.mxu0 %v5977_v7  ;;  %2415 = vmatprep.subr.bf16.mxu1 %v5978_v48  ;;  %v6012_v7 = vld [vmem:[#allocation20_spill] sm:$0xff] }
 0x664   :  { %2375 = vmatpush1.bf16.msra.mxu0 %v5979_v15  ;;  %2416 = vmatpush1.bf16.msra.mxu1 %v5980_v49  ;;  %v5991_v49 = vld [vmem:[#allocation80_spill] sm:$0xff]  ;;  %v6011_v15 = vld [vmem:[#allocation18_spill] sm:$0xff] }
 0x665   :  { %2376 = vmatprep.subr.bf16.mxu0 %v5981_v52  ;;  %2417 = vmatprep.subr.bf16.mxu1 %v5982_v23  ;;  %v5992_v52 = vld [vmem:[#allocation79_spill] sm:$0xff]  ;;  %v5993_v23 = vld [vmem:[#allocation81_spill] sm:$0xff] }
 0x668   :  { %2377 = vmatpush1.bf16.msra.mxu0 %v5983_v50  ;;  %2418 = vmatpush1.bf16.msra.mxu1 %v5984_v51  ;;  %v5994_v50 = vld [vmem:[#allocation82_spill] sm:$0xff]  ;;  %v5995_v51 = vld [vmem:[#allocation84_spill] sm:$0xff] }
 0x669   :  { %2378 = vmatprep.subr.bf16.mxu0 %v5985_v53  ;;  %2419 = vmatprep.subr.bf16.mxu1 %v5986_v22  ;;  %v5996_v53 = vld [vmem:[#allocation83_spill] sm:$0xff]  ;;  %v5997_v22 = vld [vmem:[#allocation85_spill] sm:$0xff] }
 0x66c   :  { %2379 = vmatpush1.bf16.msra.mxu0 %v5987_v55  ;;  %2420 = vmatpush1.bf16.msra.mxu1 %v5988_v6  ;;  %v5998_v55 = vld [vmem:[#allocation86_spill] sm:$0xff]  ;;  %v5999_v6 = vld [vmem:[#allocation88_spill] sm:$0xff] }
 0x66d   :  { %2380 = vmatprep.subr.bf16.mxu0 %v5989_v10  ;;  %2421 = vmatprep.subr.bf16.mxu1 %v5990_v45  ;;  %v6000_v10 = vld [vmem:[#allocation87_spill] sm:$0xff]  ;;  %v6001_v45 = vld [vmem:[#allocation89_spill] sm:$0xff] }
 0x670   :  { %2381 = vmatpush1.bf16.msra.mxu0 %v5991_v49  ;;  %2422 = vmatpush1.bf16.msra.mxu1 %v5992_v52  ;;  %v6002_v49 = vld [vmem:[#allocation90_spill] sm:$0xff]  ;;  %v6003_v52 = vld [vmem:[#allocation92_spill] sm:$0xff] }
 0x671   :  { %2382 = vmatprep.subr.bf16.mxu0 %v5993_v23  ;;  %2423 = vmatprep.subr.bf16.mxu1 %v5994_v50  ;;  %v6004_v23 = vld [vmem:[#allocation91_spill] sm:$0xff]  ;;  %v6005_v50 = vld [vmem:[#allocation93_spill] sm:$0xff] }
 0x674   :  { %2383 = vmatpush1.bf16.msra.mxu0 %v5995_v51  ;;  %2424 = vmatpush1.bf16.msra.mxu1 %v5996_v53  ;;  %v6006_v51 = vld [vmem:[#allocation94_spill] sm:$0xff]  ;;  %v6007_v53 = vld [vmem:[#allocation96_spill] sm:$0xff] }
 0x675   :  { %2384 = vmatprep.subr.bf16.mxu0 %v5997_v22  ;;  %2425 = vmatprep.subr.bf16.mxu1 %v5998_v55  ;;  %v6008_v22 = vld [vmem:[#allocation95_spill] sm:$0xff]  ;;  %v6009_v55 = vld [vmem:[#allocation21_spill] sm:$0xff] }
 0x678   :  { %2385 = vmatpush1.bf16.msra.mxu0 %v5999_v6  ;;  %2426 = vmatpush1.bf16.msra.mxu1 %v6000_v10  ;;  %v6010_v6 = vld [vmem:[#allocation22_spill] sm:$0xff] }
 0x679   :  { %2386 = vmatprep.subr.bf16.mxu0 %v6001_v45  ;;  %2427 = vmatprep.subr.bf16.mxu1 %v6002_v49 }
 0x67c   :  { %2387 = vmatpush1.bf16.msra.mxu0 %v6003_v52  ;;  %2428 = vmatpush1.bf16.msra.mxu1 %v6004_v23 }
 0x67d   :  { %2388 = vmatprep.subr.bf16.mxu0 %v6005_v50  ;;  %2429 = vmatprep.subr.bf16.mxu1 %v6006_v51 }
 0x680   :  { %2389 = vmatpush1.bf16.msra.mxu0 %v6007_v53  ;;  %2430 = vmatpush1.bf16.msra.mxu1 %v6008_v22  ;;  %v6013_v22 = vld [vmem:[#allocation104_spill] sm:$0xff] }
 0x681   :  { %2462 = vmatprep.subr.bf16.mxu0 %v6009_v55  ;;  %2503 = vmatprep.subr.bf16.mxu1 %v6010_v6  ;;  %v6014_v6 = vld [vmem:[#allocation105_spill] sm:$0xff] }
 0x6f6   :  { %v2182_v10 = vpop.f32.mrb[52].mxu0  ;;  %v2223_v45 = vpop.f32.mrb[52].mxu1 }
 0x6f7   :  { %v2183_v49 = vadd.f32 %v2182_v10, %v6011_v15  ;;  %v2184_v48 = vpop.f32.mrb[53].mxu0  ;;  %v2225_v52 = vpop.f32.mrb[53].mxu1  ;;  %v2224_v26 = vadd.f32 %v2223_v45, %v6013_v22 }
 0x6f8   :  { %v2185_v23 = vadd.f32 %v2184_v48, %v6012_v7  ;;  %v2186_v11 = vpop.f32.mrb[54].mxu0  ;;  %v2227_v50 = vpop.f32.mrb[54].mxu1  ;;  %v2226_v55 = vadd.f32 %v2225_v52, %v6014_v6 }
 0x6f9   :  { %v2230_v12 = vmul.f32 0.5, %v2183_v49  ;;  %v2187_v51 = vpop.f32.mrb[55].mxu0  ;;  %v2228_v4 = vpop.f32.mrb[55].mxu1 }
 0x6fa   :  { %v2234_v53 = vmul.f32 0.5, %v2185_v23  ;;  %v2239_v13 = vmul.f32 0.5, %v2226_v55  ;;  %v6015_v51 = vld [vmem:[#allocation97_spill] sm:$0xff]  ;;  %v6017_v55 = vld [vmem:[#allocation39_spill] sm:$0xff] }
 0x6fb   :  { %3213 = vtanh.f32 %v2230_v12 }
 0x6fc   :  { %3215 = vtanh.f32 %v2234_v53 }
 0x6fd   :  { %3217 = vtanh.f32 %v2224_v26 }
 0x6fe   :  { %3219 = vtanh.f32 %v2239_v13  ;;  %v6018_v13 = vld [vmem:[#allocation41_spill] sm:$0xff] }
 0x705   :  { %v3214_v8 = vpop.eup %3213 }
 0x706   :  { %v3216_v10 = vpop.eup %3215  ;;  %v2232_v15 = vmul.f32 0.5, %v3214_v8 }
 0x707   :  { %v2236_v61 = vmul.f32 0.5, %v3216_v10  ;;  %v3218_v11 = vpop.eup %3217 }
 0x708   :  { %v2233_v48 = vadd.f32 0.5, %v2232_v15  ;;  %v3220_v12 = vpop.eup %3219 }
 0x709   :  { %v2237_v50 = vadd.f32 0.5, %v2236_v61  ;;  %v2241_v26 = vmul.f32 0.5, %v3220_v12 }
 0x70a   :  { %v2244_v49 = vmul.f32 %v3218_v11, %v2233_v48 }
 0x70b   :  { %v2243_v4 = vmul.f32 %v2237_v50, %v6015_v51  ;;  %v2242_v10 = vadd.f32 0.5, %v2241_v26 }
 0x70d   :  { %v5131_v23 = vadd.f32 %v2244_v49, %v2243_v4 }
 0x70f   :  { %6016 = vst [vmem:[#allocation98_spill] sm:$0xff] %v5131_v23  ;;  %3221 = vtanh.f32 %v5131_v23  ;;  %v6019_v23 = vld [vmem:[#allocation40_spill] sm:$0xff] }
 0x716   :  { %v2286_v53 = vpop.f32.mrb[56].mxu0  ;;  %v2327_v52 = vpop.f32.mrb[56].mxu1 }
 0x717   :  { %v2334_v45 = vadd.f32 %v2286_v53, %v6017_v55  ;;  %v2288_v6 = vpop.f32.mrb[57].mxu0  ;;  %v2329_v8 = vpop.f32.mrb[57].mxu1  ;;  %v2336_v12 = vadd.f32 %v2327_v52, %v6019_v23  ;;  %v6020_v53 = vld [vmem:[#allocation42_spill] sm:$0xff] }
 0x718   :  { %v2335_v15 = vadd.f32 %v2288_v6, %v6018_v13  ;;  %v2290_v22 = vpop.f32.mrb[58].mxu0  ;;  %v2331_v61 = vpop.f32.mrb[58].mxu1  ;;  %v2337_v26 = vadd.f32 %v2329_v8, %v6020_v53  ;;  %v5183_v53 = vld [vmem:[#allocation2 + $0x10] sm:$0xff] }
 0x719   :  { %v3222_v48 = vpop.eup %3221  ;;  %v2338_v11 = vmul.f32 0.5, %v2334_v45  ;;  %v2291_v50 = vpop.f32.mrb[59].mxu0 }
 0x71a   :  { %v2332_v49 = vpop.f32.mrb[59].mxu1  ;;  %v2342_v51 = vmul.f32 0.5, %v2335_v15  ;;  %v2247_v4 = vmul.f32 %v3222_v48, %v2242_v10  ;;  %v2347_v55 = vmul.f32 0.5, %v2337_v26  ;;  %v5186_v26 = vld [vmem:[#allocation2 + $0x28] sm:$0xff] }
 0x71b   :  { %3223 = vtanh.f32 %v2338_v11 }
 0x71c   :  { %3225 = vtanh.f32 %v2342_v51  ;;  %v2357_v7 = vpack.c.bf16 %v2247_v4, %v2247_v4  ;;  %v5177_v4 = vld [vmem:[#allocation2 + $0x18] sm:$0xff] }
 0x71d   :  { %3227 = vtanh.f32 %v2336_v12  ;;  %v5180_v12 = vld [vmem:[#allocation2] sm:$0xff] }
 0x71e   :  { %2390 = vmatprep.mubr.bf16.mxu0 %v2357_v7  ;;  %2431 = vmatprep.mubr.bf16.mxu1 %v2357_v7  ;;  %3229 = vtanh.f32 %v2347_v55  ;;  %v5189_v55 = vld [vmem:[#allocation2 + $0x38] sm:$0xff] }
 0x725   :  { %v3224_v6 = vpop.eup %3223 }
 0x726   :  { %v3226_v22 = vpop.eup %3225  ;;  %v2340_v13 = vmul.f32 0.5, %v3224_v6  ;;  %v5192_v6 = vld [vmem:[#allocation2 + $0x20] sm:$0xff] }
 0x727   :  { %v2344_v61 = vmul.f32 0.5, %v3226_v22  ;;  %v3228_v50 = vpop.eup %3227  ;;  %v5195_v22 = vld [vmem:[#allocation2 + $0x30] sm:$0xff] }
 0x728   :  { %v2341_v45 = vadd.f32 0.5, %v2340_v13  ;;  %v3230_v7 = vpop.eup %3229  ;;  %v5198_v13 = vld [vmem:[#allocation2 + $0x48] sm:$0xff] }
 0x729   :  { %v2345_v15 = vadd.f32 0.5, %v2344_v61  ;;  %v2349_v52 = vmul.f32 0.5, %v3230_v7  ;;  %v5201_v61 = vld [vmem:[#allocation2 + $0x58] sm:$0xff]  ;;  %v6036_v7 = vld [vmem:[#allocation70_spill] sm:$0xff] }
 0x72a   :  { %v2352_v10 = vmul.f32 %v3228_v50, %v2341_v45  ;;  %v5204_v45 = vld [vmem:[#allocation2 + $0x40] sm:$0xff]  ;;  %v5207_v50 = vld [vmem:[#allocation2 + $0x50] sm:$0xff] }
 0x72b   :  { %v2351_v48 = vmul.f32 %v2345_v15, %v5025_v0  ;;  %v2350_v11 = vadd.f32 0.5, %v2349_v52  ;;  %v5174_v0 = vld [vmem:[#allocation2 + $0x8] sm:$0xff]  ;;  %6021 = vst [vmem:[#allocation100_spill] sm:$0xff] %v5207_v50  ;;  %v6037_v52 = vld [vmem:[#allocation72_spill] sm:$0xff] }
 0x72c   :  { %v5210_v15 = vld [vmem:[#allocation2 + $0x68] sm:$0xff] }
 0x72d   :  { %v5139_v23 = vadd.f32 %v2352_v10, %v2351_v48  ;;  %6022 = vst [vmem:[#allocation99_spill] sm:$0xff] %v5210_v15  ;;  %v5213_v10 = vld [vmem:[#allocation2 + $0x78] sm:$0xff] }
 0x72e   :  { %6023 = vst [vmem:[#allocation101_spill] sm:$0xff] %v5213_v10  ;;  %v6035_v48 = vld [vmem:[#allocation69_spill] sm:$0xff] }
 0x72f   :  { %3231 = vtanh.f32 %v5139_v23 }
 0x739   :  { %v3232_v8 = vpop.eup %3231 }
 0x73a   :  { %v2355_v49 = vmul.f32 %v3232_v8, %v2350_v11  ;;  %v6038_v11 = vld [vmem:[#allocation71_spill] sm:$0xff]  ;;  %v6039_v8 = vld [vmem:[#allocation73_spill] sm:$0xff] }
 0x73c   :  { %v2356_v51 = vpack.c.bf16 %v2355_v49, %v2355_v49  ;;  %v6040_v49 = vld [vmem:[#allocation74_spill] sm:$0xff] }
 0x73e   :  { %2391 = vmatmul.mubr.bf16.vlgmr.msra.gmra.mrb[60].mxu0 %v2356_v51  ;;  %2432 = vmatmul.mubr.bf16.vlgmr.msra.gmra.mrb[60].mxu1 %v2356_v51 }
 0x73f   :  { %2463 = vmatpush1.bf16.msra.mxu0 %v3905_v16  ;;  %2504 = vmatpush1.bf16.msra.mxu1 %v3910_v17 }
 0x740   :  { %2464 = vmatprep.subr.bf16.mxu0 %v3917_v18  ;;  %2505 = vmatprep.subr.bf16.mxu1 %v3922_v19 }
 0x741   :  { %2494 = vmatprep.mubr.bf16.mxu0 %v5720_v62  ;;  %2535 = vmatprep.mubr.bf16.mxu1 %v5720_v62 }
 0x743   :  { %2465 = vmatpush1.bf16.msra.mxu0 %v3927_v20  ;;  %2506 = vmatpush1.bf16.msra.mxu1 %v3932_v21 }
 0x744   :  { %2466 = vmatprep.subr.bf16.mxu0 %v3947_v24  ;;  %2507 = vmatprep.subr.bf16.mxu1 %v3954_v25 }
 0x747   :  { %2467 = vmatpush1.bf16.msra.mxu0 %v3963_v27  ;;  %2508 = vmatpush1.bf16.msra.mxu1 %v3968_v28 }
 0x748   :  { %2468 = vmatprep.subr.bf16.mxu0 %v3975_v29  ;;  %2509 = vmatprep.subr.bf16.mxu1 %v3980_v30 }
 0x74b   :  { %2469 = vmatpush1.bf16.msra.mxu0 %v3985_v31  ;;  %2510 = vmatpush1.bf16.msra.mxu1 %v3992_v32 }
 0x74c   :  { %2470 = vmatprep.subr.bf16.mxu0 %v4007_v35  ;;  %2511 = vmatprep.subr.bf16.mxu1 %v4012_v36 }
 0x74f   :  { %2471 = vmatpush1.bf16.msra.mxu0 %v4021_v38  ;;  %2512 = vmatpush1.bf16.msra.mxu1 %v4026_v39 }
 0x750   :  { %2472 = vmatprep.subr.bf16.mxu0 %v4033_v40  ;;  %2513 = vmatprep.subr.bf16.mxu1 %v4038_v41 }
 0x753   :  { %2473 = vmatpush1.bf16.msra.mxu0 %v4045_v42  ;;  %2514 = vmatpush1.bf16.msra.mxu1 %v4052_v43 }
 0x754   :  { %2474 = vmatprep.subr.bf16.mxu0 %v4065_v46  ;;  %2515 = vmatprep.subr.bf16.mxu1 %v4070_v47 }
 0x757   :  { %2475 = vmatpush1.bf16.msra.mxu0 %v4079_v57  ;;  %2516 = vmatpush1.bf16.msra.mxu1 %v4084_v58 }
 0x758   :  { %2476 = vmatprep.subr.bf16.mxu0 %v4091_v59  ;;  %2517 = vmatprep.subr.bf16.mxu1 %v4096_v60 }
 0x75b   :  { %2477 = vmatpush1.bf16.msra.mxu0 %v4105_v1  ;;  %2518 = vmatpush1.bf16.msra.mxu1 %v4110_v2 }
 0x75c   :  { %2568 = vmatprep.subr.bf16.mxu0 %v5174_v0  ;;  %2609 = vmatprep.subr.bf16.mxu1 %v5177_v4 }
 0x75e   :  { %2495 = vmatmul.mubr.bf16.vlgmr.msra.gmra.mrb[64].mxu0 %v2356_v51  ;;  %2536 = vmatmul.mubr.bf16.vlgmr.msra.gmra.mrb[64].mxu1 %v2356_v51  ;;  %v6041_v51 = vld [vmem:[#allocation76_spill] sm:$0xff] }
 0x75f   :  { %2569 = vmatpush1.bf16.msra.mxu0 %v5180_v12  ;;  %2610 = vmatpush1.bf16.msra.mxu1 %v5183_v53 }
 0x760   :  { %2570 = vmatprep.subr.bf16.mxu0 %v5186_v26  ;;  %2611 = vmatprep.subr.bf16.mxu1 %v5189_v55 }
 0x763   :  { %2571 = vmatpush1.bf16.msra.mxu0 %v5192_v6  ;;  %2612 = vmatpush1.bf16.msra.mxu1 %v5195_v22 }
 0x764   :  { %2572 = vmatprep.subr.bf16.mxu0 %v5198_v13  ;;  %2613 = vmatprep.subr.bf16.mxu1 %v5201_v61 }
 0x767   :  { %2573 = vmatpush1.bf16.msra.mxu0 %v5204_v45  ;;  %2614 = vmatpush1.bf16.msra.mxu1 %v5207_v50 }
 0x768   :  { %2574 = vmatprep.subr.bf16.mxu0 %v5210_v15  ;;  %2615 = vmatprep.subr.bf16.mxu1 %v5213_v10 }
 0x76b   :  { %2575 = vmatpush1.bf16.msra.mxu0 %v5959_v33  ;;  %2616 = vmatpush1.bf16.msra.mxu1 %v5960_v5  ;;  %v6024_v33 = vld [vmem:[#allocation64_spill] sm:$0xff]  ;;  %v6025_v5 = vld [vmem:[#allocation63_spill] sm:$0xff] }
 0x76c   :  { %2576 = vmatprep.subr.bf16.mxu0 %v5961_v63  ;;  %2617 = vmatprep.subr.bf16.mxu1 %v5962_v3  ;;  %v6026_v63 = vld [vmem:[#allocation19_spill] sm:$0xff] }
 0x76d   :  { %v6027_v3 = vld [vmem:[#allocation27_spill] sm:$0xff] }
 0x76f   :  { %2577 = vmatpush1.bf16.msra.mxu0 %v5963_v9  ;;  %2618 = vmatpush1.bf16.msra.mxu1 %v5964_v54  ;;  %v6028_v9 = vld [vmem:[#allocation29_spill] sm:$0xff]  ;;  %v6029_v54 = vld [vmem:[#allocation28_spill] sm:$0xff] }
 0x770   :  { %2578 = vmatprep.subr.bf16.mxu0 %v5965_v34  ;;  %2619 = vmatprep.subr.bf16.mxu1 %v5966_v44  ;;  %v6030_v34 = vld [vmem:[#allocation30_spill] sm:$0xff]  ;;  %v6031_v44 = vld [vmem:[#allocation65_spill] sm:$0xff] }
 0x773   :  { %2579 = vmatpush1.bf16.msra.mxu0 %v5967_v14  ;;  %2620 = vmatpush1.bf16.msra.mxu1 %v5968_v37  ;;  %v6032_v14 = vld [vmem:[#allocation66_spill] sm:$0xff]  ;;  %v6033_v37 = vld [vmem:[#allocation68_spill] sm:$0xff] }
 0x774   :  { %2580 = vmatprep.subr.bf16.mxu0 %v5969_v56  ;;  %2621 = vmatprep.subr.bf16.mxu1 %v6024_v33  ;;  %v6034_v56 = vld [vmem:[#allocation67_spill] sm:$0xff] }
 0x775   :  { %v6042_v33 = vld [vmem:[#allocation75_spill] sm:$0xff] }
 0x777   :  { %2581 = vmatpush1.bf16.msra.mxu0 %v6025_v5  ;;  %2622 = vmatpush1.bf16.msra.mxu1 %v6026_v63  ;;  %v6043_v5 = vld [vmem:[#allocation77_spill] sm:$0xff]  ;;  %v6044_v63 = vld [vmem:[#allocation78_spill] sm:$0xff] }
 0x778   :  { %2582 = vmatprep.subr.bf16.mxu0 %v6027_v3  ;;  %2623 = vmatprep.subr.bf16.mxu1 %v6028_v9  ;;  %v6045_v3 = vld [vmem:[#allocation80_spill] sm:$0xff]  ;;  %v6046_v9 = vld [vmem:[#allocation79_spill] sm:$0xff] }
 0x77b   :  { %2583 = vmatpush1.bf16.msra.mxu0 %v6029_v54  ;;  %2624 = vmatpush1.bf16.msra.mxu1 %v6030_v34  ;;  %v6047_v54 = vld [vmem:[#allocation81_spill] sm:$0xff]  ;;  %v6048_v34 = vld [vmem:[#allocation82_spill] sm:$0xff] }
 0x77c   :  { %2584 = vmatprep.subr.bf16.mxu0 %v6031_v44  ;;  %2625 = vmatprep.subr.bf16.mxu1 %v6032_v14  ;;  %v6049_v44 = vld [vmem:[#allocation84_spill] sm:$0xff]  ;;  %v6050_v14 = vld [vmem:[#allocation83_spill] sm:$0xff] }
 0x77f   :  { %2585 = vmatpush1.bf16.msra.mxu0 %v6033_v37  ;;  %2626 = vmatpush1.bf16.msra.mxu1 %v6034_v56  ;;  %v6051_v37 = vld [vmem:[#allocation85_spill] sm:$0xff]  ;;  %v6052_v56 = vld [vmem:[#allocation86_spill] sm:$0xff] }
 0x780   :  { %2586 = vmatprep.subr.bf16.mxu0 %v6035_v48  ;;  %2627 = vmatprep.subr.bf16.mxu1 %v6036_v7  ;;  %v6053_v48 = vld [vmem:[#allocation88_spill] sm:$0xff]  ;;  %v6054_v7 = vld [vmem:[#allocation87_spill] sm:$0xff] }
 0x783   :  { %2587 = vmatpush1.bf16.msra.mxu0 %v6037_v52  ;;  %2628 = vmatpush1.bf16.msra.mxu1 %v6038_v11  ;;  %v6055_v52 = vld [vmem:[#allocation89_spill] sm:$0xff]  ;;  %v6056_v11 = vld [vmem:[#allocation90_spill] sm:$0xff] }
 0x784   :  { %2588 = vmatprep.subr.bf16.mxu0 %v6039_v8  ;;  %2629 = vmatprep.subr.bf16.mxu1 %v6040_v49  ;;  %v6057_v8 = vld [vmem:[#allocation92_spill] sm:$0xff]  ;;  %v6058_v49 = vld [vmem:[#allocation91_spill] sm:$0xff] }
 0x787   :  { %2589 = vmatpush1.bf16.msra.mxu0 %v6041_v51  ;;  %2630 = vmatpush1.bf16.msra.mxu1 %v6042_v33  ;;  %v6059_v51 = vld [vmem:[#allocation93_spill] sm:$0xff]  ;;  %v6060_v33 = vld [vmem:[#allocation94_spill] sm:$0xff] }
 0x788   :  { %2590 = vmatprep.subr.bf16.mxu0 %v6043_v5  ;;  %2631 = vmatprep.subr.bf16.mxu1 %v6044_v63  ;;  %v6061_v5 = vld [vmem:[#allocation96_spill] sm:$0xff]  ;;  %v6062_v63 = vld [vmem:[#allocation95_spill] sm:$0xff] }
 0x78b   :  { %2591 = vmatpush1.bf16.msra.mxu0 %v6045_v3  ;;  %2632 = vmatpush1.bf16.msra.mxu1 %v6046_v9  ;;  %v6063_v3 = vld [vmem:[#allocation21_spill] sm:$0xff]  ;;  %v6064_v9 = vld [vmem:[#allocation22_spill] sm:$0xff] }
 0x78c   :  { %2592 = vmatprep.subr.bf16.mxu0 %v6047_v54  ;;  %2633 = vmatprep.subr.bf16.mxu1 %v6048_v34 }
 0x78f   :  { %2593 = vmatpush1.bf16.msra.mxu0 %v6049_v44  ;;  %2634 = vmatpush1.bf16.msra.mxu1 %v6050_v14  ;;  %v6065_v44 = vld [vmem:[#allocation18_spill] sm:$0xff] }
 0x790   :  { %2594 = vmatprep.subr.bf16.mxu0 %v6051_v37  ;;  %2635 = vmatprep.subr.bf16.mxu1 %v6052_v56 }
 0x793   :  { %2595 = vmatpush1.bf16.msra.mxu0 %v6053_v48  ;;  %2636 = vmatpush1.bf16.msra.mxu1 %v6054_v7  ;;  %v6066_v48 = vld [vmem:[#allocation20_spill] sm:$0xff] }
 0x794   :  { %2596 = vmatprep.subr.bf16.mxu0 %v6055_v52  ;;  %2637 = vmatprep.subr.bf16.mxu1 %v6056_v11 }
 0x797   :  { %2597 = vmatpush1.bf16.msra.mxu0 %v6057_v8  ;;  %2638 = vmatpush1.bf16.msra.mxu1 %v6058_v49 }
 0x798   :  { %2598 = vmatprep.subr.bf16.mxu0 %v6059_v51  ;;  %2639 = vmatprep.subr.bf16.mxu1 %v6060_v33 }
 0x79b   :  { %2599 = vmatpush1.bf16.msra.mxu0 %v6061_v5  ;;  %2640 = vmatpush1.bf16.msra.mxu1 %v6062_v63  ;;  %v6067_v5 = vld [vmem:[#allocation104_spill] sm:$0xff] }
 0x79c   :  { %2672 = vmatprep.subr.bf16.mxu0 %v6063_v3  ;;  %2713 = vmatprep.subr.bf16.mxu1 %v6064_v9  ;;  %v6068_v3 = vld [vmem:[#allocation105_spill] sm:$0xff] }
 0x811   :  { %v2392_v54 = vpop.f32.mrb[60].mxu0  ;;  %v2433_v34 = vpop.f32.mrb[60].mxu1 }
 0x812   :  { %v2393_v14 = vadd.f32 %v2392_v54, %v6065_v44  ;;  %v2394_v37 = vpop.f32.mrb[61].mxu0  ;;  %v2435_v56 = vpop.f32.mrb[61].mxu1  ;;  %v2434_v63 = vadd.f32 %v2433_v34, %v6067_v5 }
 0x813   :  { %v2395_v7 = vadd.f32 %v2394_v37, %v6066_v48  ;;  %v2396_v52 = vpop.f32.mrb[62].mxu0  ;;  %v2437_v11 = vpop.f32.mrb[62].mxu1  ;;  %v2436_v9 = vadd.f32 %v2435_v56, %v6068_v3 }
 0x814   :  { %v2440_v8 = vmul.f32 0.5, %v2393_v14  ;;  %v2397_v49 = vpop.f32.mrb[63].mxu0  ;;  %v2438_v51 = vpop.f32.mrb[63].mxu1 }
 0x815   :  { %v2444_v33 = vmul.f32 0.5, %v2395_v7  ;;  %v2449_v10 = vmul.f32 0.5, %v2436_v9  ;;  %v6069_v49 = vld [vmem:[#allocation98_spill] sm:$0xff] }
 0x816   :  { %3233 = vtanh.f32 %v2440_v8 }
 0x817   :  { %3235 = vtanh.f32 %v2444_v33 }
 0x818   :  { %3237 = vtanh.f32 %v2434_v63  ;;  %v6071_v63 = vld [vmem:[#allocation43_spill] sm:$0xff] }
 0x819   :  { %3239 = vtanh.f32 %v2449_v10  ;;  %v6072_v10 = vld [vmem:[#allocation45_spill] sm:$0xff] }
 0x820   :  { %v3234_v15 = vpop.eup %3233 }
 0x821   :  { %v3236_v54 = vpop.eup %3235  ;;  %v2442_v44 = vmul.f32 0.5, %v3234_v15 }
 0x822   :  { %v2446_v50 = vmul.f32 0.5, %v3236_v54  ;;  %v3238_v52 = vpop.eup %3237 }
 0x823   :  { %v2443_v37 = vadd.f32 0.5, %v2442_v44  ;;  %v3240_v34 = vpop.eup %3239 }
 0x824   :  { %v2447_v11 = vadd.f32 0.5, %v2446_v50  ;;  %v2451_v8 = vmul.f32 0.5, %v3240_v34 }
 0x825   :  { %v2454_v14 = vmul.f32 %v3238_v52, %v2443_v37 }
 0x826   :  { %v2453_v51 = vmul.f32 %v2447_v11, %v6069_v49  ;;  %v2452_v54 = vadd.f32 0.5, %v2451_v8 }
 0x828   :  { %v5273_v7 = vadd.f32 %v2454_v14, %v2453_v51 }
 0x82a   :  { %6070 = vst [vmem:[#allocation102_spill] sm:$0xff] %v5273_v7  ;;  %3241 = vtanh.f32 %v5273_v7  ;;  %v6073_v7 = vld [vmem:[#allocation44_spill] sm:$0xff] }
 0x831   :  { %v2496_v33 = vpop.f32.mrb[64].mxu0  ;;  %v2537_v56 = vpop.f32.mrb[64].mxu1 }
 0x832   :  { %v2544_v9 = vadd.f32 %v2496_v33, %v6071_v63  ;;  %v2498_v3 = vpop.f32.mrb[65].mxu0  ;;  %v2539_v15 = vpop.f32.mrb[65].mxu1  ;;  %v2546_v34 = vadd.f32 %v2537_v56, %v6073_v7  ;;  %v6074_v33 = vld [vmem:[#allocation46_spill] sm:$0xff] }
 0x833   :  { %v2545_v44 = vadd.f32 %v2498_v3, %v6072_v10  ;;  %v2500_v5 = vpop.f32.mrb[66].mxu0  ;;  %v2541_v50 = vpop.f32.mrb[66].mxu1  ;;  %v2547_v8 = vadd.f32 %v2539_v15, %v6074_v33  ;;  %v3403_v33 = vld [vmem:[#allocation2 + $0x1c8] sm:$0xff] }
 0x834   :  { %v3242_v37 = vpop.eup %3241  ;;  %v2548_v52 = vmul.f32 0.5, %v2544_v9  ;;  %v2501_v11 = vpop.f32.mrb[67].mxu0 }
 0x835   :  { %v2542_v14 = vpop.f32.mrb[67].mxu1  ;;  %v2552_v49 = vmul.f32 0.5, %v2545_v44  ;;  %v2457_v51 = vmul.f32 %v3242_v37, %v2452_v54  ;;  %v2557_v63 = vmul.f32 0.5, %v2547_v8  ;;  %v3404_v8 = vld [vmem:[#allocation2 + $0x1d8] sm:$0xff] }
 0x836   :  { %3243 = vtanh.f32 %v2548_v52 }
 0x837   :  { %3245 = vtanh.f32 %v2552_v49  ;;  %v2567_v48 = vpack.c.bf16 %v2457_v51, %v2457_v51  ;;  %v3401_v51 = vld [vmem:[#allocation2 + $0x1a0] sm:$0xff] }
 0x838   :  { %3247 = vtanh.f32 %v2546_v34  ;;  %v3402_v34 = vld [vmem:[#allocation2 + $0x1b0] sm:$0xff] }
 0x839   :  { %2600 = vmatprep.mubr.bf16.mxu0 %v2567_v48  ;;  %2641 = vmatprep.mubr.bf16.mxu1 %v2567_v48  ;;  %3249 = vtanh.f32 %v2557_v63  ;;  %v3405_v63 = vld [vmem:[#allocation2 + $0x1c0] sm:$0xff] }
 0x840   :  { %v3244_v3 = vpop.eup %3243 }
 0x841   :  { %v3246_v5 = vpop.eup %3245  ;;  %v2550_v10 = vmul.f32 0.5, %v3244_v3  ;;  %v3406_v3 = vld [vmem:[#allocation2 + $0x1d0] sm:$0xff] }
 0x842   :  { %v2554_v50 = vmul.f32 0.5, %v3246_v5  ;;  %v3248_v11 = vpop.eup %3247  ;;  %v3407_v5 = vld [vmem:[#allocation2 + $0x1e8] sm:$0xff] }
 0x843   :  { %v2551_v9 = vadd.f32 0.5, %v2550_v10  ;;  %v3250_v48 = vpop.eup %3249  ;;  %v3408_v10 = vld [vmem:[#allocation2 + $0x1f8] sm:$0xff] }
 0x844   :  { %v2555_v44 = vadd.f32 0.5, %v2554_v50  ;;  %v2559_v56 = vmul.f32 0.5, %v3250_v48  ;;  %v3409_v50 = vld [vmem:[#allocation2 + $0x1e0] sm:$0xff] }
 0x845   :  { %v2562_v54 = vmul.f32 %v3248_v11, %v2551_v9  ;;  %v3410_v9 = vld [vmem:[#allocation2 + $0x1f0] sm:$0xff] }
 0x846   :  { %v2561_v37 = vmul.f32 %v2555_v44, %v5139_v23  ;;  %v2560_v52 = vadd.f32 0.5, %v2559_v56  ;;  %v3389_v23 = vld [vmem:[#allocation2 + $0x140] sm:$0xff] }
 0x848   :  { %v5281_v7 = vadd.f32 %v2562_v54, %v2561_v37  ;;  %v6078_v54 = vld [vmem:[#allocation18_spill] sm:$0xff] }
 0x84a   :  { %3251 = vtanh.f32 %v5281_v7 }
 0x854   :  { %v3252_v15 = vpop.eup %3251 }
 0x855   :  { %v2565_v14 = vmul.f32 %v3252_v15, %v2560_v52  ;;  %v6079_v52 = vld [vmem:[#allocation20_spill] sm:$0xff] }
 0x857   :  { %v2566_v49 = vpack.c.bf16 %v2565_v14, %v2565_v14 }
 0x859   :  { %2601 = vmatmul.mubr.bf16.vlgmr.msra.gmra.mrb[68].mxu0 %v2566_v49  ;;  %2642 = vmatmul.mubr.bf16.vlgmr.msra.gmra.mrb[68].mxu1 %v2566_v49 }
 0x85a   :  { %2673 = vmatpush1.bf16.msra.mxu0 %v3905_v16  ;;  %2714 = vmatpush1.bf16.msra.mxu1 %v3910_v17  ;;  %v6076_v16 = vld [vmem:[#allocation99_spill] sm:$0xff]  ;;  %v6077_v17 = vld [vmem:[#allocation101_spill] sm:$0xff] }
 0x85b   :  { %2674 = vmatprep.subr.bf16.mxu0 %v3917_v18  ;;  %2715 = vmatprep.subr.bf16.mxu1 %v3922_v19  ;;  %v3361_v18 = vld [vmem:[#allocation2 + $0x60] sm:$0xff]  ;;  %v3362_v19 = vld [vmem:[#allocation2 + $0x70] sm:$0xff] }
 0x85c   :  { %2704 = vmatprep.mubr.bf16.mxu0 %v5720_v62  ;;  %2745 = vmatprep.mubr.bf16.mxu1 %v5720_v62  ;;  %v6075_v62 = vld [vmem:[#allocation100_spill] sm:$0xff] }
 0x85e   :  { %2675 = vmatpush1.bf16.msra.mxu0 %v3927_v20  ;;  %2716 = vmatpush1.bf16.msra.mxu1 %v3932_v21  ;;  %v3363_v20 = vld [vmem:[#allocation2 + $0x88] sm:$0xff]  ;;  %v3364_v21 = vld [vmem:[#allocation2 + $0x98] sm:$0xff] }
 0x85f   :  { %2676 = vmatprep.subr.bf16.mxu0 %v3947_v24  ;;  %2717 = vmatprep.subr.bf16.mxu1 %v3954_v25  ;;  %v3365_v24 = vld [vmem:[#allocation2 + $0x80] sm:$0xff]  ;;  %v3366_v25 = vld [vmem:[#allocation2 + $0x90] sm:$0xff] }
 0x862   :  { %2677 = vmatpush1.bf16.msra.mxu0 %v3963_v27  ;;  %2718 = vmatpush1.bf16.msra.mxu1 %v3968_v28  ;;  %v3367_v27 = vld [vmem:[#allocation2 + $0xa8] sm:$0xff]  ;;  %v3368_v28 = vld [vmem:[#allocation2 + $0xb8] sm:$0xff] }
 0x863   :  { %2678 = vmatprep.subr.bf16.mxu0 %v3975_v29  ;;  %2719 = vmatprep.subr.bf16.mxu1 %v3980_v30  ;;  %v3369_v29 = vld [vmem:[#allocation2 + $0xa0] sm:$0xff]  ;;  %v3370_v30 = vld [vmem:[#allocation2 + $0xb0] sm:$0xff] }
 0x866   :  { %2679 = vmatpush1.bf16.msra.mxu0 %v3985_v31  ;;  %2720 = vmatpush1.bf16.msra.mxu1 %v3992_v32  ;;  %v3371_v31 = vld [vmem:[#allocation2 + $0xc8] sm:$0xff]  ;;  %v3372_v32 = vld [vmem:[#allocation2 + $0xd8] sm:$0xff] }
 0x867   :  { %2680 = vmatprep.subr.bf16.mxu0 %v4007_v35  ;;  %2721 = vmatprep.subr.bf16.mxu1 %v4012_v36  ;;  %v3373_v35 = vld [vmem:[#allocation2 + $0xc0] sm:$0xff]  ;;  %v3374_v36 = vld [vmem:[#allocation2 + $0xd0] sm:$0xff] }
 0x86a   :  { %2681 = vmatpush1.bf16.msra.mxu0 %v4021_v38  ;;  %2722 = vmatpush1.bf16.msra.mxu1 %v4026_v39  ;;  %v3375_v38 = vld [vmem:[#allocation2 + $0xe8] sm:$0xff]  ;;  %v3376_v39 = vld [vmem:[#allocation2 + $0xf8] sm:$0xff] }
 0x86b   :  { %2682 = vmatprep.subr.bf16.mxu0 %v4033_v40  ;;  %2723 = vmatprep.subr.bf16.mxu1 %v4038_v41  ;;  %v3377_v40 = vld [vmem:[#allocation2 + $0xe0] sm:$0xff]  ;;  %v3378_v41 = vld [vmem:[#allocation2 + $0xf0] sm:$0xff] }
 0x86e   :  { %2683 = vmatpush1.bf16.msra.mxu0 %v4045_v42  ;;  %2724 = vmatpush1.bf16.msra.mxu1 %v4052_v43  ;;  %v3379_v42 = vld [vmem:[#allocation2 + $0x108] sm:$0xff]  ;;  %v3380_v43 = vld [vmem:[#allocation2 + $0x118] sm:$0xff] }
 0x86f   :  { %2684 = vmatprep.subr.bf16.mxu0 %v4065_v46  ;;  %2725 = vmatprep.subr.bf16.mxu1 %v4070_v47  ;;  %v3381_v46 = vld [vmem:[#allocation2 + $0x100] sm:$0xff]  ;;  %v3382_v47 = vld [vmem:[#allocation2 + $0x110] sm:$0xff] }
 0x872   :  { %2685 = vmatpush1.bf16.msra.mxu0 %v4079_v57  ;;  %2726 = vmatpush1.bf16.msra.mxu1 %v4084_v58  ;;  %v3383_v57 = vld [vmem:[#allocation2 + $0x128] sm:$0xff]  ;;  %v3384_v58 = vld [vmem:[#allocation2 + $0x138] sm:$0xff] }
 0x873   :  { %2686 = vmatprep.subr.bf16.mxu0 %v4091_v59  ;;  %2727 = vmatprep.subr.bf16.mxu1 %v4096_v60  ;;  %v3385_v59 = vld [vmem:[#allocation2 + $0x120] sm:$0xff]  ;;  %v3386_v60 = vld [vmem:[#allocation2 + $0x130] sm:$0xff] }
 0x876   :  { %2687 = vmatpush1.bf16.msra.mxu0 %v4105_v1  ;;  %2728 = vmatpush1.bf16.msra.mxu1 %v4110_v2  ;;  %v3387_v1 = vld [vmem:[#allocation2 + $0x148] sm:$0xff]  ;;  %v3388_v2 = vld [vmem:[#allocation2 + $0x158] sm:$0xff] }
 0x877   :  { %2778 = vmatprep.subr.bf16.mxu0 %v5174_v0  ;;  %2819 = vmatprep.subr.bf16.mxu1 %v5177_v4  ;;  %v3390_v0 = vld [vmem:[#allocation2 + $0x150] sm:$0xff]  ;;  %v3391_v4 = vld [vmem:[#allocation2 + $0x168] sm:$0xff] }
 0x879   :  { %2705 = vmatmul.mubr.bf16.vlgmr.msra.gmra.mrb[72].mxu0 %v2566_v49  ;;  %2746 = vmatmul.mubr.bf16.vlgmr.msra.gmra.mrb[72].mxu1 %v2566_v49 }
 0x87a   :  { %2779 = vmatpush1.bf16.msra.mxu0 %v5180_v12  ;;  %2820 = vmatpush1.bf16.msra.mxu1 %v5183_v53  ;;  %v3392_v12 = vld [vmem:[#allocation2 + $0x178] sm:$0xff]  ;;  %v3393_v53 = vld [vmem:[#allocation2 + $0x160] sm:$0xff] }
 0x87b   :  { %2780 = vmatprep.subr.bf16.mxu0 %v5186_v26  ;;  %2821 = vmatprep.subr.bf16.mxu1 %v5189_v55  ;;  %v3394_v26 = vld [vmem:[#allocation2 + $0x170] sm:$0xff]  ;;  %v3395_v55 = vld [vmem:[#allocation2 + $0x188] sm:$0xff] }
 0x87e   :  { %2781 = vmatpush1.bf16.msra.mxu0 %v5192_v6  ;;  %2822 = vmatpush1.bf16.msra.mxu1 %v5195_v22  ;;  %v3396_v6 = vld [vmem:[#allocation2 + $0x198] sm:$0xff]  ;;  %v3397_v22 = vld [vmem:[#allocation2 + $0x180] sm:$0xff] }
 0x87f   :  { %2782 = vmatprep.subr.bf16.mxu0 %v5198_v13  ;;  %2823 = vmatprep.subr.bf16.mxu1 %v5201_v61  ;;  %v3398_v13 = vld [vmem:[#allocation2 + $0x190] sm:$0xff]  ;;  %v3399_v61 = vld [vmem:[#allocation2 + $0x1a8] sm:$0xff] }
 0x882   :  { %2783 = vmatpush1.bf16.msra.mxu0 %v5204_v45  ;;  %2824 = vmatpush1.bf16.msra.mxu1 %v6075_v62  ;;  %v3400_v45 = vld [vmem:[#allocation2 + $0x1b8] sm:$0xff] }
 0x883   :  { %2784 = vmatprep.subr.bf16.mxu0 %v6076_v16  ;;  %2825 = vmatprep.subr.bf16.mxu1 %v6077_v17 }
 0x886   :  { %2785 = vmatpush1.bf16.msra.mxu0 %v3361_v18  ;;  %2826 = vmatpush1.bf16.msra.mxu1 %v3362_v19  ;;  %v6080_v19 = vld [vmem:[#allocation104_spill] sm:$0xff] }
 0x887   :  { %2786 = vmatprep.subr.bf16.mxu0 %v3363_v20  ;;  %2827 = vmatprep.subr.bf16.mxu1 %v3364_v21  ;;  %v6081_v21 = vld [vmem:[#allocation105_spill] sm:$0xff] }
 0x88a   :  { %2787 = vmatpush1.bf16.msra.mxu0 %v3365_v24  ;;  %2828 = vmatpush1.bf16.msra.mxu1 %v3366_v25 }
 0x88b   :  { %2788 = vmatprep.subr.bf16.mxu0 %v3367_v27  ;;  %2829 = vmatprep.subr.bf16.mxu1 %v3368_v28 }
 0x88e   :  { %2789 = vmatpush1.bf16.msra.mxu0 %v3369_v29  ;;  %2830 = vmatpush1.bf16.msra.mxu1 %v3370_v30 }
 0x88f   :  { %2790 = vmatprep.subr.bf16.mxu0 %v3371_v31  ;;  %2831 = vmatprep.subr.bf16.mxu1 %v3372_v32 }
 0x892   :  { %2791 = vmatpush1.bf16.msra.mxu0 %v3373_v35  ;;  %2832 = vmatpush1.bf16.msra.mxu1 %v3374_v36 }
 0x893   :  { %2792 = vmatprep.subr.bf16.mxu0 %v3375_v38  ;;  %2833 = vmatprep.subr.bf16.mxu1 %v3376_v39  ;;  %v6082_v38 = vld [vmem:[#allocation102_spill] sm:$0xff] }
 0x896   :  { %2793 = vmatpush1.bf16.msra.mxu0 %v3377_v40  ;;  %2834 = vmatpush1.bf16.msra.mxu1 %v3378_v41 }
 0x897   :  { %2794 = vmatprep.subr.bf16.mxu0 %v3379_v42  ;;  %2835 = vmatprep.subr.bf16.mxu1 %v3380_v43 }
 0x89a   :  { %2795 = vmatpush1.bf16.msra.mxu0 %v3381_v46  ;;  %2836 = vmatpush1.bf16.msra.mxu1 %v3382_v47  ;;  %v6083_v47 = vld [vmem:[#allocation47_spill] sm:$0xff] }
 0x89b   :  { %2796 = vmatprep.subr.bf16.mxu0 %v3383_v57  ;;  %2837 = vmatprep.subr.bf16.mxu1 %v3384_v58 }
 0x89e   :  { %2797 = vmatpush1.bf16.msra.mxu0 %v3385_v59  ;;  %2838 = vmatpush1.bf16.msra.mxu1 %v3386_v60 }
 0x89f   :  { %2798 = vmatprep.subr.bf16.mxu0 %v3387_v1  ;;  %2839 = vmatprep.subr.bf16.mxu1 %v3388_v2  ;;  %v6084_v1 = vld [vmem:[#allocation49_spill] sm:$0xff] }
 0x8a2   :  { %2799 = vmatpush1.bf16.msra.mxu0 %v3389_v23  ;;  %2840 = vmatpush1.bf16.msra.mxu1 %v3390_v0 }
 0x8a3   :  { %2800 = vmatprep.subr.bf16.mxu0 %v3391_v4  ;;  %2841 = vmatprep.subr.bf16.mxu1 %v3392_v12 }
 0x8a6   :  { %2801 = vmatpush1.bf16.msra.mxu0 %v3393_v53  ;;  %2842 = vmatpush1.bf16.msra.mxu1 %v3394_v26 }
 0x8a7   :  { %2802 = vmatprep.subr.bf16.mxu0 %v3395_v55  ;;  %2843 = vmatprep.subr.bf16.mxu1 %v3396_v6 }
 0x8aa   :  { %2803 = vmatpush1.bf16.msra.mxu0 %v3397_v22  ;;  %2844 = vmatpush1.bf16.msra.mxu1 %v3398_v13  ;;  %v6085_v22 = vld [vmem:[#allocation48_spill] sm:$0xff] }
 0x8ab   :  { %2804 = vmatprep.subr.bf16.mxu0 %v3399_v61  ;;  %2845 = vmatprep.subr.bf16.mxu1 %v3400_v45  ;;  %v6086_v45 = vld [vmem:[#allocation50_spill] sm:$0xff] }
 0x8ae   :  { %2805 = vmatpush1.bf16.msra.mxu0 %v3401_v51  ;;  %2846 = vmatpush1.bf16.msra.mxu1 %v3402_v34 }
 0x8af   :  { %2806 = vmatprep.subr.bf16.mxu0 %v3403_v33  ;;  %2847 = vmatprep.subr.bf16.mxu1 %v3404_v8 }
 0x8b2   :  { %2807 = vmatpush1.bf16.msra.mxu0 %v3405_v63  ;;  %2848 = vmatpush1.bf16.msra.mxu1 %v3406_v3 }
 0x8b3   :  { %2808 = vmatprep.subr.bf16.mxu0 %v3407_v5  ;;  %2849 = vmatprep.subr.bf16.mxu1 %v3408_v10 }
 0x8b6   :  { %2809 = vmatpush1.bf16.msra.mxu0 %v3409_v50  ;;  %2850 = vmatpush1.bf16.msra.mxu1 %v3410_v9 }
 0x92c   :  { %v2602_v11 = vpop.f32.mrb[68].mxu0  ;;  %v2643_v44 = vpop.f32.mrb[68].mxu1 }
 0x92d   :  { %v2603_v37 = vadd.f32 %v2602_v11, %v6078_v54  ;;  %v2604_v48 = vpop.f32.mrb[69].mxu0  ;;  %v2645_v56 = vpop.f32.mrb[69].mxu1  ;;  %v2644_v20 = vadd.f32 %v2643_v44, %v6080_v19 }
 0x92e   :  { %v2605_v15 = vadd.f32 %v2604_v48, %v6079_v52  ;;  %v2606_v14 = vpop.f32.mrb[70].mxu0  ;;  %v2647_v49 = vpop.f32.mrb[70].mxu1  ;;  %v2646_v24 = vadd.f32 %v2645_v56, %v6081_v21 }
 0x92f   :  { %v2650_v62 = vmul.f32 0.5, %v2603_v37  ;;  %v2607_v16 = vpop.f32.mrb[71].mxu0  ;;  %v2648_v17 = vpop.f32.mrb[71].mxu1 }
 0x930   :  { %v2654_v18 = vmul.f32 0.5, %v2605_v15  ;;  %v2659_v25 = vmul.f32 0.5, %v2646_v24 }
 0x931   :  { %3253 = vtanh.f32 %v2650_v62 }
 0x932   :  { %3255 = vtanh.f32 %v2654_v18 }
 0x933   :  { %3257 = vtanh.f32 %v2644_v20 }
 0x934   :  { %3259 = vtanh.f32 %v2659_v25 }
 0x93b   :  { %v3254_v27 = vpop.eup %3253 }
 0x93c   :  { %v3256_v28 = vpop.eup %3255  ;;  %v2652_v29 = vmul.f32 0.5, %v3254_v27 }
 0x93d   :  { %v2656_v30 = vmul.f32 0.5, %v3256_v28  ;;  %v3258_v32 = vpop.eup %3257 }
 0x93e   :  { %v2653_v31 = vadd.f32 0.5, %v2652_v29  ;;  %v3260_v41 = vpop.eup %3259 }
 0x93f   :  { %v2657_v35 = vadd.f32 0.5, %v2656_v30  ;;  %v2661_v42 = vmul.f32 0.5, %v3260_v41 }
 0x940   :  { %v2664_v36 = vmul.f32 %v3258_v32, %v2653_v31 }
 0x941   :  { %v2663_v39 = vmul.f32 %v2657_v35, %v6082_v38  ;;  %v2662_v60 = vadd.f32 0.5, %v2661_v42 }
 0x943   :  { %v5335_v40 = vadd.f32 %v2664_v36, %v2663_v39 }
 0x945   :  { %3261 = vtanh.f32 %v5335_v40 }
 0x94c   :  { %v2706_v43 = vpop.f32.mrb[72].mxu0  ;;  %v2747_v46 = vpop.f32.mrb[72].mxu1 }
 0x94d   :  { %v2754_v57 = vadd.f32 %v2706_v43, %v6083_v47  ;;  %v2708_v58 = vpop.f32.mrb[73].mxu0  ;;  %v2749_v59 = vpop.f32.mrb[73].mxu1  ;;  %v2756_v13 = vadd.f32 %v2747_v46, %v6085_v22 }
 0x94e   :  { %v2755_v2 = vadd.f32 %v2708_v58, %v6084_v1  ;;  %v2710_v23 = vpop.f32.mrb[74].mxu0  ;;  %v2751_v0 = vpop.f32.mrb[74].mxu1  ;;  %v2757_v51 = vadd.f32 %v2749_v59, %v6086_v45 }
 0x94f   :  { %v3262_v4 = vpop.eup %3261  ;;  %v2758_v12 = vmul.f32 0.5, %v2754_v57  ;;  %v2711_v53 = vpop.f32.mrb[75].mxu0 }
 0x950   :  { %v2752_v26 = vpop.f32.mrb[75].mxu1  ;;  %v2762_v55 = vmul.f32 0.5, %v2755_v2  ;;  %v2667_v6 = vmul.f32 %v3262_v4, %v2662_v60  ;;  %v2767_v34 = vmul.f32 0.5, %v2757_v51 }
 0x951   :  { %3263 = vtanh.f32 %v2758_v12 }
 0x952   :  { %3265 = vtanh.f32 %v2762_v55  ;;  %v2777_v61 = vpack.c.bf16 %v2667_v6, %v2667_v6 }
 0x953   :  { %3267 = vtanh.f32 %v2756_v13 }
 0x954   :  { %2810 = vmatprep.mubr.bf16.mxu0 %v2777_v61  ;;  %2851 = vmatprep.mubr.bf16.mxu1 %v2777_v61  ;;  %3269 = vtanh.f32 %v2767_v34 }
 0x95b   :  { %v3264_v33 = vpop.eup %3263 }
 0x95c   :  { %v3266_v8 = vpop.eup %3265  ;;  %v2760_v63 = vmul.f32 0.5, %v3264_v33 }
 0x95d   :  { %v2764_v3 = vmul.f32 0.5, %v3266_v8  ;;  %v3268_v10 = vpop.eup %3267 }
 0x95e   :  { %v2761_v5 = vadd.f32 0.5, %v2760_v63  ;;  %v3270_v37 = vpop.eup %3269 }
 0x95f   :  { %v2765_v50 = vadd.f32 0.5, %v2764_v3  ;;  %v2769_v48 = vmul.f32 0.5, %v3270_v37 }
 0x960   :  { %v2772_v9 = vmul.f32 %v3268_v10, %v2761_v5 }
 0x961   :  { %v2771_v11 = vmul.f32 %v2765_v50, %v5281_v7  ;;  %v2770_v56 = vadd.f32 0.5, %v2769_v48 }
 0x963   :  { %v2773_v44 = vadd.f32 %v2772_v9, %v2771_v11 }
 0x965   :  { %3271 = vtanh.f32 %v2773_v44  ;;  %2881 = vst [vmem:[%s5386_s12] sm:$0xff] %v2773_v44 }
 0x96f   :  { %v3272_v15 = vpop.eup %3271 }
 0x970   :  { %v2775_v14 = vmul.f32 %v3272_v15, %v2770_v56 }
 0x972   :  { %2878 = vst [vmem:[%s5385_s11] sm:$0xff] %v2775_v14  ;;  %v2776_v49 = vpack.c.bf16 %v2775_v14, %v2775_v14 }
 0x974   :  { %2811 = vmatmul.mubr.bf16.vlgmr.msra.gmra.mrb[76].mxu0 %v2776_v49  ;;  %2852 = vmatmul.mubr.bf16.vlgmr.msra.gmra.mrb[76].mxu1 %v2776_v49 }
 0xa47   :  { %v2812_v62 = vpop.f32.mrb[76].mxu0  ;;  %v2853_v7 = vpop.f32.mrb[76].mxu1 }
 0xa48   :  { %v2813_v16 = vadd.f32 %v2812_v62, %v6078_v54  ;;  %v2814_v17 = vpop.f32.mrb[77].mxu0  ;;  %v2855_v18 = vpop.f32.mrb[77].mxu1  ;;  %v2854_v31 = vadd.f32 %v2853_v7, %v6080_v19 }
 0xa49   :  { %v2815_v20 = vadd.f32 %v2814_v17, %v6079_v52  ;;  %v2816_v24 = vpop.f32.mrb[78].mxu0  ;;  %v2857_v25 = vpop.f32.mrb[78].mxu1  ;;  %v2856_v32 = vadd.f32 %v2855_v18, %v6081_v21 }
 0xa4a   :  { %v2860_v27 = vmul.f32 0.5, %v2813_v16  ;;  %v2817_v28 = vpop.f32.mrb[79].mxu0  ;;  %v2858_v29 = vpop.f32.mrb[79].mxu1 }
 0xa4b   :  { %v2864_v30 = vmul.f32 0.5, %v2815_v20  ;;  %v2869_v35 = vmul.f32 0.5, %v2856_v32 }
 0xa4c   :  { %3273 = vtanh.f32 %v2860_v27 }
 0xa4d   :  { %3275 = vtanh.f32 %v2864_v30 }
 0xa4e   :  { %3277 = vtanh.f32 %v2854_v31 }
 0xa4f   :  { %3279 = vtanh.f32 %v2869_v35 }
 0xa56   :  { %v3274_v36 = vpop.eup %3273 }
 0xa57   :  { %v3276_v54 = vpop.eup %3275  ;;  %v2862_v38 = vmul.f32 0.5, %v3274_v36 }
 0xa58   :  { %v2866_v39 = vmul.f32 0.5, %v3276_v54  ;;  %v3278_v41 = vpop.eup %3277 }
 0xa59   :  { %v2863_v52 = vadd.f32 0.5, %v2862_v38  ;;  %v3280_v19 = vpop.eup %3279 }
 0xa5a   :  { %v2867_v42 = vadd.f32 0.5, %v2866_v39  ;;  %v2871_v21 = vmul.f32 0.5, %v3280_v19 }
 0xa5b   :  { %v2874_v43 = vmul.f32 %v3278_v41, %v2863_v52 }
 0xa5c   :  { %v2873_v46 = vmul.f32 %v2867_v42, %v5335_v40  ;;  %v2872_v57 = vadd.f32 0.5, %v2871_v21 }
 0xa5e   :  { %v2875_v47 = vadd.f32 %v2874_v43, %v2873_v46 }
 0xa60   :  { %3281 = vtanh.f32 %v2875_v47  ;;  %3037 = vst [vmem:[%s5386_s12 + $0x8] sm:$0xff] %v2875_v47 }
 0xa6a   :  { %v3282_v58 = vpop.eup %3281 }
 0xa6b   :  { %v2877_v59 = vmul.f32 %v3282_v58, %v2872_v57 }
 0xa6d   :  { %3036 = vst [vmem:[%s5385_s11 + $0x8] sm:$0xff] %v2877_v59 }
 0xa6e   :  { %3413 = dma.done.wait [#allocation5 + $0x1], 1024 }
 0xa6f   :  { %3414 = vsyncadd [#allocation5 + $0x1], 4294966272  ;;  %v3417_v60 = vmov 0.0   ;;  %vm3418_vm2 = vmmov 0   ;;  %v6087_v40 = vld [vmem:[#allocation10_spill] sm:$0xff]  ;;  %v6088_v1 = vld [vmem:[#allocation11_spill] sm:$0xff]  ;;  %v2888_v53 = vpack.c.bf16 %v2877_v59, %v2877_v59 }
 0xa70   :  { %3050 = vmatprep.subr.bf16.mxu0 %v3417_v60  ;;  %3066 = vmatprep.mubr.msk.bf16.mxu0 %vm3418_vm2, %v3417_v60  ;;  %v6089_v2 = vld [vmem:[#allocation12_spill] sm:$0xff]  ;;  %v6090_v23 = vld [vmem:[#allocation13_spill] sm:$0xff]  ;;  %v6091_v0 = vld [vmem:[#allocation14_spill] sm:$0xff] }
 0xa71   :  { %3051 = vmatpush3.bf16.msra.mxu0 %v6087_v40  ;;  %v6092_v4 = vld [vmem:[#allocation15_spill] sm:$0xff]  ;;  %v6093_v12 = vld [vmem:[#allocation16_spill] sm:$0xff]  ;;  %v6094_v26 = vld [vmem:[#allocation17_spill] sm:$0xff] }
 0xa72   :  { %3052 = vmatprep.subr.bf16.mxu0 %v3417_v60  ;;  %v3038_v55 = vld [vmem:[%s5381_s7] ss:$0 sm:$0xff] }
 0xa75   :  { %3053 = vmatpush3.bf16.msra.mxu0 %v6088_v1 }
 0xa76   :  { %3054 = vmatprep.subr.bf16.mxu0 %v3417_v60 }
 0xa79   :  { %3055 = vmatpush3.bf16.msra.mxu0 %v6089_v2 }
 0xa7a   :  { %3056 = vmatprep.subr.bf16.mxu0 %v3417_v60 }
 0xa7d   :  { %3057 = vmatpush3.bf16.msra.mxu0 %v6090_v23 }
 0xa7e   :  { %3058 = vmatprep.subr.bf16.mxu0 %v3417_v60 }
 0xa81   :  { %3059 = vmatpush3.bf16.msra.mxu0 %v6091_v0 }
 0xa82   :  { %3060 = vmatprep.subr.bf16.mxu0 %v3417_v60 }
 0xa85   :  { %3061 = vmatpush3.bf16.msra.mxu0 %v6092_v4 }
 0xa86   :  { %3062 = vmatprep.subr.bf16.mxu0 %v3417_v60 }
 0xa89   :  { %3063 = vmatpush3.bf16.msra.mxu0 %v6093_v12 }
 0xa8a   :  { %3064 = vmatprep.subr.bf16.mxu0 %v3417_v60 }
 0xa8d   :  { %3065 = vmatpush3.bf16.msra.mxu0 %v6094_v26 }
 0xa90   :  { %3067 = vmatmul.mubr.bf16.vlgmr.msra.gmra.mrb[80].mxu0 %v2888_v53 }
 0xb63   :  { %v2938_v6 = vpop.f32.mrb[80].mxu0 }
 0xb64   :  { %v2939_v22 = vadd.f32 %v3038_v55, %v2938_v6  ;;  %v3068_v13 = vpop.f32.mrb[81].mxu0 }
 0xb65   :  { %v2941_v61 = vpop.f32.mrb[82].mxu0 }
 0xb66   :  { %2944 = vst [vmem:[%s5384_s10] sm:$0xff] %v2939_v22  ;;  %v3069_v45 = vpop.f32.mrb[83].mxu0 }
 0xb67   :  { %2957 = vsyncmov [#allocation5] }
 0xb6a   :  { %s2958_s18 = vpop.sfrf %2957 }
 0xb6b   :  { %p3039_p0 = scmp.ne.s32.totalorder %s2958_s18, 0 }
 0xb6d   :  { %2962 = shalt.err (%p3039_p0)  }
 0xb6e   :  { %2964 = vsyncmov [#allocation5 + $0x1] }
 0xb71   :  { %s2965_s19 = vpop.sfrf %2964 }
 0xb72   :  { %p3040_p1 = scmp.ne.s32.totalorder %s2965_s19, 0 }
 0xb74   :  { %2969 = shalt.err (%p3040_p1)  }

</bundles_post_ra>
